<compile_context>
chip_gen: v7x
topology: tpu7x:2x2x1
jax: 0.10.0
libtpu: 0.0.40
codegen_flags: <defaults>
</compile_context>

<pallas_src>
import functools

import jax
import jax.numpy as jnp
from jax.experimental import pallas as pl
from jax.experimental.pallas import tpu as pltpu


def _fused_stack_kernel(*args, kh, kw, dims):
    """Whole conv stack for one batch element, fully resident in VMEM.

    args = (x_ref, w0_smem, b0_smem,
            wT_1, bias_1, ..., wT_{nb-1}, bias_{nb-1},    # blocks >= 1 (VMEM)
            o_ref,
            pad_0, ..., pad_{nb-1})                       # halo scratch (VMEM)

      x_ref   : (1, 1, H, W0)          NCHW input block (Cin0 == 1)
      w0_smem : (kh*kw*Cout0,)         block-0 weight, BN scale folded, SMEM
      b0_smem : (Cout0,)               block-0 folded bias, SMEM
      wT_k    : (Cout_k, kh*kw*Cin_k)  weight, BN scale folded, K order (i,j,c)
      bias_k  : (Cout_k, H*W_k)        folded bias, pre-broadcast over lanes
      o_ref   : (1, 1, Cf*Hf*Wf)       lane-dense NCHW-flattened output
      pad_k   : (Cin_k, H+kh-1, W_k+kw-1)  channel-major halo scratch (W in lanes)

    dims : tuple of (H, W_in, Cin, Cout) per block (W halves after each block).
    """
    nb = len(dims)
    x_ref, w0_s, b0_s = args[0], args[1], args[2]
    mxu_refs = args[3:3 + 2 * (nb - 1)]
    o_ref = args[3 + 2 * (nb - 1)]
    pad_refs = args[4 + 2 * (nb - 1):]
    assert len(pad_refs) == nb

    # PyTorch 'same' padding: extra pad (even kernel) goes to the bottom/right.
    ph_lo = (kh - 1) // 2
    ph_hi = (kh - 1) - ph_lo
    pw_lo = (kw - 1) // 2
    pw_hi = (kw - 1) - pw_lo

    # Zero only the halo RINGS (interiors are fully overwritten below).  Redone
    # every grid step so it is correct when the parallel batch axis is split
    # across TensorCores (do NOT guard with program_id == 0).
    for bi, (H, W, Cin, _) in enumerate(dims):
        Hp, Wp = H + kh - 1, W + kw - 1
        p = pad_refs[bi]
        if ph_lo:
            p[:, :ph_lo, :] = jnp.zeros((Cin, ph_lo, Wp), jnp.float32)
        if ph_hi:
            p[:, Hp - ph_hi:, :] = jnp.zeros((Cin, ph_hi, Wp), jnp.float32)
        if pw_lo:
            p[:, :, :pw_lo] = jnp.zeros((Cin, Hp, pw_lo), jnp.float32)
        if pw_hi:
            p[:, :, Wp - pw_hi:] = jnp.zeros((Cin, Hp, pw_hi), jnp.float32)

    # ---- Block 0: Cin == 1 -> direct VPU conv (no im2col, no MXU) ----------
    H, W, _, Cout0 = dims[0]
    Wo = W // 2
    pad0 = pad_refs[0]
    pad0[0, ph_lo:ph_lo + H, pw_lo:pw_lo + W] = x_ref[0, 0]
    # Hoist the kh*kw shifted windows (cheap (H, W) slices, W in lanes).
    wins = [pad0[0, i:i + H, j:j + W] for i in range(kh) for j in range(kw)]
    last = nb == 1
    out_rows = []
    for co in range(Cout0):
        acc = None
        for k in range(kh * kw):
            term = wins[k] * w0_s[k * Cout0 + co]        # SMEM scalar * vreg
            acc = term if acc is None else acc + term
        acc = jnp.maximum(acc + b0_s[co], 0.0)           # folded BN bias + ReLU
        pooled = jnp.max(acc.reshape(H, Wo, 2), axis=2)  # MaxPool (1,2)/(1,2)
        if last:
            out_rows.append(pooled.reshape(1, H * Wo))
        else:
            pad_refs[1][co, ph_lo:ph_lo + H, pw_lo:pw_lo + Wo] = pooled
    if last:
        o_ref[...] = jnp.concatenate(out_rows, axis=1).reshape(1, 1, Cout0 * H * Wo)
        return

    # ---- Blocks 1..nb-1: one spatial-major MXU matmul each -----------------
    for bi in range(1, nb):
        H, W, Cin, Cout = dims[bi]
        Wo = W // 2
        pad = pad_refs[bi]
        w_ref, b_ref = mxu_refs[2 * (bi - 1)], mxu_refs[2 * (bi - 1) + 1]
        # im2col^T: K rows in (i, j, c) order, spatial (H*W) dense in lanes.
        rows = [pad[:, i:i + H, j:j + W].reshape(Cin, H * W)
                for i in range(kh) for j in range(kw)]
        xcol_t = jnp.concatenate(rows, axis=0)                    # (K, H*W)
        y = jnp.dot(w_ref[...], xcol_t,
                    preferred_element_type=jnp.float32)           # (Cout, H*W)
        y = jnp.maximum(y + b_ref[...], 0.0)                      # bias + ReLU
        # MaxPool (1,2): adjacent lane pairs share the same h (W is even).
        yp = jnp.max(y.reshape(Cout, H * Wo, 2), axis=2)          # (Cout, H*Wo)
        if bi < nb - 1:
            pad_refs[bi + 1][:, ph_lo:ph_lo + H, pw_lo:pw_lo + Wo] = (
                yp.reshape(Cout, H, Wo))
        else:
            o_ref[...] = yp.reshape(1, 1, Cout * H * Wo)   # NCHW-flat, lane-dense


def prepare_params(params, nf, h_use, w_in):
    """Fold BN (inference) into per-block conv weights / biases and lay them out
    for the kernel.  Run ONCE outside jit, so no per-call XLA prep ops."""
    kh, kw = nf, 3
    first, rest = None, []
    H, W, cin = h_use, w_in, 1
    for bi, blk in enumerate(params["blocks"]):
        cout = blk["w"].shape[-1]
        assert blk["w"].shape == (kh, kw, cin, cout)
        assert W % 2 == 0, "MaxPool2d((1,2),(1,2)) needs an even W at every block"
        scale = blk["scale"].reshape(cout)       # gamma / sqrt(var + eps)
        bias = blk["bias"].reshape(cout)         # (conv_b - mean) * scale + beta
        if bi == 0:
            # (kh*kw, cout), scale folded, flattened for SMEM scalar reads.
            wflat = (blk["w"].reshape(kh * kw, cout) * scale[None, :]).reshape(-1)
            first = (jnp.asarray(wflat, jnp.float32), jnp.asarray(bias, jnp.float32))
        else:
            # (cout, K) with K in (i, j, c) order, scale folded into the rows.
            w_t = (blk["w"].reshape(kh * kw * cin, cout) * scale[None, :]).T
            b_bcast = jnp.broadcast_to(bias[:, None], (cout, H * W))
            rest.append((jnp.asarray(w_t, jnp.float32),
                         jnp.asarray(b_bcast, jnp.float32)))
        W, cin = W // 2, cout
    return {"first": first, "rest": rest}


def fused_conv_stack(x_nchw, prepped, nf, h_use):
    """x_nchw: (N, 1, H_full, W) f32.  Uses rows [0, h_use).  Returns NCHW f32."""
    n, cin0, h_full, w_in = x_nchw.shape
    assert cin0 == 1, "Net's first conv has a single input channel"
    kh, kw = nf, 3

    # Re-derive the static per-block dims from the prepared operand shapes.
    w0f, b0 = prepped["first"]
    cout0 = int(b0.shape[0])
    assert w0f.shape == (kh * kw * cout0,)
    H, W, Cin = h_use, w_in, 1
    dims = [(H, W, Cin, cout0)]
    W, Cin = W // 2, cout0
    for w_t, b_bcast in prepped["rest"]:
        cout = int(w_t.shape[0])
        assert w_t.shape == (cout, kh * kw * Cin)
        assert b_bcast.shape == (cout, H * W)
        dims.append((H, W, Cin, cout))
        W, Cin = W // 2, cout
    cf, hf, wf = Cin, H, W
    flat = cf * hf * wf

    # Feed NCHW directly: the unused trailing rows are simply never covered by
    # the index_map (no wrapper slice, no transpose).
    if h_use != h_full and h_use % 8 != 0:
        x_op = x_nchw[:, :, :h_use, :]   # rare fallback keeping the block legal
    else:
        x_op = x_nchw

    in_specs = [pl.BlockSpec((1, 1, h_use, w_in), lambda i: (i, 0, 0, 0)),
                pl.BlockSpec(memory_space=pltpu.MemorySpace.SMEM),   # w0 scalars
                pl.BlockSpec(memory_space=pltpu.MemorySpace.SMEM)]   # b0 scalars
    operands = [x_op, w0f, b0]
    for w_t, b_bcast in prepped["rest"]:
        # Constant block index -> DMA'd once, resident in VMEM across grid steps.
        in_specs.append(pl.BlockSpec(w_t.shape, lambda i: (0, 0)))
        operands.append(w_t)
        in_specs.append(pl.BlockSpec(b_bcast.shape, lambda i: (0, 0)))
        operands.append(b_bcast)

    kernel = functools.partial(_fused_stack_kernel, kh=kh, kw=kw, dims=tuple(dims))

    out_flat = pl.pallas_call(
        kernel,
        out_shape=jax.ShapeDtypeStruct((n, 1, flat), jnp.float32),
        grid=(n,),
        in_specs=in_specs,
        out_specs=pl.BlockSpec((1, 1, flat), lambda i: (i, 0, 0)),
        scratch_shapes=[pltpu.VMEM((c_, h_ + kh - 1, w_ + kw - 1), jnp.float32)
                        for (h_, w_, c_, _) in dims],
        compiler_params=pltpu.CompilerParams(
            dimension_semantics=("parallel",)),   # batch=2 -> 2 TCs on v7x
    )(*operands)
    # Pure metadata reshape: the kernel already emits NCHW-flattened rows.
    return out_flat.reshape(n, cf, hf, wf)


def net_forward(x_nchw, prepped, nf):
    # `p = relu(self.fc_scale(x[:, 0, -2:, 0]))` in the reference forward is dead
    # code (its result is discarded), so it is not computed.  The conv stack
    # consumes x[:, :, :-2, :]; the row drop is done by the input BlockSpec.
    h_use = x_nchw.shape[2] - 2
    return fused_conv_stack(x_nchw, prepped, nf, h_use)


def init_params(key, nf, nl_code):
    """Deterministic synthetic parameters matching Net(nf, nl_code).__init__."""
    nl = {8: 1, 16: 2, 32: 3, 64: 4, 128: 5}[nl_code]
    eps = 1e-5  # PyTorch BatchNorm2d default
    params = {"blocks": []}
    n = (1, 4)
    for _ in range(nl):
        cin, cout = n
        key, kw_, kb_, kg_, kbeta_, krm_, krv_ = jax.random.split(key, 7)
        w = 0.1 * jax.random.normal(kw_, (nf, 3, cin, cout), jnp.float32)
        b = 0.1 * jax.random.normal(kb_, (cout,), jnp.float32)
        gamma = 1.0 + 0.1 * jax.random.normal(kg_, (cout,), jnp.float32)
        beta = 0.1 * jax.random.normal(kbeta_, (cout,), jnp.float32)
        rmean = 0.1 * jax.random.normal(krm_, (cout,), jnp.float32)
        rvar = 1.0 + 0.1 * jax.random.uniform(krv_, (cout,), jnp.float32)
        scale = gamma / jnp.sqrt(rvar + eps)
        bias = (b - rmean) * scale + beta
        params["blocks"].append(dict(
            w=w, raw_bias=b, gamma=gamma, beta=beta, rmean=rmean, rvar=rvar,
            eps=eps, scale=scale.reshape(1, cout), bias=bias.reshape(1, cout)))
        n = (cout, cout * 2)
    return params


def reference_forward(x_nchw, params, nf):
    """Pure-JAX (XLA) reference used to validate the Pallas kernel."""
    h = x_nchw[:, :, :-2, :]
    ph_lo = (nf - 1) // 2
    ph_hi = (nf - 1) - ph_lo
    # NOTE: the 'same'-padding split is only exercised with odd nf here.
    for blk in params["blocks"]:
        w_oihw = jnp.transpose(blk["w"], (3, 2, 0, 1))
        h = jax.lax.conv_general_dilated(
            h, w_oihw, window_strides=(1, 1),
            padding=((ph_lo, ph_hi), (1, 1)),
            dimension_numbers=("NCHW", "OIHW", "NCHW"))
        h = h + blk["raw_bias"][None, :, None, None]
        h = (h - blk["rmean"][None, :, None, None]) * jax.lax.rsqrt(
            blk["rvar"][None, :, None, None] + blk["eps"])
        h = h * blk["gamma"][None, :, None, None] + blk["beta"][None, :, None, None]
        h = jax.nn.relu(h)
        h = jax.lax.reduce_window(h, -jnp.inf, jax.lax.max,
                                  (1, 1, 1, 2), (1, 1, 1, 2), "VALID")
    return h


if __name__ == "__main__":
    nf = 3        # conv kernel height
    nl_code = 16  # -> 2 conv blocks (Net(nf=3, nl=16))

    key = jax.random.PRNGKey(0)
    kx, kp = jax.random.split(key)
    # NCHW, single input channel; the last 2 H-rows feed only the dead
    # fc_scale branch and are never read by the kernel (BlockSpec window).
    x = jax.random.normal(kx, (2, 1, 10, 16), jnp.float32)
    params = init_params(kp, nf, nl_code)
    prepped = prepare_params(params, nf, h_use=x.shape[2] - 2, w_in=x.shape[3])

    fwd = jax.jit(functools.partial(net_forward, nf=nf))
    out = jax.block_until_ready(fwd(x, prepped))

    ref = reference_forward(x, params, nf)
    assert out.shape == ref.shape, (out.shape, ref.shape)
    assert jnp.allclose(out, ref, atol=1e-4, rtol=1e-4), float(
        jnp.max(jnp.abs(out - ref)))
    print("KERNEL_OK")
</pallas_src>

<mosaic_0001>
module attributes {stable_mosaic.version = 11 : i64} {
  func.func @_fused_stack_kernel(%arg0: i32, %arg1: memref<1x1x8x16xf32, #tpu.memory_space<vmem>>, %arg2: memref<36xf32, #tpu.memory_space<smem>>, %arg3: memref<4xf32, #tpu.memory_space<smem>>, %arg4: memref<8x36xf32, #tpu.memory_space<vmem>>, %arg5: memref<8x64xf32, #tpu.memory_space<vmem>>, %arg6: memref<1x1x256xf32, #tpu.memory_space<vmem>>, %arg7: memref<1x10x18xf32, #tpu.memory_space<vmem>>, %arg8: memref<4x10x10xf32, #tpu.memory_space<vmem>>) attributes {dimension_semantics = [#tpu.dimension_semantics<parallel>], iteration_bounds = array<i64: 2>, scalar_prefetch = 0 : i64, scratch_operands = 2 : i64, tpu.core_type = #tpu.core_type<tc>, window_params = [{transform_indices = @transform_0, window_bounds = array<i64: 1, 1, 8, 16>}, {transform_indices = @transform_1, window_bounds = array<i64: 36>}, {transform_indices = @transform_2, window_bounds = array<i64: 4>}, {pipeline_mode = #tpu.pipeline_mode<synchronous>, transform_indices = @transform_3, window_bounds = array<i64: 8, 36>}, {pipeline_mode = #tpu.pipeline_mode<synchronous>, transform_indices = @transform_4, window_bounds = array<i64: 8, 64>}, {transform_indices = @transform_5, window_bounds = array<i64: 1, 1, 256>}]} {
    %cst = arith.constant 0.000000e+00 : f32
    %0 = vector.broadcast %cst : f32 to vector<1x1x18xf32>
    %c0 = arith.constant 0 : index
    %c0_0 = arith.constant 0 : index
    %c0_1 = arith.constant 0 : index
    %1 = vector.load %arg7[%c0, %c0_0, %c0_1] : memref<1x10x18xf32, #tpu.memory_space<vmem>>, vector<1x1x18xf32>
    tpu.vector_store %arg7[%c0, %c0_0, %c0_1], %0 {strides = array<i32>} : memref<1x10x18xf32, #tpu.memory_space<vmem>>, vector<1x1x18xf32>,
    %cst_2 = arith.constant 0.000000e+00 : f32
    %2 = vector.broadcast %cst_2 : f32 to vector<1x1x18xf32>
    %c0_3 = arith.constant 0 : index
    %c9 = arith.constant 9 : index
    %c0_4 = arith.constant 0 : index
    %3 = vector.load %arg7[%c0_3, %c9, %c0_4] : memref<1x10x18xf32, #tpu.memory_space<vmem>>, vector<1x1x18xf32>
    tpu.vector_store %arg7[%c0_3, %c9, %c0_4], %2 {strides = array<i32>} : memref<1x10x18xf32, #tpu.memory_space<vmem>>, vector<1x1x18xf32>,
    %cst_5 = arith.constant 0.000000e+00 : f32
    %4 = vector.broadcast %cst_5 : f32 to vector<1x10x1xf32>
    %c0_6 = arith.constant 0 : index
    %c0_7 = arith.constant 0 : index
    %c0_8 = arith.constant 0 : index
    %5 = vector.load %arg7[%c0_6, %c0_7, %c0_8] : memref<1x10x18xf32, #tpu.memory_space<vmem>>, vector<1x10x1xf32>
    tpu.vector_store %arg7[%c0_6, %c0_7, %c0_8], %4 {strides = array<i32>} : memref<1x10x18xf32, #tpu.memory_space<vmem>>, vector<1x10x1xf32>,
    %cst_9 = arith.constant 0.000000e+00 : f32
    %6 = vector.broadcast %cst_9 : f32 to vector<1x10x1xf32>
    %c0_10 = arith.constant 0 : index
    %c0_11 = arith.constant 0 : index
    %c17 = arith.constant 17 : index
    %7 = vector.load %arg7[%c0_10, %c0_11, %c17] : memref<1x10x18xf32, #tpu.memory_space<vmem>>, vector<1x10x1xf32>
    tpu.vector_store %arg7[%c0_10, %c0_11, %c17], %6 {strides = array<i32>} : memref<1x10x18xf32, #tpu.memory_space<vmem>>, vector<1x10x1xf32>,
    %cst_12 = arith.constant 0.000000e+00 : f32
    %8 = vector.broadcast %cst_12 : f32 to vector<4x1x10xf32>
    %c0_13 = arith.constant 0 : index
    %c0_14 = arith.constant 0 : index
    %c0_15 = arith.constant 0 : index
    %9 = vector.load %arg8[%c0_13, %c0_14, %c0_15] : memref<4x10x10xf32, #tpu.memory_space<vmem>>, vector<4x1x10xf32>
    tpu.vector_store %arg8[%c0_13, %c0_14, %c0_15], %8 {strides = array<i32>} : memref<4x10x10xf32, #tpu.memory_space<vmem>>, vector<4x1x10xf32>,
    %cst_16 = arith.constant 0.000000e+00 : f32
    %10 = vector.broadcast %cst_16 : f32 to vector<4x1x10xf32>
    %c0_17 = arith.constant 0 : index
    %c9_18 = arith.constant 9 : index
    %c0_19 = arith.constant 0 : index
    %11 = vector.load %arg8[%c0_17, %c9_18, %c0_19] : memref<4x10x10xf32, #tpu.memory_space<vmem>>, vector<4x1x10xf32>
    tpu.vector_store %arg8[%c0_17, %c9_18, %c0_19], %10 {strides = array<i32>} : memref<4x10x10xf32, #tpu.memory_space<vmem>>, vector<4x1x10xf32>,
    %cst_20 = arith.constant 0.000000e+00 : f32
    %12 = vector.broadcast %cst_20 : f32 to vector<4x10x1xf32>
    %c0_21 = arith.constant 0 : index
    %c0_22 = arith.constant 0 : index
    %c0_23 = arith.constant 0 : index
    %13 = vector.load %arg8[%c0_21, %c0_22, %c0_23] : memref<4x10x10xf32, #tpu.memory_space<vmem>>, vector<4x10x1xf32>
    tpu.vector_store %arg8[%c0_21, %c0_22, %c0_23], %12 {strides = array<i32>} : memref<4x10x10xf32, #tpu.memory_space<vmem>>, vector<4x10x1xf32>,
    %cst_24 = arith.constant 0.000000e+00 : f32
    %14 = vector.broadcast %cst_24 : f32 to vector<4x10x1xf32>
    %c0_25 = arith.constant 0 : index
    %c0_26 = arith.constant 0 : index
    %c9_27 = arith.constant 9 : index
    %15 = vector.load %arg8[%c0_25, %c0_26, %c9_27] : memref<4x10x10xf32, #tpu.memory_space<vmem>>, vector<4x10x1xf32>
    tpu.vector_store %arg8[%c0_25, %c0_26, %c9_27], %14 {strides = array<i32>} : memref<4x10x10xf32, #tpu.memory_space<vmem>>, vector<4x10x1xf32>,
    %c0_28 = arith.constant 0 : index
    %c0_29 = arith.constant 0 : index
    %c0_30 = arith.constant 0 : index
    %c0_31 = arith.constant 0 : index
    %16 = vector.load %arg1[%c0_28, %c0_29, %c0_30, %c0_31] : memref<1x1x8x16xf32, #tpu.memory_space<vmem>>, vector<1x1x8x16xf32>
    %17 = vector.shape_cast %16 : vector<1x1x8x16xf32> to vector<8x16xf32>
    %c0_32 = arith.constant 0 : index
    %c1 = arith.constant 1 : index
    %c1_33 = arith.constant 1 : index
    %18 = vector.load %arg7[%c0_32, %c1, %c1_33] : memref<1x10x18xf32, #tpu.memory_space<vmem>>, vector<1x8x16xf32>
    %19 = vector.shape_cast %18 : vector<1x8x16xf32> to vector<8x16xf32>
    %20 = vector.shape_cast %17 : vector<8x16xf32> to vector<1x8x16xf32>
    tpu.vector_store %arg7[%c0_32, %c1, %c1_33], %20 {strides = array<i32>} : memref<1x10x18xf32, #tpu.memory_space<vmem>>, vector<1x8x16xf32>,
    %c0_34 = arith.constant 0 : index
    %c0_35 = arith.constant 0 : index
    %c0_36 = arith.constant 0 : index
    %21 = vector.load %arg7[%c0_34, %c0_35, %c0_36] : memref<1x10x18xf32, #tpu.memory_space<vmem>>, vector<1x8x16xf32>
    %22 = vector.shape_cast %21 : vector<1x8x16xf32> to vector<8x16xf32>
    %c0_37 = arith.constant 0 : index
    %c0_38 = arith.constant 0 : index
    %c1_39 = arith.constant 1 : index
    %23 = vector.load %arg7[%c0_37, %c0_38, %c1_39] : memref<1x10x18xf32, #tpu.memory_space<vmem>>, vector<1x8x16xf32>
    %24 = vector.shape_cast %23 : vector<1x8x16xf32> to vector<8x16xf32>
    %c0_40 = arith.constant 0 : index
    %c0_41 = arith.constant 0 : index
    %c2 = arith.constant 2 : index
    %25 = vector.load %arg7[%c0_40, %c0_41, %c2] : memref<1x10x18xf32, #tpu.memory_space<vmem>>, vector<1x8x16xf32>
    %26 = vector.shape_cast %25 : vector<1x8x16xf32> to vector<8x16xf32>
    %c0_42 = arith.constant 0 : index
    %c1_43 = arith.constant 1 : index
    %c0_44 = arith.constant 0 : index
    %27 = vector.load %arg7[%c0_42, %c1_43, %c0_44] : memref<1x10x18xf32, #tpu.memory_space<vmem>>, vector<1x8x16xf32>
    %28 = vector.shape_cast %27 : vector<1x8x16xf32> to vector<8x16xf32>
    %c0_45 = arith.constant 0 : index
    %c1_46 = arith.constant 1 : index
    %c1_47 = arith.constant 1 : index
    %29 = vector.load %arg7[%c0_45, %c1_46, %c1_47] : memref<1x10x18xf32, #tpu.memory_space<vmem>>, vector<1x8x16xf32>
    %30 = vector.shape_cast %29 : vector<1x8x16xf32> to vector<8x16xf32>
    %c0_48 = arith.constant 0 : index
    %c1_49 = arith.constant 1 : index
    %c2_50 = arith.constant 2 : index
    %31 = vector.load %arg7[%c0_48, %c1_49, %c2_50] : memref<1x10x18xf32, #tpu.memory_space<vmem>>, vector<1x8x16xf32>
    %32 = vector.shape_cast %31 : vector<1x8x16xf32> to vector<8x16xf32>
    %c0_51 = arith.constant 0 : index
    %c2_52 = arith.constant 2 : index
    %c0_53 = arith.constant 0 : index
    %33 = vector.load %arg7[%c0_51, %c2_52, %c0_53] : memref<1x10x18xf32, #tpu.memory_space<vmem>>, vector<1x8x16xf32>
    %34 = vector.shape_cast %33 : vector<1x8x16xf32> to vector<8x16xf32>
    %c0_54 = arith.constant 0 : index
    %c2_55 = arith.constant 2 : index
    %c1_56 = arith.constant 1 : index
    %35 = vector.load %arg7[%c0_54, %c2_55, %c1_56] : memref<1x10x18xf32, #tpu.memory_space<vmem>>, vector<1x8x16xf32>
    %36 = vector.shape_cast %35 : vector<1x8x16xf32> to vector<8x16xf32>
    %c0_57 = arith.constant 0 : index
    %c2_58 = arith.constant 2 : index
    %c2_59 = arith.constant 2 : index
    %37 = vector.load %arg7[%c0_57, %c2_58, %c2_59] : memref<1x10x18xf32, #tpu.memory_space<vmem>>, vector<1x8x16xf32>
    %38 = vector.shape_cast %37 : vector<1x8x16xf32> to vector<8x16xf32>
    %c0_60 = arith.constant 0 : index
    %39 = memref.load %arg2[%c0_60] : memref<36xf32, #tpu.memory_space<smem>>
    %40 = vector.broadcast %39 : f32 to vector<8x16xf32>
    %41 = arith.mulf %22, %40 : vector<8x16xf32>
    %c4 = arith.constant 4 : index
    %42 = memref.load %arg2[%c4] : memref<36xf32, #tpu.memory_space<smem>>
    %43 = vector.broadcast %42 : f32 to vector<8x16xf32>
    %44 = arith.mulf %24, %43 : vector<8x16xf32>
    %45 = arith.addf %41, %44 : vector<8x16xf32>
    %c8 = arith.constant 8 : index
    %46 = memref.load %arg2[%c8] : memref<36xf32, #tpu.memory_space<smem>>
    %47 = vector.broadcast %46 : f32 to vector<8x16xf32>
    %48 = arith.mulf %26, %47 : vector<8x16xf32>
    %49 = arith.addf %45, %48 : vector<8x16xf32>
    %c12 = arith.constant 12 : index
    %50 = memref.load %arg2[%c12] : memref<36xf32, #tpu.memory_space<smem>>
    %51 = vector.broadcast %50 : f32 to vector<8x16xf32>
    %52 = arith.mulf %28, %51 : vector<8x16xf32>
    %53 = arith.addf %49, %52 : vector<8x16xf32>
    %c16 = arith.constant 16 : index
    %54 = memref.load %arg2[%c16] : memref<36xf32, #tpu.memory_space<smem>>
    %55 = vector.broadcast %54 : f32 to vector<8x16xf32>
    %56 = arith.mulf %30, %55 : vector<8x16xf32>
    %57 = arith.addf %53, %56 : vector<8x16xf32>
    %c20 = arith.constant 20 : index
    %58 = memref.load %arg2[%c20] : memref<36xf32, #tpu.memory_space<smem>>
    %59 = vector.broadcast %58 : f32 to vector<8x16xf32>
    %60 = arith.mulf %32, %59 : vector<8x16xf32>
    %61 = arith.addf %57, %60 : vector<8x16xf32>
    %c24 = arith.constant 24 : index
    %62 = memref.load %arg2[%c24] : memref<36xf32, #tpu.memory_space<smem>>
    %63 = vector.broadcast %62 : f32 to vector<8x16xf32>
    %64 = arith.mulf %34, %63 : vector<8x16xf32>
    %65 = arith.addf %61, %64 : vector<8x16xf32>
    %c28 = arith.constant 28 : index
    %66 = memref.load %arg2[%c28] : memref<36xf32, #tpu.memory_space<smem>>
    %67 = vector.broadcast %66 : f32 to vector<8x16xf32>
    %68 = arith.mulf %36, %67 : vector<8x16xf32>
    %69 = arith.addf %65, %68 : vector<8x16xf32>
    %c32 = arith.constant 32 : index
    %70 = memref.load %arg2[%c32] : memref<36xf32, #tpu.memory_space<smem>>
    %71 = vector.broadcast %70 : f32 to vector<8x16xf32>
    %72 = arith.mulf %38, %71 : vector<8x16xf32>
    %73 = arith.addf %69, %72 : vector<8x16xf32>
    %c0_61 = arith.constant 0 : index
    %74 = memref.load %arg3[%c0_61] : memref<4xf32, #tpu.memory_space<smem>>
    %75 = vector.broadcast %74 : f32 to vector<8x16xf32>
    %76 = arith.addf %73, %75 : vector<8x16xf32>
    %cst_62 = arith.constant 0.000000e+00 : f32
    %77 = vector.broadcast %cst_62 : f32 to vector<8x16xf32>
    %78 = arith.maximumf %76, %77 : vector<8x16xf32>
    %79 = vector.shape_cast %78 : vector<8x16xf32> to vector<8x8x2xf32>
    %cst_63 = arith.constant dense<0xFF800000> : vector<8x8xf32>
    %80 = vector.multi_reduction <maximumf>, %79, %cst_63 [2] : vector<8x8x2xf32> to vector<8x8xf32>
    %c0_64 = arith.constant 0 : index
    %c1_65 = arith.constant 1 : index
    %c1_66 = arith.constant 1 : index
    %81 = vector.load %arg8[%c0_64, %c1_65, %c1_66] : memref<4x10x10xf32, #tpu.memory_space<vmem>>, vector<1x8x8xf32>
    %82 = vector.shape_cast %81 : vector<1x8x8xf32> to vector<8x8xf32>
    %83 = vector.shape_cast %80 : vector<8x8xf32> to vector<1x8x8xf32>
    tpu.vector_store %arg8[%c0_64, %c1_65, %c1_66], %83 {strides = array<i32>} : memref<4x10x10xf32, #tpu.memory_space<vmem>>, vector<1x8x8xf32>,
    %c1_67 = arith.constant 1 : index
    %84 = memref.load %arg2[%c1_67] : memref<36xf32, #tpu.memory_space<smem>>
    %85 = vector.broadcast %84 : f32 to vector<8x16xf32>
    %86 = arith.mulf %22, %85 : vector<8x16xf32>
    %c5 = arith.constant 5 : index
    %87 = memref.load %arg2[%c5] : memref<36xf32, #tpu.memory_space<smem>>
    %88 = vector.broadcast %87 : f32 to vector<8x16xf32>
    %89 = arith.mulf %24, %88 : vector<8x16xf32>
    %90 = arith.addf %86, %89 : vector<8x16xf32>
    %c9_68 = arith.constant 9 : index
    %91 = memref.load %arg2[%c9_68] : memref<36xf32, #tpu.memory_space<smem>>
    %92 = vector.broadcast %91 : f32 to vector<8x16xf32>
    %93 = arith.mulf %26, %92 : vector<8x16xf32>
    %94 = arith.addf %90, %93 : vector<8x16xf32>
    %c13 = arith.constant 13 : index
    %95 = memref.load %arg2[%c13] : memref<36xf32, #tpu.memory_space<smem>>
    %96 = vector.broadcast %95 : f32 to vector<8x16xf32>
    %97 = arith.mulf %28, %96 : vector<8x16xf32>
    %98 = arith.addf %94, %97 : vector<8x16xf32>
    %c17_69 = arith.constant 17 : index
    %99 = memref.load %arg2[%c17_69] : memref<36xf32, #tpu.memory_space<smem>>
    %100 = vector.broadcast %99 : f32 to vector<8x16xf32>
    %101 = arith.mulf %30, %100 : vector<8x16xf32>
    %102 = arith.addf %98, %101 : vector<8x16xf32>
    %c21 = arith.constant 21 : index
    %103 = memref.load %arg2[%c21] : memref<36xf32, #tpu.memory_space<smem>>
    %104 = vector.broadcast %103 : f32 to vector<8x16xf32>
    %105 = arith.mulf %32, %104 : vector<8x16xf32>
    %106 = arith.addf %102, %105 : vector<8x16xf32>
    %c25 = arith.constant 25 : index
    %107 = memref.load %arg2[%c25] : memref<36xf32, #tpu.memory_space<smem>>
    %108 = vector.broadcast %107 : f32 to vector<8x16xf32>
    %109 = arith.mulf %34, %108 : vector<8x16xf32>
    %110 = arith.addf %106, %109 : vector<8x16xf32>
    %c29 = arith.constant 29 : index
    %111 = memref.load %arg2[%c29] : memref<36xf32, #tpu.memory_space<smem>>
    %112 = vector.broadcast %111 : f32 to vector<8x16xf32>
    %113 = arith.mulf %36, %112 : vector<8x16xf32>
    %114 = arith.addf %110, %113 : vector<8x16xf32>
    %c33 = arith.constant 33 : index
    %115 = memref.load %arg2[%c33] : memref<36xf32, #tpu.memory_space<smem>>
    %116 = vector.broadcast %115 : f32 to vector<8x16xf32>
    %117 = arith.mulf %38, %116 : vector<8x16xf32>
    %118 = arith.addf %114, %117 : vector<8x16xf32>
    %c1_70 = arith.constant 1 : index
    %119 = memref.load %arg3[%c1_70] : memref<4xf32, #tpu.memory_space<smem>>
    %120 = vector.broadcast %119 : f32 to vector<8x16xf32>
    %121 = arith.addf %118, %120 : vector<8x16xf32>
    %cst_71 = arith.constant 0.000000e+00 : f32
    %122 = vector.broadcast %cst_71 : f32 to vector<8x16xf32>
    %123 = arith.maximumf %121, %122 : vector<8x16xf32>
    %124 = vector.shape_cast %123 : vector<8x16xf32> to vector<8x8x2xf32>
    %cst_72 = arith.constant dense<0xFF800000> : vector<8x8xf32>
    %125 = vector.multi_reduction <maximumf>, %124, %cst_72 [2] : vector<8x8x2xf32> to vector<8x8xf32>
    %c1_73 = arith.constant 1 : index
    %c1_74 = arith.constant 1 : index
    %c1_75 = arith.constant 1 : index
    %126 = vector.load %arg8[%c1_73, %c1_74, %c1_75] : memref<4x10x10xf32, #tpu.memory_space<vmem>>, vector<1x8x8xf32>
    %127 = vector.shape_cast %126 : vector<1x8x8xf32> to vector<8x8xf32>
    %128 = vector.shape_cast %125 : vector<8x8xf32> to vector<1x8x8xf32>
    tpu.vector_store %arg8[%c1_73, %c1_74, %c1_75], %128 {strides = array<i32>} : memref<4x10x10xf32, #tpu.memory_space<vmem>>, vector<1x8x8xf32>,
    %c2_76 = arith.constant 2 : index
    %129 = memref.load %arg2[%c2_76] : memref<36xf32, #tpu.memory_space<smem>>
    %130 = vector.broadcast %129 : f32 to vector<8x16xf32>
    %131 = arith.mulf %22, %130 : vector<8x16xf32>
    %c6 = arith.constant 6 : index
    %132 = memref.load %arg2[%c6] : memref<36xf32, #tpu.memory_space<smem>>
    %133 = vector.broadcast %132 : f32 to vector<8x16xf32>
    %134 = arith.mulf %24, %133 : vector<8x16xf32>
    %135 = arith.addf %131, %134 : vector<8x16xf32>
    %c10 = arith.constant 10 : index
    %136 = memref.load %arg2[%c10] : memref<36xf32, #tpu.memory_space<smem>>
    %137 = vector.broadcast %136 : f32 to vector<8x16xf32>
    %138 = arith.mulf %26, %137 : vector<8x16xf32>
    %139 = arith.addf %135, %138 : vector<8x16xf32>
    %c14 = arith.constant 14 : index
    %140 = memref.load %arg2[%c14] : memref<36xf32, #tpu.memory_space<smem>>
    %141 = vector.broadcast %140 : f32 to vector<8x16xf32>
    %142 = arith.mulf %28, %141 : vector<8x16xf32>
    %143 = arith.addf %139, %142 : vector<8x16xf32>
    %c18 = arith.constant 18 : index
    %144 = memref.load %arg2[%c18] : memref<36xf32, #tpu.memory_space<smem>>
    %145 = vector.broadcast %144 : f32 to vector<8x16xf32>
    %146 = arith.mulf %30, %145 : vector<8x16xf32>
    %147 = arith.addf %143, %146 : vector<8x16xf32>
    %c22 = arith.constant 22 : index
    %148 = memref.load %arg2[%c22] : memref<36xf32, #tpu.memory_space<smem>>
    %149 = vector.broadcast %148 : f32 to vector<8x16xf32>
    %150 = arith.mulf %32, %149 : vector<8x16xf32>
    %151 = arith.addf %147, %150 : vector<8x16xf32>
    %c26 = arith.constant 26 : index
    %152 = memref.load %arg2[%c26] : memref<36xf32, #tpu.memory_space<smem>>
    %153 = vector.broadcast %152 : f32 to vector<8x16xf32>
    %154 = arith.mulf %34, %153 : vector<8x16xf32>
    %155 = arith.addf %151, %154 : vector<8x16xf32>
    %c30 = arith.constant 30 : index
    %156 = memref.load %arg2[%c30] : memref<36xf32, #tpu.memory_space<smem>>
    %157 = vector.broadcast %156 : f32 to vector<8x16xf32>
    %158 = arith.mulf %36, %157 : vector<8x16xf32>
    %159 = arith.addf %155, %158 : vector<8x16xf32>
    %c34 = arith.constant 34 : index
    %160 = memref.load %arg2[%c34] : memref<36xf32, #tpu.memory_space<smem>>
    %161 = vector.broadcast %160 : f32 to vector<8x16xf32>
    %162 = arith.mulf %38, %161 : vector<8x16xf32>
    %163 = arith.addf %159, %162 : vector<8x16xf32>
    %c2_77 = arith.constant 2 : index
    %164 = memref.load %arg3[%c2_77] : memref<4xf32, #tpu.memory_space<smem>>
    %165 = vector.broadcast %164 : f32 to vector<8x16xf32>
    %166 = arith.addf %163, %165 : vector<8x16xf32>
    %cst_78 = arith.constant 0.000000e+00 : f32
    %167 = vector.broadcast %cst_78 : f32 to vector<8x16xf32>
    %168 = arith.maximumf %166, %167 : vector<8x16xf32>
    %169 = vector.shape_cast %168 : vector<8x16xf32> to vector<8x8x2xf32>
    %cst_79 = arith.constant dense<0xFF800000> : vector<8x8xf32>
    %170 = vector.multi_reduction <maximumf>, %169, %cst_79 [2] : vector<8x8x2xf32> to vector<8x8xf32>
    %c2_80 = arith.constant 2 : index
    %c1_81 = arith.constant 1 : index
    %c1_82 = arith.constant 1 : index
    %171 = vector.load %arg8[%c2_80, %c1_81, %c1_82] : memref<4x10x10xf32, #tpu.memory_space<vmem>>, vector<1x8x8xf32>
    %172 = vector.shape_cast %171 : vector<1x8x8xf32> to vector<8x8xf32>
    %173 = vector.shape_cast %170 : vector<8x8xf32> to vector<1x8x8xf32>
    tpu.vector_store %arg8[%c2_80, %c1_81, %c1_82], %173 {strides = array<i32>} : memref<4x10x10xf32, #tpu.memory_space<vmem>>, vector<1x8x8xf32>,
    %c3 = arith.constant 3 : index
    %174 = memref.load %arg2[%c3] : memref<36xf32, #tpu.memory_space<smem>>
    %175 = vector.broadcast %174 : f32 to vector<8x16xf32>
    %176 = arith.mulf %22, %175 : vector<8x16xf32>
    %c7 = arith.constant 7 : index
    %177 = memref.load %arg2[%c7] : memref<36xf32, #tpu.memory_space<smem>>
    %178 = vector.broadcast %177 : f32 to vector<8x16xf32>
    %179 = arith.mulf %24, %178 : vector<8x16xf32>
    %180 = arith.addf %176, %179 : vector<8x16xf32>
    %c11 = arith.constant 11 : index
    %181 = memref.load %arg2[%c11] : memref<36xf32, #tpu.memory_space<smem>>
    %182 = vector.broadcast %181 : f32 to vector<8x16xf32>
    %183 = arith.mulf %26, %182 : vector<8x16xf32>
    %184 = arith.addf %180, %183 : vector<8x16xf32>
    %c15 = arith.constant 15 : index
    %185 = memref.load %arg2[%c15] : memref<36xf32, #tpu.memory_space<smem>>
    %186 = vector.broadcast %185 : f32 to vector<8x16xf32>
    %187 = arith.mulf %28, %186 : vector<8x16xf32>
    %188 = arith.addf %184, %187 : vector<8x16xf32>
    %c19 = arith.constant 19 : index
    %189 = memref.load %arg2[%c19] : memref<36xf32, #tpu.memory_space<smem>>
    %190 = vector.broadcast %189 : f32 to vector<8x16xf32>
    %191 = arith.mulf %30, %190 : vector<8x16xf32>
    %192 = arith.addf %188, %191 : vector<8x16xf32>
    %c23 = arith.constant 23 : index
    %193 = memref.load %arg2[%c23] : memref<36xf32, #tpu.memory_space<smem>>
    %194 = vector.broadcast %193 : f32 to vector<8x16xf32>
    %195 = arith.mulf %32, %194 : vector<8x16xf32>
    %196 = arith.addf %192, %195 : vector<8x16xf32>
    %c27 = arith.constant 27 : index
    %197 = memref.load %arg2[%c27] : memref<36xf32, #tpu.memory_space<smem>>
    %198 = vector.broadcast %197 : f32 to vector<8x16xf32>
    %199 = arith.mulf %34, %198 : vector<8x16xf32>
    %200 = arith.addf %196, %199 : vector<8x16xf32>
    %c31 = arith.constant 31 : index
    %201 = memref.load %arg2[%c31] : memref<36xf32, #tpu.memory_space<smem>>
    %202 = vector.broadcast %201 : f32 to vector<8x16xf32>
    %203 = arith.mulf %36, %202 : vector<8x16xf32>
    %204 = arith.addf %200, %203 : vector<8x16xf32>
    %c35 = arith.constant 35 : index
    %205 = memref.load %arg2[%c35] : memref<36xf32, #tpu.memory_space<smem>>
    %206 = vector.broadcast %205 : f32 to vector<8x16xf32>
    %207 = arith.mulf %38, %206 : vector<8x16xf32>
    %208 = arith.addf %204, %207 : vector<8x16xf32>
    %c3_83 = arith.constant 3 : index
    %209 = memref.load %arg3[%c3_83] : memref<4xf32, #tpu.memory_space<smem>>
    %210 = vector.broadcast %209 : f32 to vector<8x16xf32>
    %211 = arith.addf %208, %210 : vector<8x16xf32>
    %cst_84 = arith.constant 0.000000e+00 : f32
    %212 = vector.broadcast %cst_84 : f32 to vector<8x16xf32>
    %213 = arith.maximumf %211, %212 : vector<8x16xf32>
    %214 = vector.shape_cast %213 : vector<8x16xf32> to vector<8x8x2xf32>
    %cst_85 = arith.constant dense<0xFF800000> : vector<8x8xf32>
    %215 = vector.multi_reduction <maximumf>, %214, %cst_85 [2] : vector<8x8x2xf32> to vector<8x8xf32>
    %c3_86 = arith.constant 3 : index
    %c1_87 = arith.constant 1 : index
    %c1_88 = arith.constant 1 : index
    %216 = vector.load %arg8[%c3_86, %c1_87, %c1_88] : memref<4x10x10xf32, #tpu.memory_space<vmem>>, vector<1x8x8xf32>
    %217 = vector.shape_cast %216 : vector<1x8x8xf32> to vector<8x8xf32>
    %218 = vector.shape_cast %215 : vector<8x8xf32> to vector<1x8x8xf32>
    tpu.vector_store %arg8[%c3_86, %c1_87, %c1_88], %218 {strides = array<i32>} : memref<4x10x10xf32, #tpu.memory_space<vmem>>, vector<1x8x8xf32>,
    %c0_89 = arith.constant 0 : index
    %c0_90 = arith.constant 0 : index
    %c0_91 = arith.constant 0 : index
    %219 = vector.load %arg8[%c0_89, %c0_90, %c0_91] : memref<4x10x10xf32, #tpu.memory_space<vmem>>, vector<4x8x8xf32>
    %220 = vector.shape_cast %219 : vector<4x8x8xf32> to vector<4x64xf32>
    %c0_92 = arith.constant 0 : index
    %c0_93 = arith.constant 0 : index
    %c1_94 = arith.constant 1 : index
    %221 = vector.load %arg8[%c0_92, %c0_93, %c1_94] : memref<4x10x10xf32, #tpu.memory_space<vmem>>, vector<4x8x8xf32>
    %222 = vector.shape_cast %221 : vector<4x8x8xf32> to vector<4x64xf32>
    %c0_95 = arith.constant 0 : index
    %c0_96 = arith.constant 0 : index
    %c2_97 = arith.constant 2 : index
    %223 = vector.load %arg8[%c0_95, %c0_96, %c2_97] : memref<4x10x10xf32, #tpu.memory_space<vmem>>, vector<4x8x8xf32>
    %224 = vector.shape_cast %223 : vector<4x8x8xf32> to vector<4x64xf32>
    %c0_98 = arith.constant 0 : index
    %c1_99 = arith.constant 1 : index
    %c0_100 = arith.constant 0 : index
    %225 = vector.load %arg8[%c0_98, %c1_99, %c0_100] : memref<4x10x10xf32, #tpu.memory_space<vmem>>, vector<4x8x8xf32>
    %226 = vector.shape_cast %225 : vector<4x8x8xf32> to vector<4x64xf32>
    %c0_101 = arith.constant 0 : index
    %c1_102 = arith.constant 1 : index
    %c1_103 = arith.constant 1 : index
    %227 = vector.load %arg8[%c0_101, %c1_102, %c1_103] : memref<4x10x10xf32, #tpu.memory_space<vmem>>, vector<4x8x8xf32>
    %228 = vector.shape_cast %227 : vector<4x8x8xf32> to vector<4x64xf32>
    %c0_104 = arith.constant 0 : index
    %c1_105 = arith.constant 1 : index
    %c2_106 = arith.constant 2 : index
    %229 = vector.load %arg8[%c0_104, %c1_105, %c2_106] : memref<4x10x10xf32, #tpu.memory_space<vmem>>, vector<4x8x8xf32>
    %230 = vector.shape_cast %229 : vector<4x8x8xf32> to vector<4x64xf32>
    %c0_107 = arith.constant 0 : index
    %c2_108 = arith.constant 2 : index
    %c0_109 = arith.constant 0 : index
    %231 = vector.load %arg8[%c0_107, %c2_108, %c0_109] : memref<4x10x10xf32, #tpu.memory_space<vmem>>, vector<4x8x8xf32>
    %232 = vector.shape_cast %231 : vector<4x8x8xf32> to vector<4x64xf32>
    %c0_110 = arith.constant 0 : index
    %c2_111 = arith.constant 2 : index
    %c1_112 = arith.constant 1 : index
    %233 = vector.load %arg8[%c0_110, %c2_111, %c1_112] : memref<4x10x10xf32, #tpu.memory_space<vmem>>, vector<4x8x8xf32>
    %234 = vector.shape_cast %233 : vector<4x8x8xf32> to vector<4x64xf32>
    %c0_113 = arith.constant 0 : index
    %c2_114 = arith.constant 2 : index
    %c2_115 = arith.constant 2 : index
    %235 = vector.load %arg8[%c0_113, %c2_114, %c2_115] : memref<4x10x10xf32, #tpu.memory_space<vmem>>, vector<4x8x8xf32>
    %236 = vector.shape_cast %235 : vector<4x8x8xf32> to vector<4x64xf32>
    %237 = tpu.concatenate %220, %222, %224, %226, %228, %230, %232, %234, %236 in 0 : vector<4x64xf32>, vector<4x64xf32>, vector<4x64xf32>, vector<4x64xf32>, vector<4x64xf32>, vector<4x64xf32>, vector<4x64xf32>, vector<4x64xf32>, vector<4x64xf32> -> vector<36x64xf32>
    %c0_116 = arith.constant 0 : index
    %c0_117 = arith.constant 0 : index
    %238 = vector.load %arg4[%c0_116, %c0_117] : memref<8x36xf32, #tpu.memory_space<vmem>>, vector<8x36xf32>
    %cst_118 = arith.constant dense<0.000000e+00> : vector<8x64xf32>
    %239 = tpu.matmul %238, %237, %cst_118 {dimension_numbers = #tpu.dot_dimension_numbers<[1], [0], [0], [1], [0, 0, 1, 1], [], []>} : vector<8x36xf32>, vector<36x64xf32>, vector<8x64xf32> -> vector<8x64xf32>
    %c0_119 = arith.constant 0 : index
    %c0_120 = arith.constant 0 : index
    %240 = vector.load %arg5[%c0_119, %c0_120] : memref<8x64xf32, #tpu.memory_space<vmem>>, vector<8x64xf32>
    %241 = arith.addf %239, %240 : vector<8x64xf32>
    %cst_121 = arith.constant 0.000000e+00 : f32
    %242 = vector.broadcast %cst_121 : f32 to vector<8x64xf32>
    %243 = arith.maximumf %241, %242 : vector<8x64xf32>
    %244 = vector.shape_cast %243 : vector<8x64xf32> to vector<8x32x2xf32>
    %cst_122 = arith.constant dense<0xFF800000> : vector<8x32xf32>
    %245 = vector.multi_reduction <maximumf>, %244, %cst_122 [2] : vector<8x32x2xf32> to vector<8x32xf32>
    %246 = vector.shape_cast %245 : vector<8x32xf32> to vector<1x1x256xf32>
    %c0_123 = arith.constant 0 : index
    %c0_124 = arith.constant 0 : index
    %c0_125 = arith.constant 0 : index
    %247 = vector.load %arg6[%c0_123, %c0_124, %c0_125] : memref<1x1x256xf32, #tpu.memory_space<vmem>>, vector<1x1x256xf32>
    tpu.vector_store %arg6[%c0_123, %c0_124, %c0_125], %246 {strides = array<i32>} : memref<1x1x256xf32, #tpu.memory_space<vmem>>, vector<1x1x256xf32>,
    return
  }
  func.func @transform_0(%arg0: i32) -> (i32, i32, i32, i32) {
    %c0_i32 = arith.constant 0 : i32
    %c0_i32_0 = arith.constant 0 : i32
    %c0_i32_1 = arith.constant 0 : i32
    %c0_i32_2 = arith.constant 0 : i32
    return %arg0, %c0_i32, %c0_i32_0, %c0_i32_1 : i32, i32, i32, i32
  }
  func.func @transform_1(%arg0: i32) -> i32 {
    %c0_i32 = arith.constant 0 : i32
    %c0_i32_0 = arith.constant 0 : i32
    return %c0_i32 : i32
  }
  func.func @transform_2(%arg0: i32) -> i32 {
    %c0_i32 = arith.constant 0 : i32
    %c0_i32_0 = arith.constant 0 : i32
    return %c0_i32 : i32
  }
  func.func @transform_3(%arg0: i32) -> (i32, i32) {
    %c0_i32 = arith.constant 0 : i32
    %c0_i32_0 = arith.constant 0 : i32
    %c0_i32_1 = arith.constant 0 : i32
    return %c0_i32, %c0_i32_0 : i32, i32
  }
  func.func @transform_4(%arg0: i32) -> (i32, i32) {
    %c0_i32 = arith.constant 0 : i32
    %c0_i32_0 = arith.constant 0 : i32
    %c0_i32_1 = arith.constant 0 : i32
    return %c0_i32, %c0_i32_0 : i32, i32
  }
  func.func @transform_5(%arg0: i32) -> (i32, i32, i32) {
    %c0_i32 = arith.constant 0 : i32
    %c0_i32_0 = arith.constant 0 : i32
    %c0_i32_1 = arith.constant 0 : i32
    return %arg0, %c0_i32, %c0_i32_0 : i32, i32, i32
  }
}

</mosaic_0001>

<bundles_post_ra>
// kernel: net_forward.1
= control target key start
LH: loop header
LB: loop body
LE: loop exit
PB: predicated region body
PF: predicated region fallthrough
CT: control target
= control target key end

     0   :  { %10 = vsyncpa [#allocation5], 0  ;;  %s8945_s0 = inlined_call_operand.vmem [shape: f32[2,1,10,16], index: 0, kind: input, shape index: {}]   ;;  %s8946_s1 = inlined_call_operand.vmem [shape: f32[36], index: 1, kind: input, shape index: {}]   ;;  %s8947_s2 = inlined_call_operand.vmem [shape: f32[4], index: 2, kind: input, shape index: {}]   ;;  %s8948_s3 = inlined_call_operand.vmem [shape: f32[8,36], index: 3, kind: input, shape index: {}]   ;;  %s8949_s4 = inlined_call_operand.vmem [shape: f32[8,64], index: 4, kind: input, shape index: {}]   ;;  %s8950_s5 = inlined_call_operand.vmem [shape: f32[2,1,256], index: 5, kind: output, shape index: {}]  }
   0x1   :  { %11 = vsyncpa [#allocation7], 0  ;;  %s6777_s18 = smov 0  }
   0x2 LB: > { %s6783_s19 = sadd.s32 4294967295, %s6696_s18   ;;  %p6356_p0 = scmp.ge.s32.totalorder %s6696_s18, 1  ;;  %s6696_s18 = sphi %s6777_s18, %s17_s18  }
   0x3   : > { %p158_p1 = scmp.lt.s32.totalorder %s6696_s18, 3  ;;  %s171_s22 = sshll.u32 %s8946_s1, 4  ;;  %s172_s22 = int_to_ptr.vmem [resolvable:$true] %s171_s22 }
   0x4   : > { %p8951_p3 = scmp.eq.s32.totalorder %s6783_s19, 0  ;;  %s182_s26 = sshll.u32 %s8947_s2, 4  ;;  %s183_s26 = int_to_ptr.vmem [resolvable:$true] %s182_s26 }
   0x5   : > { %p6790_p2 = pnand %p6356_p0, %p158_p1  ;;  %s6652_s28 = scalar_lea.vmem %s172_s22, 16 }
   0x6   : > { %p6653_p6 = scmp.ne.s32.totalorder %s172_s22, %s6652_s28  ;;  %p6660_p10 = scmp.lt.s32.totalorder %s172_s22, %s172_s22 }
   0x7   : > { %s8953_s23 = scalar_select %p6790_p2, 1, 0 }
   0x8   : > { %p6442_p4 = pneg %p6790_p2  ;;  %p6661_p11 = scmp.lt.s32.totalorder %s6652_s28, %s6652_s28 }
   0xa   : > { %p6802_p5 = pnand %p8951_p3, %p6442_p4  ;;  %p6662_p12 = por %p6661_p11, %p6660_p10 }
   0xc   : > { %p6654_p7 = pneg %p6802_p5 }
   0xe   : > { %p6655_p8 = pnand %p6654_p7, %p6653_p6 }
  0x10   : > { %p6656_p9 = pneg %p6655_p8 }
  0x12   : > { %p6663_p13 = pnand %p6662_p12, %p6656_p9 }
  0x14   : > { %6666 = shalt.err (!%p6663_p13)
}
  0x15   : > { %s6698_s29 = smov [#allocation4]   ;;  %s6667_s30 = scalar_lea.vmem %s183_s26, 16 }
  0x16   : > { %6445 = dma.vmem_to_smem (!%p6802_p5), %s172_s22, 16, %s6698_s29, [#allocation5]  }
  0x17   : > { %p6668_p0 = scmp.ne.s32.totalorder %s183_s26, %s6667_s30  ;;  %p6675_p3 = scmp.lt.s32.totalorder %s183_s26, %s183_s26 }
  0x18   : > { %p6676_p2 = scmp.lt.s32.totalorder %s6667_s30, %s6667_s30 }
  0x19   : > { %p6670_p1 = pnand %p6668_p0, %p6654_p7 }
  0x1a   : > { %p6677_p6 = por %p6676_p2, %p6675_p3 }
  0x1b   : > { %p6671_p4 = pneg %p6670_p1 }
  0x1d   : > { %p6678_p8 = pnand %p6677_p6, %p6671_p4 }
  0x1f   : > { %6681 = shalt.err (!%p6678_p8)
}
  0x20   : > { %s6699_s6 = smov [#allocation6]   ;;  %p8955_p9 = scmp.ne.s32.totalorder %s8953_s23, 0 }
  0x21   : > { %6448 = dma.vmem_to_smem (!%p6802_p5), %s183_s26, 16, %s6699_s6, [#allocation7]  }
  0x22   : > { %209 = sbr.rel (%p8955_p9) target bundleno = 1878 (0x756), region = 40  ;;  %p8956_p10 = scmp.eq.s32.totalorder (!%p8955_p9), %s6783_s19, 0 }
  0x29   : > { %6687 = dma.done.wait (%p8956_p10), [#allocation5], 16   ;;  %p8957_p11 = pmov %p8956_p10 }
  0x2a   : > { %p8958_p7 = pmov %p8956_p10 }
  0x2b   : > { %6689 = vsyncadd (%p8957_p11), [#allocation5], 4294967280 }
  0x2c   : > { %6691 = dma.done.wait (%p8958_p7), [#allocation7], 16   ;;  %p8959_p2 = pmov %p8958_p7 }
  0x2e   : > { %6693 = vsyncadd (%p8959_p2), [#allocation7], 4294967280 }
  0x2f   : > { %219 = sfence }
  0x30   : > { %p241_p3 = scmp.lt.s32.totalorder %s6783_s19, 1  ;;  %vm250_vm0 = vcmask 139264   ;;  %vm253_vm1 = vcmask 7168   ;;  %vm255_vm2 = vcmask 1024   ;;  %v6700_v0 = vmov 0.0   ;;  %s6701_s11 = smov 1  }
  0x31   : > { %251 = vst.msk [vmem:[#allocation2] sm:$0x1] %vm250_vm0, %v6700_v0  ;;  %252 = vst.msk [vmem:[#allocation2 + $0x9] sm:$0x1] %vm250_vm0, %v6700_v0  ;;  %vm257_vm3 = vcmask 146568   ;;  %vm259_vm4 = vcmask 140424  }
  0x32   : > { %s8961_s19 = smov (!%p241_p3, %s6783_s19), 1  ;;  %254 = vst.msk [vmem:[#allocation2] sm:$0xff] %vm253_vm1, %v6700_v0  ;;  %vm293_vm5 = vcmask 138248   ;;  %s6375_s12 = sld [smem:[#allocation4 + $0x5]]  ;;  %vm519_vm6 = vcmask 15360   ;;  %vm261_vm7 = vcmask 73728  }
  0x33   : > { %256 = vst.msk [vmem:[#allocation2 + $0x8] sm:$0x3] %vm255_vm2, %v6700_v0  ;;  %s6408_s7 = sshll.u32 %s8961_s19, 4  ;;  %s6366_s13 = sld [smem:[#allocation4 + $0x4]]  ;;  %vm278_vm8 = vcmask 80968   ;;  %vm280_vm9 = vcmask 74824  }
  0x34   : > { %258 = vst.msk [vmem:[#allocation2] sm:$0xff] %vm257_vm3, %v6700_v0  ;;  %s245_s10 = scalar_lea.vmem %s8945_s0, %s6408_s7  ;;  %s6385_s14 = sld [smem:[#allocation4 + $0x6]]  ;;  %vm587_vm10 = vcmask 1041409   ;;  %vm589_vm11 = vcmask 1042434   ;;  %vm591_vm12 = vcmask 1043459   ;;  %vm593_vm13 = vcmask 1044484  }
  0x35   : > { %260 = vst.msk [vmem:[#allocation2 + $0x8] sm:$0x3] %vm259_vm4, %v6700_v0  ;;  %v288_v1 = vld [vmem:[%s245_s10] sm:$0xff]  ;;  %s6395_s15 = sld [smem:[#allocation4 + $0x7]]  ;;  %s6367_s16 = sld [smem:[#allocation4 + $0x8]]  ;;  %vm595_vm14 = vcmask 1045509  }
  0x36   : > { %290 = vrot.lane.b32.xlu0 %v288_v1, %s6701_s11  ;;  %s6376_s17 = sld [smem:[#allocation4 + $0x9]]  ;;  %s6386_s20 = sld [smem:[#allocation4 + $0xa]]  ;;  %262 = vst.msk [vmem:[#allocation3] sm:$0x1] %vm261_vm7, %v6700_v0  ;;  %266 = vst.msk [vmem:[#allocation3 + $0x9] sm:$0x1] %vm261_vm7, %v6700_v0 }
  0x37   : > { %s6396_s21 = sld [smem:[#allocation4 + $0xb]]  ;;  %s6702_s22 = smov 127   ;;  %263 = vst.msk [vmem:[#allocation3 + $0x10] sm:$0x1] %vm261_vm7, %v6700_v0  ;;  %264 = vst.msk [vmem:[#allocation3 + $0x20] sm:$0x1] %vm261_vm7, %v6700_v0 }
  0x38   : > { %v608_v3 = vstv %s6375_s12  ;;  %s6369_s23 = sld [smem:[#allocation4 + $0x10]]  ;;  %s6378_s24 = sld [smem:[#allocation4 + $0x11]]  ;;  %265 = vst.msk [vmem:[#allocation3 + $0x30] sm:$0x1] %vm261_vm7, %v6700_v0  ;;  %267 = vst.msk [vmem:[#allocation3 + $0x19] sm:$0x1] %vm261_vm7, %v6700_v0 }
  0x39   : > { %v302_v4 = vstv %s6366_s13  ;;  %s6388_s25 = sld [smem:[#allocation4 + $0x12]]  ;;  %s6398_s26 = sld [smem:[#allocation4 + $0x13]]  ;;  %268 = vst.msk [vmem:[#allocation3 + $0x29] sm:$0x1] %vm261_vm7, %v6700_v0  ;;  %269 = vst.msk [vmem:[#allocation3 + $0x39] sm:$0x1] %vm261_vm7, %v6700_v0 }
  0x3a   : > { %v903_v8 = vstv %s6385_s14  ;;  %s6703_s27 = smov 126   ;;  %s6370_s28 = sld [smem:[#allocation4 + $0x14]]  ;;  %270 = vst.msk [vmem:[#allocation3] sm:$0xff] %vm253_vm1, %v6700_v0  ;;  %272 = vst.msk [vmem:[#allocation3 + $0x10] sm:$0xff] %vm253_vm1, %v6700_v0  ;;  %vm597_vm15 = vcmask 1046534   ;;  %vm599_vm0 = vcmask 1047559  }
  0x3b   : > { %v1198_v9 = vstv %s6395_s15  ;;  %v310_v12 = vstv %s6367_s16  ;;  %s6379_s29 = sld [smem:[#allocation4 + $0x15]]  ;;  %s6389_s30 = sld [smem:[#allocation4 + $0x16]]  ;;  %271 = vst.msk [vmem:[#allocation3 + $0x8] sm:$0x3] %vm255_vm2, %v6700_v0  ;;  %273 = vst.msk [vmem:[#allocation3 + $0x18] sm:$0x3] %vm255_vm2, %v6700_v0 }
  0x3c   : > { %v616_v13 = vstv %s6376_s17  ;;  %v911_v16 = vstv %s6386_s20  ;;  %s6399_s6 = sld [smem:[#allocation4 + $0x17]]  ;;  %s6372_s7 = sld [smem:[#allocation4 + $0x1c]]  ;;  %274 = vst.msk [vmem:[#allocation3 + $0x20] sm:$0xff] %vm253_vm1, %v6700_v0  ;;  %276 = vst.msk [vmem:[#allocation3 + $0x30] sm:$0xff] %vm253_vm1, %v6700_v0  ;;  %vm602_vm1 = vcmask 72712   ;;  %vm1589_vm3 = vcmask 64512  }
  0x3d   : > { %v1206_v17 = vstv %s6396_s21  ;;  %s6381_s8 = sld [smem:[#allocation4 + $0x1d]]  ;;  %s6391_s9 = sld [smem:[#allocation4 + $0x1e]]  ;;  %275 = vst.msk [vmem:[#allocation3 + $0x28] sm:$0x3] %vm255_vm2, %v6700_v0  ;;  %277 = vst.msk [vmem:[#allocation3 + $0x38] sm:$0x3] %vm255_vm2, %v6700_v0 }
  0x3e   : > { %v322_v21 = vstv %s6369_s23  ;;  %v628_v22 = vstv %s6378_s24  ;;  %s6401_s10 = sld [smem:[#allocation4 + $0x1f]]  ;;  %s6373_s11 = sld [smem:[#allocation4 + $0x20]]  ;;  %279 = vst.msk [vmem:[#allocation3] sm:$0xff] %vm278_vm8, %v6700_v0  ;;  %282 = vst.msk [vmem:[#allocation3 + $0x10] sm:$0xff] %vm278_vm8, %v6700_v0  ;;  %vm6720_vm2 = vmmov 0   ;;  %vm1591_vm4 = vcmask 130048  }
  0x3f   : > { %v923_v25 = vstv %s6388_s25  ;;  %v1218_v26 = vstv %s6398_s26  ;;  %s6382_s12 = sld [smem:[#allocation4 + $0x21]]  ;;  %s6392_s13 = sld [smem:[#allocation4 + $0x22]]  ;;  %281 = vst.msk [vmem:[#allocation3 + $0x8] sm:$0x3] %vm280_vm9, %v6700_v0  ;;  %283 = vst.msk [vmem:[#allocation3 + $0x18] sm:$0x3] %vm280_vm9, %v6700_v0  ;;  %6425 = vmatprep.mubr.msk.f32.mxu0 %vm6720_vm2, %v6700_v0 }
  0x40   : > { %v330_v29 = vstv %s6370_s28  ;;  %s6402_s14 = sld [smem:[#allocation4 + $0x23]]  ;;  %s6374_s15 = sld [smem:[#allocation4 + $0x1]]  ;;  %284 = vst.msk [vmem:[#allocation3 + $0x20] sm:$0xff] %vm278_vm8, %v6700_v0  ;;  %286 = vst.msk [vmem:[#allocation3 + $0x30] sm:$0xff] %vm278_vm8, %v6700_v0  ;;  %vm1595_vm7 = vcmask 261120   ;;  %vm1597_vm8 = vcmask 326656  }
  0x41   : > { %v636_v30 = vstv %s6379_s29  ;;  %v931_v33 = vstv %s6389_s30  ;;  %s298_s16 = sld [smem:[#allocation4]]  ;;  %s6384_s17 = sld [smem:[#allocation4 + $0x2]]  ;;  %285 = vst.msk [vmem:[#allocation3 + $0x28] sm:$0x3] %vm280_vm9, %v6700_v0  ;;  %287 = vst.msk [vmem:[#allocation3 + $0x38] sm:$0x3] %vm280_vm9, %v6700_v0 }
  0x42   : > { %v1226_v34 = vstv %s6399_s6  ;;  %v342_v38 = vstv %s6372_s7  ;;  %s6394_s20 = sld [smem:[#allocation4 + $0x3]]  ;;  %s6368_s21 = sld [smem:[#allocation4 + $0xc]]  ;;  %vm1599_vm9 = vcmask 392192   ;;  %vm6121_vm2 = vcmask 523712  }
  0x43   : > { %v648_v39 = vstv %s6381_s8  ;;  %v943_v42 = vstv %s6391_s9  ;;  %s6377_s23 = sld [smem:[#allocation4 + $0xd]]  ;;  %s6387_s24 = sld [smem:[#allocation4 + $0xe]] }
  0x44   : > { %v1238_v43 = vstv %s6401_s10  ;;  %v350_v46 = vstv %s6373_s11  ;;  %s6397_s25 = sld [smem:[#allocation4 + $0xf]]  ;;  %s6371_s26 = sld [smem:[#allocation4 + $0x18]] }
  0x45   : > { %v656_v47 = vstv %s6382_s12  ;;  %v951_v50 = vstv %s6392_s13  ;;  %s6380_s28 = sld [smem:[#allocation4 + $0x19]]  ;;  %s6390_s29 = sld [smem:[#allocation4 + $0x1a]] }
  0x46   : > { %v1246_v51 = vstv %s6402_s14  ;;  %v605_v56 = vstv %s6374_s15  ;;  %s6400_s30 = sld [smem:[#allocation4 + $0x1b]]  ;;  %s357_s6 = sld [smem:[#allocation6]] }
  0x47   : > { %v299_v57 = vstv %s298_s16  ;;  %v900_v62 = vstv %s6384_s17  ;;  %s6383_s7 = sld [smem:[#allocation6 + $0x1]]  ;;  %s6704_s8 = smov 124  }
  0x48   : > { %v1195_v63 = vstv %s6394_s20  ;;  %v318_v1 = vstv %s6368_s21  ;;  %s6705_s9 = smov 120   ;;  %s6706_s10 = smov 122  }
  0x49   : > { %s6707_s11 = smov 116   ;;  %s6708_s12 = smov 118  }
  0x4a   : > { %s6393_s13 = sld [smem:[#allocation6 + $0x2]]  ;;  %s6709_s14 = smov 114  }
  0x4b   : > { %s6403_s15 = sld [smem:[#allocation6 + $0x3]]  ;;  %s6713_s16 = smov 32  }
  0x4c   : > { %s6714_s17 = smov 48   ;;  %s6715_s20 = smov 8  }
  0x4d   : > { %s6716_s21 = smov 24  }
  0xa8   : > { %v291_v2 = vpop.permute.xlu0 %290 }
  0xa9   : > { %294 = vst.msk [vmem:[#allocation2 + $0x1] sm:$0xff] %vm293_vm5, %v291_v2  ;;  %v624_v2 = vstv %s6377_s23  ;;  %s6717_s23 = smov 40   ;;  %vm1593_vm5 = vcmask 195584  }
  0xb0   : > { %v6838_v5 = vld [vmem:[#allocation2] sm:$0xff] }
  0xb1   : > { %v609_v6 = vmul.f32 %v608_v3, %v6838_v5  ;;  %v303_v7 = vmul.f32 %v302_v4, %v6838_v5  ;;  %v904_v10 = vmul.f32 %v903_v8, %v6838_v5  ;;  %v1199_v11 = vmul.f32 %v1198_v9, %v6838_v5  ;;  %v6854_v20 = vld [vmem:[#allocation2 + $0x1] sm:$0xff] }
  0xb2   : > { %v311_v14 = vmul.f32 %v310_v12, %v6838_v5  ;;  %v617_v15 = vmul.f32 %v616_v13, %v6838_v5  ;;  %v912_v18 = vmul.f32 %v911_v16, %v6838_v5  ;;  %v1207_v19 = vmul.f32 %v1206_v17, %v6838_v5  ;;  %v6872_v37 = vld [vmem:[#allocation2 + $0x2] sm:$0xff] }
  0xb3   : > { %611 = vrot.lane.b32.xlu1 %v609_v6, %s6702_s22  ;;  %305 = vrot.lane.b32.xlu0 %v303_v7, %s6702_s22  ;;  %v323_v23 = vmul.f32 %v322_v21, %v6854_v20  ;;  %v629_v24 = vmul.f32 %v628_v22, %v6854_v20  ;;  %v924_v27 = vmul.f32 %v923_v25, %v6854_v20 }
  0xb4   : > { %v1219_v28 = vmul.f32 %v1218_v26, %v6854_v20  ;;  %v331_v31 = vmul.f32 %v330_v29, %v6854_v20  ;;  %v637_v32 = vmul.f32 %v636_v30, %v6854_v20  ;;  %v932_v35 = vmul.f32 %v931_v33, %v6854_v20 }
  0xb5   : > { %v1227_v36 = vmul.f32 %v1226_v34, %v6854_v20  ;;  %v343_v40 = vmul.f32 %v342_v38, %v6872_v37  ;;  %v649_v41 = vmul.f32 %v648_v39, %v6872_v37  ;;  %v944_v44 = vmul.f32 %v943_v42, %v6872_v37 }
  0xb6   : > { %v1239_v45 = vmul.f32 %v1238_v43, %v6872_v37  ;;  %v351_v48 = vmul.f32 %v350_v46, %v6872_v37  ;;  %v657_v49 = vmul.f32 %v656_v47, %v6872_v37  ;;  %v952_v52 = vmul.f32 %v951_v50, %v6872_v37 }
  0xb7   : > { %906 = vrot.lane.b32.xlu1 %v904_v10, %s6702_s22  ;;  %1201 = vrot.lane.b32.xlu0 %v1199_v11, %s6702_s22  ;;  %v1247_v53 = vmul.f32 %v1246_v51, %v6872_v37  ;;  %v606_v60 = vmul.f32 %v605_v56, %v6838_v5  ;;  %v300_v61 = vmul.f32 %v299_v57, %v6838_v5  ;;  %v644_v33 = vstv %s6380_s28  ;;  %s6742_s28 = smov 68  }
  0xb8   : > { %v901_v6 = vmul.f32 %v900_v62, %v6838_v5  ;;  %v1196_v7 = vmul.f32 %v1195_v63, %v6838_v5  ;;  %v319_v12 = vmul.f32 %v318_v1, %v6854_v20  ;;  %v625_v13 = vmul.f32 %v624_v2, %v6854_v20 }
  0xb9   : > { %v939_v42 = vstv %s6390_s29  ;;  %v1234_v43 = vstv %s6400_s30  ;;  %s6721_s30 = smov 112   ;;  %s6743_s29 = smov 70  }
  0xbb   : > { %313 = vrot.lane.b32.xlu1 %v311_v14, %s6703_s27  ;;  %619 = vrot.lane.b32.xlu0 %v617_v15, %s6703_s27  ;;  %v919_v14 = vstv %s6387_s24  ;;  %v1214_v15 = vstv %s6397_s25  ;;  %s6718_s24 = smov 56   ;;  %s6740_s25 = smov 72  }
  0xbc   : > { %v920_v5 = vmul.f32 %v919_v14, %v6854_v20  ;;  %v1215_v25 = vmul.f32 %v1214_v15, %v6854_v20 }
  0xbf   : > { %914 = vrot.lane.b32.xlu1 %v912_v18, %s6703_s27  ;;  %1209 = vrot.lane.b32.xlu0 %v1207_v19, %s6703_s27 }
  0xc3   : > { %325 = vrot.lane.b32.xlu1 %v323_v23, %s6702_s22  ;;  %631 = vrot.lane.b32.xlu0 %v629_v24, %s6702_s22 }
  0xc7   : > { %926 = vrot.lane.b32.xlu1 %v924_v27, %s6702_s22  ;;  %1221 = vrot.lane.b32.xlu0 %v1219_v28, %s6702_s22 }
  0xcb   : > { %333 = vrot.lane.b32.xlu1 %v331_v31, %s6703_s27  ;;  %639 = vrot.lane.b32.xlu0 %v637_v32, %s6703_s27  ;;  %v338_v32 = vstv %s6371_s26  ;;  %s6741_s26 = smov 74  }
  0xcc   : > { %v339_v20 = vmul.f32 %v338_v32, %v6872_v37 }
  0xcf   : > { %934 = vrot.lane.b32.xlu1 %v932_v35, %s6703_s27  ;;  %1229 = vrot.lane.b32.xlu0 %v1227_v36, %s6703_s27 }
  0xd3   : > { %345 = vrot.lane.b32.xlu1 %v343_v40, %s6702_s22  ;;  %651 = vrot.lane.b32.xlu0 %v649_v41, %s6702_s22  ;;  %v645_v41 = vmul.f32 %v644_v33, %v6872_v37  ;;  %v6711_v33 = vmov 1934713408  }
  0xd7   : > { %946 = vrot.lane.b32.xlu1 %v944_v44, %s6702_s22  ;;  %1241 = vrot.lane.b32.xlu0 %v1239_v45, %s6702_s22 }
  0xdb   : > { %353 = vrot.lane.b32.xlu1 %v351_v48, %s6703_s27  ;;  %659 = vrot.lane.b32.xlu0 %v657_v49, %s6703_s27 }
  0xdf   : > { %954 = vrot.lane.b32.xlu1 %v952_v52, %s6703_s27  ;;  %1249 = vrot.lane.b32.xlu0 %v1247_v53, %s6703_s27  ;;  %v940_v52 = vmul.f32 %v939_v42, %v6872_v37  ;;  %v1235_v53 = vmul.f32 %v1234_v43, %v6872_v37 }
 0x125   : > { %v612_v54 = vpop.permute.xlu1 %611  ;;  %v306_v55 = vpop.permute.xlu0 %305 }
 0x126   : > { %v614_v3 = vadd.f32 %v612_v54, %v606_v60  ;;  %v308_v4 = vadd.f32 %v306_v55, %v300_v61  ;;  %v358_v61 = vstv %s357_s6  ;;  %s6722_s6 = smov 108  }
 0x129   : > { %v907_v58 = vpop.permute.xlu1 %906  ;;  %v1202_v59 = vpop.permute.xlu0 %1201 }
 0x12a   : > { %v909_v16 = vadd.f32 %v907_v58, %v901_v6  ;;  %v1204_v17 = vadd.f32 %v1202_v59, %v1196_v7  ;;  %v664_v6 = vstv %s6383_s7  ;;  %s6724_s7 = smov 104  }
 0x12d   : > { %v314_v8 = vpop.permute.xlu1 %313  ;;  %v620_v9 = vpop.permute.xlu0 %619 }
 0x12e   : > { %v316_v10 = vadd.f32 %v314_v8, %v308_v4  ;;  %v622_v11 = vadd.f32 %v620_v9, %v614_v3 }
 0x130   : > { %v320_v18 = vadd.f32 %v319_v12, %v316_v10  ;;  %v626_v19 = vadd.f32 %v625_v13, %v622_v11  ;;  %v959_v12 = vstv %s6393_s13  ;;  %s6730_s13 = smov 92  }
 0x131   : > { %v915_v21 = vpop.permute.xlu1 %914  ;;  %v1210_v22 = vpop.permute.xlu0 %1209 }
 0x132   : > { %v917_v23 = vadd.f32 %v915_v21, %v909_v16  ;;  %v1212_v24 = vadd.f32 %v1210_v22, %v1204_v17 }
 0x134   : > { %v921_v26 = vadd.f32 %v920_v5, %v917_v23  ;;  %v1216_v27 = vadd.f32 %v1215_v25, %v1212_v24  ;;  %v6710_v24 = vmov 1983009808   ;;  %v388_v25 = vlaneseq }
 0x135   : > { %v326_v28 = vpop.permute.xlu1 %325  ;;  %v632_v29 = vpop.permute.xlu0 %631  ;;  %v386_v5 = vunpack.c.l.s4 %v6710_v24 }
 0x136   : > { %v328_v34 = vadd.f32 %v326_v28, %v320_v18  ;;  %v634_v35 = vadd.f32 %v632_v29, %v626_v19  ;;  %v1254_v18 = vstv %s6403_s15  ;;  %v6977_v29 = vshrl.u32 %v388_v25, 7  ;;  %s6732_s15 = smov 88  }
 0x137   : > { %v387_v28 = vunpack.c.0.s8 %v386_v5 }
 0x139   : > { %v927_v30 = vpop.permute.xlu1 %926  ;;  %v1222_v31 = vpop.permute.xlu0 %1221 }
 0x13a   : > { %v929_v44 = vadd.f32 %v927_v30, %v921_v26  ;;  %v1224_v45 = vadd.f32 %v1222_v31, %v1216_v27 }
 0x13d   : > { %v334_v36 = vpop.permute.xlu1 %333  ;;  %v640_v38 = vpop.permute.xlu0 %639 }
 0x13e   : > { %v336_v39 = vadd.f32 %v334_v36, %v328_v34  ;;  %v642_v40 = vadd.f32 %v640_v38, %v634_v35  ;;  %v450_v34 = vunpack.c.l.s4 %v6711_v33  ;;  %v6986_v35 = vsub.s32 %v387_v28, %v6977_v29 }
 0x140   : > { %v340_v46 = vadd.f32 %v339_v20, %v336_v39  ;;  %v646_v47 = vadd.f32 %v645_v41, %v642_v40  ;;  %v451_v41 = vunpack.c.0.s8 %v450_v34 }
 0x141   : > { %v935_v48 = vpop.permute.xlu1 %934  ;;  %v1230_v49 = vpop.permute.xlu0 %1229 }
 0x142   : > { %v937_v50 = vadd.f32 %v935_v48, %v929_v44  ;;  %v1232_v51 = vadd.f32 %v1230_v49, %v1224_v45  ;;  %v7017_v49 = vsub.s32 %v451_v41, %v6977_v29 }
 0x144   : > { %v941_v54 = vadd.f32 %v940_v52, %v937_v50  ;;  %v1236_v55 = vadd.f32 %v1235_v53, %v1232_v51 }
 0x145   : > { %v346_v56 = vpop.permute.xlu1 %345  ;;  %v652_v57 = vpop.permute.xlu0 %651 }
 0x146   : > { %v348_v59 = vadd.f32 %v346_v56, %v340_v46  ;;  %v654_v4 = vadd.f32 %v652_v57, %v646_v47 }
 0x149   : > { %v947_v58 = vpop.permute.xlu1 %946  ;;  %v1242_v60 = vpop.permute.xlu0 %1241 }
 0x14a   : > { %v949_v10 = vadd.f32 %v947_v58, %v941_v54  ;;  %v1244_v16 = vadd.f32 %v1242_v60, %v1236_v55 }
 0x14d   : > { %v354_v62 = vpop.permute.xlu1 %353  ;;  %v660_v3 = vpop.permute.xlu0 %659 }
 0x14e   : > { %v356_v63 = vadd.f32 %v354_v62, %v348_v59  ;;  %v662_v37 = vadd.f32 %v660_v3, %v654_v4 }
 0x150   : > { %v359_v1 = vadd.f32 %v358_v61, %v356_v63  ;;  %v665_v7 = vadd.f32 %v664_v6, %v662_v37 }
 0x151   : > { %v955_v9 = vpop.permute.xlu1 %954  ;;  %v1250_v15 = vpop.permute.xlu0 %1249 }
 0x152   : > { %v6904_v2 = vmax.f32 %v359_v1, 0.0  ;;  %v6918_v8 = vmax.f32 %v665_v7, 0.0  ;;  %v957_v11 = vadd.f32 %v955_v9, %v949_v10  ;;  %v1252_v17 = vadd.f32 %v1250_v15, %v1244_v16 }
 0x154   : > { %365 = vrot.lane.b32.xlu0 %v6904_v2, %s6704_s8  ;;  %362 = vrot.lane.b32.xlu1 %v6904_v2, %s6703_s27  ;;  %v960_v13 = vadd.f32 %v959_v12, %v957_v11  ;;  %v1255_v19 = vadd.f32 %v1254_v18, %v1252_v17 }
 0x156   : > { %v6936_v14 = vmax.f32 %v960_v13, 0.0  ;;  %v6950_v21 = vmax.f32 %v1255_v19, 0.0 }
 0x158   : > { %371 = vrot.lane.b32.xlu0 %v6904_v2, %s6705_s9  ;;  %368 = vrot.lane.b32.xlu1 %v6904_v2, %s6706_s10 }
 0x15c   : > { %377 = vrot.lane.b32.xlu0 %v6904_v2, %s6707_s11  ;;  %374 = vrot.lane.b32.xlu1 %v6904_v2, %s6708_s12 }
 0x160   : > { %668 = vrot.lane.b32.xlu0 %v6918_v8, %s6703_s27  ;;  %380 = vrot.lane.b32.xlu1 %v6904_v2, %s6709_s14 }
 0x164   : > { %674 = vrot.lane.b32.xlu0 %v6918_v8, %s6706_s10  ;;  %671 = vrot.lane.b32.xlu1 %v6918_v8, %s6704_s8 }
 0x168   : > { %680 = vrot.lane.b32.xlu0 %v6918_v8, %s6708_s12  ;;  %677 = vrot.lane.b32.xlu1 %v6918_v8, %s6705_s9 }
 0x16c   : > { %686 = vrot.lane.b32.xlu0 %v6918_v8, %s6709_s14  ;;  %683 = vrot.lane.b32.xlu1 %v6918_v8, %s6707_s11 }
 0x170   : > { %966 = vrot.lane.b32.xlu0 %v6936_v14, %s6704_s8  ;;  %963 = vrot.lane.b32.xlu1 %v6936_v14, %s6703_s27 }
 0x174   : > { %972 = vrot.lane.b32.xlu0 %v6936_v14, %s6705_s9  ;;  %969 = vrot.lane.b32.xlu1 %v6936_v14, %s6706_s10 }
 0x178   : > { %978 = vrot.lane.b32.xlu0 %v6936_v14, %s6707_s11  ;;  %975 = vrot.lane.b32.xlu1 %v6936_v14, %s6708_s12 }
 0x17c   : > { %1258 = vrot.lane.b32.xlu0 %v6950_v21, %s6703_s27  ;;  %981 = vrot.lane.b32.xlu1 %v6936_v14, %s6709_s14 }
 0x180   : > { %1264 = vrot.lane.b32.xlu0 %v6950_v21, %s6706_s10  ;;  %1261 = vrot.lane.b32.xlu1 %v6950_v21, %s6704_s8 }
 0x184   : > { %1270 = vrot.lane.b32.xlu0 %v6950_v21, %s6708_s12  ;;  %1267 = vrot.lane.b32.xlu1 %v6950_v21, %s6705_s9 }
 0x188   : > { %1276 = vrot.lane.b32.xlu0 %v6950_v21, %s6709_s14  ;;  %1273 = vrot.lane.b32.xlu1 %v6950_v21, %s6707_s11 }
 0x1c6   : > { %v6968_v22 = vpop.permute.xlu0 %365  ;;  %v6970_v23 = vpop.permute.xlu1 %362 }
 0x1c7   : > { %v383_v36 = vcombine.low %v6904_v2, %v6968_v22 }
 0x1c9   : > { %v7002_v43 = vrot.slane %v383_v36, %v6986_v35 }
 0x1ca   : > { %v6972_v26 = vpop.permute.xlu0 %371  ;;  %v6974_v27 = vpop.permute.xlu1 %368 }
 0x1cb   : > { %v399_v30 = vcombine.low %v6970_v23, %v6974_v27 }
 0x1cd   : > { %v6991_v38 = vrot.slane %v399_v30, %v6986_v35 }
 0x1ce   : > { %v6981_v31 = vpop.permute.xlu0 %377  ;;  %v6983_v32 = vpop.permute.xlu1 %374 }
 0x1cf   : > { %v415_v39 = vcombine.low %v6972_v26, %v6981_v31  ;;  %v447_v48 = vcombine.low %v7002_v43, %v6991_v38 }
 0x1d1   : > { %v7008_v45 = vrot.slane %v415_v39, %v6986_v35  ;;  %v455_v55 = vrot.slane %v447_v48, %v7017_v49 }
 0x1d2   : > { %v6995_v40 = vpop.permute.xlu0 %668  ;;  %v6997_v20 = vpop.permute.xlu1 %380 }
 0x1d3   : > { %v431_v42 = vcombine.low %v6983_v32, %v6997_v20 }
 0x1d5   : > { %v7005_v44 = vrot.slane %v431_v42, %v6986_v35 }
 0x1d6   : > { %v7010_v46 = vpop.permute.xlu0 %674  ;;  %v7012_v47 = vpop.permute.xlu1 %671 }
 0x1d7   : > { %v479_v50 = vcombine.low %v7008_v45, %v7005_v44  ;;  %v705_v51 = vcombine.low %v6995_v40, %v7010_v46  ;;  %v689_v52 = vcombine.low %v6918_v8, %v7012_v47 }
 0x1d9   : > { %v487_v56 = vrot.slane %v479_v50, %v7017_v49  ;;  %v7032_v59 = vrot.slane %v705_v51, %v6986_v35  ;;  %v7035_v60 = vrot.slane %v689_v52, %v6986_v35 }
 0x1da   : > { %v7025_v53 = vpop.permute.xlu0 %680  ;;  %v7027_v54 = vpop.permute.xlu1 %677 }
 0x1db   : > { %v512_v57 = vcombine.high %v455_v55, %v487_v56  ;;  %v511_v58 = vcombine.low %v455_v55, %v487_v56  ;;  %v753_v7 = vcombine.low %v7035_v60, %v7032_v59 }
 0x1dd   : > { %v523_v62 = vsel %vm519_vm6, %v512_v57, -inf  ;;  %v520_v63 = vsel %vm519_vm6, %v511_v58, -inf  ;;  %v761_v12 = vrot.slane %v753_v7, %v7017_v49 }
 0x1de   : > { %v7037_v61 = vpop.permute.xlu0 %686  ;;  %v7041_v1 = vpop.permute.xlu1 %683  ;;  %524 = vmax.xlane.f32.xlu0 %v523_v62  ;;  %521 = vmax.xlane.f32.xlu1 %v520_v63 }
 0x1df   : > { %v737_v3 = vcombine.low %v7025_v53, %v7037_v61  ;;  %v721_v4 = vcombine.low %v7027_v54, %v7041_v1 }
 0x1e1   : > { %v7048_v37 = vrot.slane %v737_v3, %v6986_v35  ;;  %v7051_v6 = vrot.slane %v721_v4, %v6986_v35 }
 0x1e2   : > { %v7055_v9 = vpop.permute.xlu0 %966  ;;  %v7057_v10 = vpop.permute.xlu1 %963 }
 0x1e3   : > { %v785_v11 = vcombine.low %v7051_v6, %v7048_v37  ;;  %v984_v33 = vcombine.low %v6936_v14, %v7055_v9 }
 0x1e5   : > { %v793_v13 = vrot.slane %v785_v11, %v7017_v49  ;;  %v7089_v48 = vrot.slane %v984_v33, %v6986_v35  ;;  %v480_v33 = vcombine.high %v7008_v45, %v7005_v44 }
 0x1e6   : > { %v7063_v15 = vpop.permute.xlu0 %972  ;;  %v7065_v16 = vpop.permute.xlu1 %969 }
 0x1e7   : > { %v818_v17 = vcombine.high %v761_v12, %v793_v13  ;;  %v817_v18 = vcombine.low %v761_v12, %v793_v13  ;;  %v1000_v5 = vcombine.low %v7057_v10, %v7065_v16 }
 0x1e9   : > { %v828_v19 = vsel %vm519_vm6, %v818_v17, -inf  ;;  %v825_v24 = vsel %vm519_vm6, %v817_v18, -inf  ;;  %v7078_v34 = vrot.slane %v1000_v5, %v6986_v35 }
 0x1ea   : > { %v7071_v28 = vpop.permute.xlu0 %978  ;;  %829 = vmax.xlane.f32.xlu1 %v828_v19  ;;  %826 = vmax.xlane.f32.xlu0 %v825_v24  ;;  %v7073_v30 = vpop.permute.xlu1 %975 }
 0x1eb   : > { %v1016_v36 = vcombine.low %v7063_v15, %v7071_v28  ;;  %v1048_v56 = vcombine.low %v7089_v48, %v7078_v34 }
 0x1ed   : > { %v1024_v51 = vrot.slane %v1016_v36, %v6986_v35  ;;  %v1056_v4 = vrot.slane %v1048_v56, %v7017_v49  ;;  %v384_v56 = vcombine.high %v6904_v2, %v6968_v22 }
 0x1ee   : > { %v7082_v39 = vpop.permute.xlu0 %1258  ;;  %v7084_v41 = vpop.permute.xlu1 %981 }
 0x1ef   : > { %v1032_v42 = vcombine.low %v7073_v30, %v7084_v41  ;;  %v7139_v22 = vrot.slane %v384_v56, %v6986_v35 }
 0x1f1   : > { %v1040_v50 = vrot.slane %v1032_v42, %v6986_v35 }
 0x1f2   : > { %v7093_v52 = vpop.permute.xlu0 %1264  ;;  %v7095_v55 = vpop.permute.xlu1 %1261 }
 0x1f3   : > { %v1080_v57 = vcombine.low %v1024_v51, %v1040_v50  ;;  %v1295_v58 = vcombine.low %v7082_v39, %v7093_v52  ;;  %v1279_v62 = vcombine.low %v6950_v21, %v7095_v55 }
 0x1f5   : > { %v1088_v7 = vrot.slane %v1080_v57, %v7017_v49  ;;  %v1303_v13 = vrot.slane %v1295_v58, %v6986_v35  ;;  %v1287_v17 = vrot.slane %v1279_v62, %v6986_v35  ;;  %v786_v57 = vcombine.high %v7051_v6, %v7048_v37 }
 0x1f6   : > { %v7103_v63 = vpop.permute.xlu0 %1270  ;;  %v7105_v3 = vpop.permute.xlu1 %1267  ;;  %v448_v58 = vcombine.high %v7002_v43, %v6991_v38  ;;  %v416_v38 = vcombine.high %v6972_v26, %v6981_v31  ;;  %v400_v6 = vcombine.high %v6970_v23, %v6974_v27  ;;  %v738_v23 = vcombine.high %v7025_v53, %v7037_v61 }
 0x1f7   : > { %v1113_v11 = vcombine.high %v1056_v4, %v1088_v7  ;;  %v1112_v12 = vcombine.low %v1056_v4, %v1088_v7  ;;  %v1343_v45 = vcombine.low %v1287_v17, %v1303_v13  ;;  %v432_v4 = vcombine.high %v6983_v32, %v6997_v20 }
 0x1f8   : > { %v754_v7 = vcombine.high %v7035_v60, %v7032_v59  ;;  %v7144_v43 = vrot.slane %v786_v57, %v7017_v49  ;;  %v7147_v37 = vrot.slane %v448_v58, %v7017_v49  ;;  %v1081_v60 = vcombine.high %v1024_v51, %v1040_v50 }
 0x1f9   : > { %v1123_v19 = vsel %vm519_vm6, %v1113_v11, -inf  ;;  %v1120_v24 = vsel %vm519_vm6, %v1112_v12, -inf  ;;  %v7136_v11 = vrot.slane %v480_v33, %v7017_v49  ;;  %v1351_v32 = vrot.slane %v1343_v45, %v7017_v49 }
 0x1fa   : > { %v7111_v18 = vpop.permute.xlu0 %1276  ;;  %v7115_v5 = vpop.permute.xlu1 %1273  ;;  %1124 = vmax.xlane.f32.xlu1 %v1123_v19  ;;  %1121 = vmax.xlane.f32.xlu0 %v1120_v24  ;;  %v7154_v12 = vrot.slane %v432_v4, %v6986_v35  ;;  %v768_v26 = vrot.slane %v754_v7, %v7017_v49  ;;  %v1344_v33 = vcombine.high %v1287_v17, %v1303_v13 }
 0x1fb   : > { %v1327_v36 = vcombine.low %v7103_v63, %v7111_v18  ;;  %v1311_v42 = vcombine.low %v7105_v3, %v7115_v5  ;;  %v513_v31 = vcombine.low %v7147_v37, %v7136_v11  ;;  %v722_v27 = vcombine.high %v7027_v54, %v7041_v1 }
 0x1fc   : > { %v819_v50 = vcombine.low %v768_v26, %v7144_v43  ;;  %v1095_v17 = vrot.slane %v1081_v60, %v7017_v49  ;;  %v690_v53 = vcombine.high %v6918_v8, %v7012_v47  ;;  %v1358_v61 = vrot.slane %v1344_v33, %v7017_v49 }
 0x1fd   : > { %v1335_v62 = vrot.slane %v1327_v36, %v6986_v35  ;;  %v1319_v44 = vrot.slane %v1311_v42, %v6986_v35  ;;  %v1049_v36 = vcombine.high %v7089_v48, %v7078_v34  ;;  %v7162_v42 = vrot.slane %v416_v38, %v6986_v35 }
 0x1fe   : > { %v7174_v34 = vrot.slane %v400_v6, %v6986_v35  ;;  %v706_v48 = vcombine.high %v6995_v40, %v7010_v46  ;;  %v526_v54 = vsel %vm519_vm6, %v513_v31, -inf  ;;  %v7186_v58 = vrot.slane %v738_v23, %v6986_v35 }
 0x1ff   : > { %v1375_v2 = vcombine.low %v1319_v44, %v1335_v62  ;;  %v1376_v59 = vcombine.high %v1319_v44, %v1335_v62  ;;  %v1063_v1 = vrot.slane %v1049_v36, %v7017_v49  ;;  %v495_v57 = vcombine.low %v7162_v42, %v7154_v12 }
 0x200   : > { %v7189_v62 = vrot.slane %v722_v27, %v6986_v35  ;;  %v1033_v8 = vcombine.high %v7073_v30, %v7084_v41  ;;  %v831_v40 = vsel %vm519_vm6, %v819_v50, -inf  ;;  %v1328_v46 = vcombine.high %v7103_v63, %v7111_v18 }
 0x201   : > { %v1383_v20 = vrot.slane %v1375_v2, %v7017_v49  ;;  %v1390_v13 = vrot.slane %v1376_v59, %v7017_v49  ;;  %v1312_v47 = vcombine.high %v7105_v3, %v7115_v5  ;;  %v1114_v45 = vcombine.low %v1063_v1, %v1095_v17 }
 0x202   : > { %v7199_v4 = vrot.slane %v706_v48, %v6986_v35  ;;  %v7202_v7 = vrot.slane %v690_v53, %v6986_v35  ;;  %v514_v30 = vcombine.high %v7147_v37, %v7136_v11  ;;  %v1001_v41 = vcombine.high %v7057_v10, %v7065_v16 }
 0x203   : > { %v1408_v19 = vcombine.high %v1351_v32, %v1383_v20  ;;  %v1407_v24 = vcombine.low %v1351_v32, %v1383_v20  ;;  %v1409_v44 = vcombine.low %v1358_v61, %v1390_v13  ;;  %v1017_v63 = vcombine.high %v7063_v15, %v7071_v28 }
 0x204   : > { %v1296_v3 = vcombine.high %v7082_v39, %v7093_v52  ;;  %v1280_v18 = vcombine.high %v6950_v21, %v7095_v55  ;;  %v985_v5 = vcombine.high %v6936_v14, %v7055_v9  ;;  %v7217_v2 = vrot.slane %v1033_v8, %v6986_v35 }
 0x205   : > { %v1418_v51 = vsel %vm519_vm6, %v1408_v19, -inf  ;;  %v1415_v56 = vsel %vm519_vm6, %v1407_v24, -inf  ;;  %v820_v11 = vcombine.high %v768_v26, %v7144_v43  ;;  %v801_v10 = vcombine.low %v7189_v62, %v7186_v58 }
 0x206   : > { %1419 = vmax.xlane.f32.xlu1 %v1418_v51  ;;  %1416 = vmax.xlane.f32.xlu0 %v1415_v56  ;;  %v7223_v16 = vrot.slane %v1328_v46, %v6986_v35  ;;  %v7226_v15 = vrot.slane %v1312_v47, %v6986_v35  ;;  %v1421_v28 = vsel %vm519_vm6, %v1409_v44, -inf  ;;  %v1126_v21 = vsel %vm519_vm6, %v1114_v45, -inf }
 0x207   : > { %v769_v14 = vcombine.low %v7202_v7, %v7199_v4  ;;  %v463_v9 = vcombine.low %v7139_v22, %v7174_v34  ;;  %v503_v39 = vrot.slane %v495_v57, %v7017_v49  ;;  %v7236_v52 = vrot.slane %v1001_v41, %v6986_v35 }
 0x208   : > { %v7239_v55 = vrot.slane %v1017_v63, %v6986_v35  ;;  %v7242_v38 = vrot.slane %v1296_v3, %v6986_v35  ;;  %v7245_v43 = vrot.slane %v1280_v18, %v6986_v35  ;;  %v7248_v37 = vrot.slane %v985_v5, %v6986_v35 }
 0x209   : > { %v834_v32 = vsel %vm519_vm6, %v820_v11, -inf  ;;  %v529_v20 = vsel %vm519_vm6, %v514_v30, -inf  ;;  %v809_v59 = vrot.slane %v801_v10, %v7017_v49  ;;  %v1410_v60 = vcombine.high %v1358_v61, %v1390_v13 }
 0x20a   : > { %832 = vmax.xlane.f32.xlu1 %v831_v40  ;;  %527 = vmax.xlane.f32.xlu0 %v526_v54  ;;  %v1115_v6 = vcombine.high %v1063_v1, %v1095_v17  ;;  %v1391_v26 = vcombine.low %v7226_v15, %v7223_v16  ;;  %v1096_v31 = vcombine.low %v7239_v55, %v7217_v2 }
 0x20b   : > { %v777_v19 = vrot.slane %v769_v14, %v7017_v49  ;;  %v471_v24 = vrot.slane %v463_v9, %v7017_v49  ;;  %v1359_v33 = vcombine.low %v7245_v43, %v7242_v38  ;;  %v1064_v36 = vcombine.low %v7248_v37, %v7236_v52 }
 0x20c   : > { %v1424_v50 = vsel %vm519_vm6, %v1410_v60, -inf  ;;  %v1129_v51 = vsel %vm519_vm6, %v1115_v6, -inf  ;;  %v1399_v56 = vrot.slane %v1391_v26, %v7017_v49  ;;  %v1104_v13 = vrot.slane %v1096_v31, %v7017_v49 }
 0x20d   : > { %v821_v23 = vcombine.low %v777_v19, %v809_v59  ;;  %v515_v27 = vcombine.low %v471_v24, %v503_v39  ;;  %v1367_v17 = vrot.slane %v1359_v33, %v7017_v49  ;;  %v1072_v48 = vrot.slane %v1064_v36, %v7017_v49 }
 0x20e   : > { %1422 = vmax.xlane.f32.xlu1 %v1421_v28  ;;  %1127 = vmax.xlane.f32.xlu0 %v1126_v21  ;;  %v822_v57 = vcombine.high %v777_v19, %v809_v59  ;;  %v516_v8 = vcombine.high %v471_v24, %v503_v39  ;;  %v802_v40 = vcombine.high %v7189_v62, %v7186_v58 }
 0x20f   : > { %v837_v53 = vsel %vm519_vm6, %v821_v23, -inf  ;;  %v532_v54 = vsel %vm519_vm6, %v515_v27, -inf  ;;  %v1411_v61 = vcombine.low %v1367_v17, %v1399_v56  ;;  %v1116_v1 = vcombine.low %v1072_v48, %v1104_v13 }
 0x210   : > { %v496_v46 = vcombine.high %v7162_v42, %v7154_v12  ;;  %v770_v45 = vcombine.high %v7202_v7, %v7199_v4  ;;  %v464_v30 = vcombine.high %v7139_v22, %v7174_v34  ;;  %v840_v41 = vsel %vm519_vm6, %v822_v57, -inf }
 0x211   : > { %v1427_v47 = vsel %vm519_vm6, %v1411_v61, -inf  ;;  %v1132_v44 = vsel %vm519_vm6, %v1116_v1, -inf  ;;  %v535_v63 = vsel %vm519_vm6, %v516_v8, -inf  ;;  %v816_v58 = vrot.slane %v802_v40, %v7017_v49 }
 0x212   : > { %835 = vmax.xlane.f32.xlu1 %v834_v32  ;;  %530 = vmax.xlane.f32.xlu0 %v529_v20  ;;  %v510_v12 = vrot.slane %v496_v46, %v7017_v49  ;;  %v1412_v42 = vcombine.high %v1367_v17, %v1399_v56  ;;  %v1117_v62 = vcombine.high %v1072_v48, %v1104_v13  ;;  %v7354_v8 = vand.u32 127, %v388_v25 }
 0x213   : > { %v1392_v3 = vcombine.high %v7226_v15, %v7223_v16  ;;  %v1097_v18 = vcombine.high %v7239_v55, %v7217_v2  ;;  %v784_v22 = vrot.slane %v770_v45, %v7017_v49  ;;  %v478_v34 = vrot.slane %v464_v30, %v7017_v49 }
 0x214   : > { %v1360_v4 = vcombine.high %v7245_v43, %v7242_v38  ;;  %v1065_v7 = vcombine.high %v7248_v37, %v7236_v52  ;;  %v1430_v10 = vsel %vm519_vm6, %v1412_v42, -inf  ;;  %v1135_v16 = vsel %vm519_vm6, %v1117_v62, -inf }
 0x215   : > { %v823_v5 = vcombine.low %v784_v22, %v816_v58  ;;  %v517_v11 = vcombine.low %v478_v34, %v510_v12  ;;  %v1406_v2 = vrot.slane %v1392_v3, %v7017_v49  ;;  %v1111_v15 = vrot.slane %v1097_v18, %v7017_v49 }
 0x216   : > { %1425 = vmax.xlane.f32.xlu1 %v1424_v50  ;;  %1130 = vmax.xlane.f32.xlu0 %v1129_v51  ;;  %v1374_v28 = vrot.slane %v1360_v4, %v7017_v49  ;;  %v1079_v21 = vrot.slane %v1065_v7, %v7017_v49  ;;  %v824_v43 = vcombine.high %v784_v22, %v816_v58 }
 0x217   : > { %v843_v14 = vsel %vm519_vm6, %v823_v5, -inf  ;;  %v538_v9 = vsel %vm519_vm6, %v517_v11, -inf  ;;  %v518_v37 = vcombine.high %v478_v34, %v510_v12 }
 0x218   : > { %v1413_v39 = vcombine.low %v1374_v28, %v1406_v2  ;;  %v1118_v52 = vcombine.low %v1079_v21, %v1111_v15  ;;  %v846_v32 = vsel %vm519_vm6, %v824_v43, -inf  ;;  %v1414_v59 = vcombine.high %v1374_v28, %v1406_v2 }
 0x219   : > { %v541_v20 = vsel %vm519_vm6, %v518_v37, -inf  ;;  %v1119_v60 = vcombine.high %v1079_v21, %v1111_v15 }
 0x21a   : > { %838 = vmax.xlane.f32.xlu1 %v837_v53  ;;  %533 = vmax.xlane.f32.xlu0 %v532_v54  ;;  %v1433_v55 = vsel %vm519_vm6, %v1413_v39, -inf  ;;  %v1138_v38 = vsel %vm519_vm6, %v1118_v52, -inf  ;;  %v1436_v6 = vsel %vm519_vm6, %v1414_v59, -inf }
 0x21b   : > { %v1141_v26 = vsel %vm519_vm6, %v1119_v60, -inf }
 0x21e   : > { %1428 = vmax.xlane.f32.xlu1 %v1427_v47  ;;  %1133 = vmax.xlane.f32.xlu0 %v1132_v44  ;;  %v554_v47 = vadd.s32 4294967295, %v7354_v8 }
 0x220   : > { %v7362_v30 = vsub.s32 %v554_v47, %v6977_v29 }
 0x222   : > { %841 = vmax.xlane.f32.xlu1 %v840_v41  ;;  %536 = vmax.xlane.f32.xlu0 %v535_v63 }
 0x226   : > { %1431 = vmax.xlane.f32.xlu1 %v1430_v10  ;;  %1136 = vmax.xlane.f32.xlu0 %v1135_v16 }
 0x22a   : > { %844 = vmax.xlane.f32.xlu1 %v843_v14  ;;  %539 = vmax.xlane.f32.xlu0 %v538_v9 }
 0x22e   : > { %1434 = vmax.xlane.f32.xlu1 %v1433_v55  ;;  %1139 = vmax.xlane.f32.xlu0 %v1138_v38 }
 0x232   : > { %847 = vmax.xlane.f32.xlu1 %v846_v32  ;;  %542 = vmax.xlane.f32.xlu0 %v541_v20 }
 0x236   : > { %1437 = vmax.xlane.f32.xlu1 %v1436_v6  ;;  %1142 = vmax.xlane.f32.xlu0 %v1141_v26 }
 0x26b   : > { %v525_v31 = vpop.xlane.xlu0 %524  ;;  %v522_v19 = vpop.xlane.xlu1 %521 }
 0x26c   : > { %v562_v58 = vrot.slane %v525_v31, %v7362_v30  ;;  %v558_v12 = vrot.slane %v522_v19, %v7362_v30 }
 0x26e   : > { %v588_v28 = vsel %vm587_vm10, %v562_v58, %v558_v12 }
 0x277   : > { %v827_v24 = vpop.xlane.xlu0 %826  ;;  %v830_v33 = vpop.xlane.xlu1 %829 }
 0x278   : > { %v860_v42 = vrot.slane %v827_v24, %v7362_v30  ;;  %v864_v62 = vrot.slane %v830_v33, %v7362_v30 }
 0x27a   : > { %v889_v21 = vsel %vm587_vm10, %v864_v62, %v860_v42 }
 0x287   : > { %v1122_v36 = vpop.xlane.xlu0 %1121  ;;  %v1125_v23 = vpop.xlane.xlu1 %1124 }
 0x288   : > { %v1155_v3 = vrot.slane %v1122_v36, %v7362_v30  ;;  %v1159_v18 = vrot.slane %v1125_v23, %v7362_v30 }
 0x28a   : > { %v1184_v39 = vsel %vm587_vm10, %v1159_v18, %v1155_v3 }
 0x293   : > { %v1417_v27 = vpop.xlane.xlu0 %1416  ;;  %v1420_v50 = vpop.xlane.xlu1 %1419 }
 0x294   : > { %v1450_v22 = vrot.slane %v1417_v27, %v7362_v30  ;;  %v1454_v34 = vrot.slane %v1420_v50, %v7362_v30 }
 0x296   : > { %v1479_v52 = vsel %vm587_vm10, %v1454_v34, %v1450_v22  ;;  %vm1601_vm10 = vcmask 457728  }
 0x297   : > { %v528_v51 = vpop.xlane.xlu0 %527  ;;  %v833_v56 = vpop.xlane.xlu1 %832 }
 0x298   : > { %v566_v5 = vrot.slane %v528_v51, %v7362_v30  ;;  %v868_v11 = vrot.slane %v833_v56, %v7362_v30 }
 0x29a   : > { %v590_v32 = vsel %vm589_vm11, %v566_v5, %v588_v28  ;;  %v890_v20 = vsel %vm589_vm11, %v868_v11, %v889_v21 }
 0x29b   : > { %v1128_v13 = vpop.xlane.xlu0 %1127  ;;  %v1423_v17 = vpop.xlane.xlu1 %1422 }
 0x29c   : > { %v1163_v10 = vrot.slane %v1128_v13, %v7362_v30  ;;  %v1458_v16 = vrot.slane %v1423_v17, %v7362_v30 }
 0x29e   : > { %v1185_v59 = vsel %vm589_vm11, %v1163_v10, %v1184_v39  ;;  %v1480_v60 = vsel %vm589_vm11, %v1458_v16, %v1479_v52  ;;  %vm2531_vm11 = vcmask 1043456  }
 0x29f   : > { %v531_v48 = vpop.xlane.xlu0 %530  ;;  %v836_v53 = vpop.xlane.xlu1 %835 }
 0x2a0   : > { %v570_v2 = vrot.slane %v531_v48, %v7362_v30  ;;  %v872_v15 = vrot.slane %v836_v53, %v7362_v30 }
 0x2a2   : > { %v592_v6 = vsel %vm591_vm12, %v570_v2, %v590_v32  ;;  %v891_v26 = vsel %vm591_vm12, %v872_v15, %v890_v20 }
 0x2a3   : > { %v7349_v54 = vpop.xlane.xlu0 %1130  ;;  %v7351_v61 = vpop.xlane.xlu1 %1425 }
 0x2a4   : > { %v1167_v24 = vrot.slane %v7349_v54, %v7362_v30  ;;  %v1462_v33 = vrot.slane %v7351_v61, %v7362_v30 }
 0x2a6   : > { %v1186_v47 = vsel %vm591_vm12, %v1167_v24, %v1185_v59 }
 0x2a7   : > { %v534_v1 = vpop.xlane.xlu0 %533  ;;  %v839_v57 = vpop.xlane.xlu1 %838 }
 0x2a8   : > { %v574_v14 = vrot.slane %v534_v1, %v7362_v30  ;;  %v876_v9 = vrot.slane %v839_v57, %v7362_v30 }
 0x2aa   : > { %v594_v36 = vsel %vm593_vm13, %v574_v14, %v592_v6  ;;  %v892_v23 = vsel %vm593_vm13, %v876_v9, %v891_v26 }
 0x2ab   : > { %v7356_v40 = vpop.xlane.xlu0 %1133  ;;  %v7358_v46 = vpop.xlane.xlu1 %1428 }
 0x2ac   : > { %v1171_v27 = vrot.slane %v7356_v40, %v7362_v30  ;;  %v1466_v50 = vrot.slane %v7358_v46, %v7362_v30 }
 0x2af   : > { %v537_v44 = vpop.xlane.xlu0 %536  ;;  %v842_v45 = vpop.xlane.xlu1 %841 }
 0x2b0   : > { %v578_v55 = vrot.slane %v537_v44, %v7362_v30  ;;  %v880_v38 = vrot.slane %v842_v45, %v7362_v30  ;;  %v1481_v44 = vsel %vm591_vm12, %v1462_v33, %v1480_v60  ;;  %vm2538_vm12 = vcmask 293888  }
 0x2b1   : > { %v1482_v58 = vsel %vm593_vm13, %v1466_v50, %v1481_v44 }
 0x2b2   : > { %v596_v51 = vsel %vm595_vm14, %v578_v55, %v594_v36  ;;  %v893_v56 = vsel %vm595_vm14, %v880_v38, %v892_v23 }
 0x2b3   : > { %v7364_v41 = vpop.xlane.xlu0 %1136  ;;  %v7366_v63 = vpop.xlane.xlu1 %1431 }
 0x2b4   : > { %v1175_v48 = vrot.slane %v7364_v41, %v7362_v30  ;;  %v1470_v53 = vrot.slane %v7366_v63, %v7362_v30  ;;  %v1187_v63 = vsel %vm593_vm13, %v1171_v27, %v1186_v47  ;;  %vm6086_vm13 = vcmask 195712  }
 0x2b6   : > { %v1188_v62 = vsel %vm595_vm14, %v1175_v48, %v1187_v63  ;;  %v1483_v3 = vsel %vm595_vm14, %v1470_v53, %v1482_v58  ;;  %vm6093_vm14 = vcmask 261312  }
 0x2b7   : > { %v540_v4 = vpop.xlane.xlu0 %539  ;;  %v845_v7 = vpop.xlane.xlu1 %844 }
 0x2b8   : > { %v582_v31 = vrot.slane %v540_v4, %v7362_v30  ;;  %v884_v19 = vrot.slane %v845_v7, %v7362_v30 }
 0x2ba   : > { %v598_v1 = vsel %vm597_vm15, %v582_v31, %v596_v51  ;;  %v894_v57 = vsel %vm597_vm15, %v884_v19, %v893_v56 }
 0x2bb   : > { %v1140_v43 = vpop.xlane.xlu0 %1139  ;;  %v1435_v37 = vpop.xlane.xlu1 %1434 }
 0x2bc   : > { %v1179_v40 = vrot.slane %v1140_v43, %v7362_v30  ;;  %v1474_v46 = vrot.slane %v1435_v37, %v7362_v30 }
 0x2be   : > { %v1189_v34 = vsel %vm597_vm15, %v1179_v40, %v1188_v62  ;;  %v1484_v4 = vsel %vm597_vm15, %v1474_v46, %v1483_v3  ;;  %vm6100_vm15 = vcmask 326912  }
 0x2bf   : > { %v543_v13 = vpop.xlane.xlu0 %542  ;;  %v848_v17 = vpop.xlane.xlu1 %847 }
 0x2c0   : > { %v586_v54 = vrot.slane %v543_v13, %v7362_v30  ;;  %v888_v61 = vrot.slane %v848_v17, %v7362_v30 }
 0x2c2   : > { %v600_v45 = vsel %vm599_vm0, %v586_v54, %v598_v1  ;;  %v895_v41 = vsel %vm599_vm0, %v888_v61, %v894_v57 }
 0x2c3   : > { %603 = vst.msk [vmem:[#allocation3 + $0x1] sm:$0xff] %vm602_vm1, %v600_v45  ;;  %898 = vst.msk [vmem:[#allocation3 + $0x11] sm:$0xff] %vm602_vm1, %v895_v41  ;;  %v1143_v12 = vpop.xlane.xlu0 %1142  ;;  %v1438_v42 = vpop.xlane.xlu1 %1437 }
 0x2c4   : > { %v1183_v18 = vrot.slane %v1143_v12, %v7362_v30  ;;  %v1478_v22 = vrot.slane %v1438_v42, %v7362_v30 }
 0x2c6   : > { %v1190_v7 = vsel %vm599_vm0, %v1183_v18, %v1189_v34  ;;  %v1485_v5 = vsel %vm599_vm0, %v1478_v22, %v1484_v4  ;;  %vm6107_vm0 = vcmask 392512  }
 0x2c7   : > { %1193 = vst.msk [vmem:[#allocation3 + $0x21] sm:$0xff] %vm602_vm1, %v1190_v7  ;;  %1488 = vst.msk [vmem:[#allocation3 + $0x31] sm:$0xff] %vm602_vm1, %v1485_v5  ;;  %vm6114_vm1 = vcmask 458112  }
 0x2ca   : > { %v1489_v11 = vld [vmem:[#allocation3] sm:$0xff]  ;;  %v1490_v10 = vld [vmem:[#allocation3 + $0x10] sm:$0xff] }
 0x2cb   : > { %1607 = vrot.lane.b32.xlu0 %v1489_v11, %s6702_s22  ;;  %1609 = vrot.lane.b32.xlu1 %v1490_v10, %s6702_s22  ;;  %v1837_v14 = vld [vmem:[#allocation3 + $0x1] sm:$0xff]  ;;  %v1838_v9 = vld [vmem:[#allocation3 + $0x11] sm:$0xff] }
 0x2cc   : > { %v2178_v33 = vld [vmem:[#allocation3 + $0x2] sm:$0xff]  ;;  %v2179_v27 = vld [vmem:[#allocation3 + $0x12] sm:$0xff] }
 0x2ce   : > { %v1491_v16 = vld [vmem:[#allocation3 + $0x20] sm:$0xff]  ;;  %v1492_v30 = vld [vmem:[#allocation3 + $0x30] sm:$0xff] }
 0x2cf   : > { %v1839_v2 = vld [vmem:[#allocation3 + $0x21] sm:$0xff]  ;;  %v1493_v15 = vcombine.low %v1489_v11, %v1491_v16  ;;  %v1494_v28 = vcombine.high %v1489_v11, %v1491_v16  ;;  %1611 = vrot.lane.b32.xlu1 %v1491_v16, %s6702_s22  ;;  %1613 = vrot.lane.b32.xlu0 %v1492_v30, %s6702_s22  ;;  %v1509_v21 = vcombine.low %v1490_v10, %v1492_v30  ;;  %v1840_v39 = vld [vmem:[#allocation3 + $0x31] sm:$0xff] }
 0x2d0   : > { %v1510_v52 = vcombine.high %v1490_v10, %v1492_v30  ;;  %v1841_v55 = vcombine.low %v1837_v14, %v1839_v2  ;;  %v1842_v38 = vcombine.high %v1837_v14, %v1839_v2  ;;  %v1857_v43 = vcombine.low %v1838_v9, %v1840_v39  ;;  %v2180_v37 = vld [vmem:[#allocation3 + $0x22] sm:$0xff]  ;;  %v2181_v6 = vld [vmem:[#allocation3 + $0x32] sm:$0xff] }
 0x2d1   : > { %v7443_v32 = vrot.slane %v1493_v15, %v6986_v35  ;;  %v7446_v20 = vrot.slane %v1494_v28, %v6986_v35  ;;  %v7449_v59 = vrot.slane %v1509_v21, %v6986_v35  ;;  %v1858_v60 = vcombine.high %v1838_v9, %v1840_v39 }
 0x2d2   : > { %v7452_v26 = vrot.slane %v1510_v52, %v6986_v35  ;;  %v7455_v31 = vrot.slane %v1841_v55, %v6986_v35  ;;  %v7458_v19 = vrot.slane %v1842_v38, %v6986_v35  ;;  %v7461_v24 = vrot.slane %v1857_v43, %v6986_v35 }
 0x2d3   : > { %v1525_v36 = vcombine.low %v7443_v32, %v7449_v59  ;;  %1722 = vrot.lane.b32.xlu1 %v1489_v11, %s6703_s27  ;;  %1724 = vrot.lane.b32.xlu0 %v1490_v10, %s6703_s27  ;;  %v7468_v23 = vrot.slane %v1858_v60, %v6986_v35  ;;  %v2182_v50 = vcombine.low %v2178_v33, %v2180_v37 }
 0x2d4   : > { %v1873_v51 = vcombine.low %v7455_v31, %v7461_v24  ;;  %v2183_v56 = vcombine.high %v2178_v33, %v2180_v37  ;;  %v2198_v13 = vcombine.low %v2179_v27, %v2181_v6  ;;  %v2199_v17 = vcombine.high %v2179_v27, %v2181_v6 }
 0x2d5   : > { %v7473_v48 = vrot.slane %v2182_v50, %v6986_v35  ;;  %v1874_v53 = vcombine.high %v7455_v31, %v7461_v24  ;;  %v1889_v54 = vcombine.low %v7458_v19, %v7468_v23  ;;  %v1541_v61 = vcombine.low %v7446_v20, %v7452_v26 }
 0x2d6   : > { %v7482_v1 = vrot.slane %v2183_v56, %v6986_v35  ;;  %v7485_v57 = vrot.slane %v2198_v13, %v6986_v35  ;;  %v7488_v40 = vrot.slane %v2199_v17, %v6986_v35  ;;  %v1526_v46 = vcombine.high %v7443_v32, %v7449_v59 }
 0x2d7   : > { %1726 = vrot.lane.b32.xlu1 %v1491_v16, %s6703_s27  ;;  %1728 = vrot.lane.b32.xlu0 %v1492_v30, %s6703_s27  ;;  %v1890_v44 = vcombine.high %v7458_v19, %v7468_v23  ;;  %v1542_v45 = vcombine.high %v7446_v20, %v7452_v26  ;;  %v7556_v13 = vrot.slane %v1889_v54, %v7017_v49 }
 0x2d8   : > { %v2214_v47 = vcombine.low %v7473_v48, %v7485_v57  ;;  %v2230_v41 = vcombine.low %v7482_v1, %v7488_v40  ;;  %v2215_v63 = vcombine.high %v7473_v48, %v7485_v57  ;;  %v2231_v58 = vcombine.high %v7482_v1, %v7488_v40 }
 0x2d9   : > { %v7605_v19 = vrot.slane %v1542_v45, %v7017_v49 }
 0x2db   : > { %2063 = vrot.lane.b32.xlu1 %v1837_v14, %s6703_s27  ;;  %2065 = vrot.lane.b32.xlu0 %v1838_v9, %s6703_s27  ;;  %v1560_v57 = vcombine.high %v7605_v19, %v6700_v0 }
 0x2df   : > { %2067 = vrot.lane.b32.xlu1 %v1839_v2, %s6703_s27  ;;  %2069 = vrot.lane.b32.xlu0 %v1840_v39, %s6703_s27 }
 0x2e3   : > { %2289 = vrot.lane.b32.xlu1 %v2178_v33, %s6702_s22  ;;  %2291 = vrot.lane.b32.xlu0 %v2179_v27, %s6702_s22 }
 0x2e7   : > { %2293 = vrot.lane.b32.xlu1 %v2180_v37, %s6702_s22  ;;  %2295 = vrot.lane.b32.xlu0 %v2181_v6, %s6702_s22 }
 0x2eb   : > { %1948 = vrot.lane.b32.xlu1 %v1837_v14, %s6702_s22  ;;  %1950 = vrot.lane.b32.xlu0 %v1838_v9, %s6702_s22  ;;  %v7536_v9 = vrot.slane %v1874_v53, %v7017_v49 }
 0x2ed   : > { %v1906_v59 = vcombine.high %v7536_v9, %v6700_v0 }
 0x2ef   : > { %1952 = vrot.lane.b32.xlu1 %v1839_v2, %s6702_s22  ;;  %1954 = vrot.lane.b32.xlu0 %v1840_v39, %s6702_s22  ;;  %s6712_s22 = smov 16  }
 0x2f3   : > { %2404 = vrot.lane.b32.xlu1 %v2178_v33, %s6703_s27  ;;  %2406 = vrot.lane.b32.xlu0 %v2179_v27, %s6703_s27 }
 0x2f7   : > { %2408 = vrot.lane.b32.xlu1 %v2180_v37, %s6703_s27  ;;  %2410 = vrot.lane.b32.xlu0 %v2181_v6, %s6703_s27 }
 0x33d   : > { %v1608_v12 = vpop.permute.xlu0 %1607  ;;  %v1610_v42 = vpop.permute.xlu1 %1609 }
 0x341   : > { %v1614_v62 = vpop.permute.xlu0 %1613  ;;  %v1612_v3 = vpop.permute.xlu1 %1611 }
 0x342   : > { %v1635_v18 = vcombine.low %v1610_v42, %v1614_v62  ;;  %v1636_v22 = vcombine.high %v1610_v42, %v1614_v62  ;;  %v1619_v34 = vcombine.low %v1608_v12, %v1612_v3  ;;  %v1620_v4 = vcombine.high %v1608_v12, %v1612_v3 }
 0x344   : > { %v7523_v7 = vrot.slane %v1635_v18, %v6986_v35  ;;  %v1650_v5 = vrot.slane %v1636_v22, %v6986_v35  ;;  %v7527_v11 = vrot.slane %v1619_v34, %v6986_v35  ;;  %v1634_v10 = vrot.slane %v1620_v4, %v6986_v35 }
 0x345   : > { %v1725_v16 = vpop.permute.xlu0 %1724  ;;  %v1723_v30 = vpop.permute.xlu1 %1722  ;;  %v7573_v22 = vrot.slane %v1541_v61, %v7017_v49  ;;  %v7579_v34 = vrot.slane %v1526_v46, %v7017_v49  ;;  %v7592_v61 = vrot.slane %v1890_v44, %v7017_v49 }
 0x346   : > { %v1652_v2 = vcombine.high %v7527_v11, %v7523_v7  ;;  %v1667_v15 = vcombine.low %v1634_v10, %v1650_v5  ;;  %v1668_v12 = vcombine.high %v1634_v10, %v1650_v5 }
 0x348   : > { %v7533_v28 = vrot.slane %v1652_v2, %v7017_v49  ;;  %v7541_v37 = vrot.slane %v1667_v15, %v7017_v49 }
 0x349   : > { %v1729_v21 = vpop.permute.xlu0 %1728  ;;  %v1727_v14 = vpop.permute.xlu1 %1726 }
 0x34a   : > { %v1750_v39 = vcombine.low %v1725_v16, %v1729_v21  ;;  %v1751_v52 = vcombine.high %v1725_v16, %v1729_v21  ;;  %v1734_v55 = vcombine.low %v1723_v30, %v1727_v14  ;;  %v1735_v38 = vcombine.high %v1723_v30, %v1727_v14 }
 0x34b   : > { %v6510_v43 = vpack.i.bf16 %v7536_v9, %v7533_v28  ;;  %v6520_v42 = vpack.i.bf16 %v7556_v13, %v7541_v37  ;;  %v7586_v16 = vrot.slane %v1668_v12, %v7017_v49  ;;  %v1558_v9 = vcombine.high %v7579_v34, %v6700_v0 }
 0x34c   : > { %v7544_v60 = vrot.slane %v1750_v39, %v6986_v35  ;;  %v1765_v6 = vrot.slane %v1751_v52, %v6986_v35  ;;  %v7548_v33 = vrot.slane %v1734_v55, %v6986_v35  ;;  %v1749_v27 = vrot.slane %v1735_v38, %v6986_v35 }
 0x34d   : > { %6511 = vrot.lane.b32.xlu0 %v6510_v43, %s6712_s22  ;;  %v2066_v50 = vpop.permute.xlu0 %2065  ;;  %v2064_v56 = vpop.permute.xlu1 %2063  ;;  %v6530_v39 = vpack.i.bf16 %v7592_v61, %v7586_v16 }
 0x34e   : > { %v1767_v17 = vcombine.high %v7548_v33, %v7544_v60  ;;  %v1782_v53 = vcombine.low %v1749_v27, %v1765_v6  ;;  %v1783_v4 = vcombine.high %v1749_v27, %v1765_v6 }
 0x350   : > { %v7563_v62 = vrot.slane %v1782_v53, %v7017_v49  ;;  %v7566_v3 = vrot.slane %v1767_v17, %v7017_v49  ;;  %v7599_v52 = vrot.slane %v1783_v4, %v7017_v49 }
 0x351   : > { %6521 = vrot.lane.b32.xlu0 %v6520_v42, %s6713_s16  ;;  %v2070_v18 = vpop.permute.xlu0 %2069  ;;  %v2068_v54 = vpop.permute.xlu1 %2067 }
 0x352   : > { %v6525_v5 = vpack.i.bf16 %v7563_v62, %v7573_v22  ;;  %v6515_v10 = vpack.i.bf16 %v7566_v3, %v7579_v34  ;;  %v2091_v30 = vcombine.low %v2066_v50, %v2070_v18  ;;  %v2092_v2 = vcombine.high %v2066_v50, %v2070_v18 }
 0x353   : > { %v2075_v46 = vcombine.low %v2064_v56, %v2068_v54  ;;  %v2076_v15 = vcombine.high %v2064_v56, %v2068_v54  ;;  %v6540_v50 = vpack.i.bf16 %v7599_v52, %v7605_v19 }
 0x354   : > { %6516 = vrot.lane.b32.xlu1 %v6515_v10, %s6712_s22  ;;  %v7608_v23 = vrot.slane %v2091_v30, %v6986_v35  ;;  %v7611_v44 = vrot.slane %v2092_v2, %v6986_v35 }
 0x355   : > { %6526 = vrot.lane.b32.xlu0 %v6525_v5, %s6713_s16  ;;  %v2292_v21 = vpop.permute.xlu0 %2291  ;;  %v2290_v14 = vpop.permute.xlu1 %2289  ;;  %v7614_v55 = vrot.slane %v2075_v46, %v6986_v35  ;;  %v7617_v38 = vrot.slane %v2076_v15, %v6986_v35 }
 0x357   : > { %v2108_v42 = vcombine.high %v7614_v55, %v7608_v23  ;;  %v2123_v18 = vcombine.low %v7617_v38, %v7611_v44 }
 0x358   : > { %6531 = vrot.lane.b32.xlu1 %v6530_v39, %s6714_s17 }
 0x359   : > { %v2296_v43 = vpop.permute.xlu0 %2295  ;;  %v2294_v6 = vpop.permute.xlu1 %2293 }
 0x35a   : > { %v2317_v20 = vcombine.low %v2292_v21, %v2296_v43  ;;  %v2318_v26 = vcombine.high %v2292_v21, %v2296_v43  ;;  %v2301_v45 = vcombine.low %v2290_v14, %v2294_v6  ;;  %v2302_v27 = vcombine.high %v2290_v14, %v2294_v6 }
 0x35b   : > { %v7644_v21 = vrot.slane %v2123_v18, %v7017_v49  ;;  %v7647_v14 = vrot.slane %v2108_v42, %v7017_v49 }
 0x35c   : > { %v7623_v56 = vrot.slane %v2317_v20, %v6986_v35  ;;  %v2332_v17 = vrot.slane %v2318_v26, %v6986_v35  ;;  %v7627_v53 = vrot.slane %v2301_v45, %v6986_v35  ;;  %v2316_v12 = vrot.slane %v2302_v27, %v6986_v35  ;;  %6541 = vrot.lane.b32.xlu1 %v6540_v50, %s6714_s17 }
 0x35d   : > { %v1951_v54 = vpop.permute.xlu0 %1950  ;;  %v1949_v4 = vpop.permute.xlu1 %1948 }
 0x35e   : > { %v2334_v5 = vcombine.high %v7627_v53, %v7623_v56  ;;  %v2349_v10 = vcombine.low %v2316_v12, %v2332_v17 }
 0x360   : > { %v7638_v30 = vrot.slane %v2349_v10, %v7017_v49  ;;  %v7641_v2 = vrot.slane %v2334_v5, %v7017_v49  ;;  %v1651_v5 = vcombine.low %v7527_v11, %v7523_v7  ;;  %v7687_v7 = vrot.slane %v2230_v41, %v7017_v49 }
 0x361   : > { %v1955_v46 = vpop.permute.xlu0 %1954  ;;  %v1953_v15 = vpop.permute.xlu1 %1952  ;;  %v7693_v11 = vrot.slane %v2215_v63, %v7017_v49 }
 0x362   : > { %v1976_v39 = vcombine.low %v1951_v54, %v1955_v46  ;;  %v1977_v43 = vcombine.high %v1951_v54, %v1955_v46  ;;  %v1960_v6 = vcombine.low %v1949_v4, %v1953_v15  ;;  %v1961_v20 = vcombine.high %v1949_v4, %v1953_v15 }
 0x363   : > { %v6550_v26 = vpack.i.bf16 %v7638_v30, %v7644_v21  ;;  %v6535_v45 = vpack.i.bf16 %v7641_v2, %v7647_v14  ;;  %v2350_v15 = vcombine.high %v2316_v12, %v2332_v17  ;;  %v7696_v17 = vrot.slane %v1651_v5, %v7017_v49 }
 0x364   : > { %v7654_v27 = vrot.slane %v1976_v39, %v6986_v35  ;;  %v1991_v50 = vrot.slane %v1977_v43, %v6986_v35  ;;  %v7658_v18 = vrot.slane %v1960_v6, %v6986_v35  ;;  %v1975_v42 = vrot.slane %v1961_v20, %v6986_v35 }
 0x365   : > { %6551 = vrot.lane.b32.xlu1 %v6550_v26, %s6713_s16  ;;  %6536 = vrot.lane.b32.xlu0 %v6535_v45, %s6712_s22  ;;  %v7663_v54 = vpop.permute.xlu0 %2406  ;;  %v7665_v4 = vpop.permute.xlu1 %2404  ;;  %v2124_v20 = vcombine.high %v7617_v38, %v7611_v44  ;;  %v1766_v44 = vcombine.low %v7548_v33, %v7544_v60  ;;  %v7724_v5 = vrot.slane %v1873_v51, %v7017_v49 }
 0x366   : > { %v1993_v10 = vcombine.high %v7658_v18, %v7654_v27  ;;  %v2008_v46 = vcombine.low %v1975_v42, %v1991_v50  ;;  %v2009_v39 = vcombine.high %v1975_v42, %v1991_v50  ;;  %v7712_v42 = vrot.slane %v2350_v15, %v7017_v49 }
 0x367   : > { %v1683_v15 = vcombine.high %v7696_v17, %v6700_v0  ;;  %v7740_v31 = vrot.slane %v1766_v44, %v7017_v49  ;;  %v1905_v40 = vcombine.high %v7724_v5, %v6700_v0 }
 0x368   : > { %v7672_v43 = vrot.slane %v2008_v46, %v7017_v49  ;;  %v7675_v6 = vrot.slane %v1993_v10, %v7017_v49  ;;  %v7709_v63 = vrot.slane %v2009_v39, %v7017_v49  ;;  %v7732_v10 = vrot.slane %v2231_v58, %v7017_v49 }
 0x369   : > { %v7679_v26 = vpop.permute.xlu0 %2410  ;;  %v7681_v45 = vpop.permute.xlu1 %2408  ;;  %v7735_v46 = vrot.slane %v2124_v20, %v7017_v49  ;;  %v7756_v58 = vrot.slane %v1525_v36, %v7017_v49  ;;  %v6570_v39 = vpack.i.bf16 %v1905_v40, %v1683_v15  ;;  %v2333_v20 = vcombine.low %v7627_v53, %v7623_v56 }
 0x36a   : > { %v2432_v38 = vcombine.low %v7663_v54, %v7679_v26  ;;  %v2416_v12 = vcombine.low %v7665_v4, %v7681_v45  ;;  %v6555_v41 = vpack.i.bf16 %v7687_v7, %v7672_v43  ;;  %v6545_v50 = vpack.i.bf16 %v7693_v11, %v7675_v6 }
 0x36b   : > { %v6565_v51 = vpack.i.bf16 %v7732_v10, %v7709_v63  ;;  %v6560_v1 = vpack.i.bf16 %v7712_v42, %v7735_v46  ;;  %v1557_v32 = vcombine.high %v7756_v58, %v6700_v0  ;;  %v1685_v36 = vcombine.high %v7541_v37, %v6700_v0 }
 0x36c   : > { %v7715_v60 = vrot.slane %v2432_v38, %v6986_v35  ;;  %v7718_v33 = vrot.slane %v2416_v12, %v6986_v35  ;;  %6556 = vrot.lane.b32.xlu1 %v6555_v41, %s6713_s16  ;;  %6546 = vrot.lane.b32.xlu0 %v6545_v50, %s6712_s22  ;;  %v1798_v38 = vcombine.high %v7740_v31, %v6700_v0 }
 0x36d   : > { %v1684_v12 = vcombine.high %v7533_v28, %v6700_v0  ;;  %v2107_v41 = vcombine.low %v7614_v55, %v7608_v23  ;;  %v7779_v28 = vrot.slane %v2333_v20, %v7017_v49  ;;  %v1799_v55 = vcombine.high %v7566_v3, %v6700_v0 }
 0x36e   : > { %v2449_v24 = vcombine.high %v7718_v33, %v7715_v60  ;;  %v6575_v56 = vpack.i.bf16 %v1798_v38, %v1557_v32  ;;  %v1907_v37 = vcombine.high %v7556_v13, %v6700_v0  ;;  %v1686_v50 = vcombine.high %v7586_v16, %v6700_v0 }
 0x36f   : > { %v6580_v23 = vpack.i.bf16 %v1906_v59, %v1684_v12  ;;  %v7784_v53 = vrot.slane %v2107_v41, %v7017_v49  ;;  %v1992_v3 = vcombine.low %v7658_v18, %v7654_v27  ;;  %v6585_v15 = vpack.i.bf16 %v1799_v55, %v1558_v9 }
 0x370   : > { %6566 = vrot.lane.b32.xlu1 %v6565_v51, %s6714_s17  ;;  %6561 = vrot.lane.b32.xlu0 %v6560_v1, %s6714_s17  ;;  %v7761_v44 = vrot.slane %v2449_v24, %v7017_v49  ;;  %v6590_v24 = vpack.i.bf16 %v1907_v37, %v1685_v36  ;;  %v2365_v51 = vcombine.high %v7779_v28, %v6700_v0  ;;  %v6719_v41 = vmov 0.0|0.0  }
 0x371   : > { %v1908_v1 = vcombine.high %v7592_v61, %v6700_v0  ;;  %v2139_v13 = vcombine.high %v7784_v53, %v6700_v0  ;;  %v7805_v16 = vrot.slane %v1992_v3, %v7017_v49  ;;  %v1800_v18 = vcombine.high %v7563_v62, %v6700_v0  ;;  %6428 = vmatprep.subr.bf16.mxu0 %v6719_v41 }
 0x372   : > { %v2366_v40 = vcombine.high %v7641_v2, %v6700_v0  ;;  %v1559_v61 = vcombine.high %v7573_v22, %v6700_v0  ;;  %v7821_v20 = vrot.slane %v2214_v47, %v7017_v49  ;;  %v1801_v12 = vcombine.high %v7599_v52, %v6700_v0 }
 0x373   : > { %v6605_v34 = vpack.i.bf16 %v1908_v1, %v1686_v50  ;;  %v6595_v27 = vpack.i.bf16 %v2365_v51, %v2139_v13  ;;  %v2024_v2 = vcombine.high %v7805_v16, %v6700_v0  ;;  %v2367_v47 = vcombine.high %v7638_v30, %v6700_v0 }
 0x374   : > { %6571 = vrot.lane.b32.xlu1 %v6570_v39, %s6715_s20  ;;  %2489 = vrot.lane.b32.xlu0 %v7761_v44, %s6712_s22  ;;  %v2140_v39 = vcombine.high %v7647_v14, %v6700_v0  ;;  %v6600_v62 = vpack.i.bf16 %v1800_v18, %v1559_v61  ;;  %v2246_v48 = vcombine.high %v7821_v20, %v6700_v0  ;;  %s6733_s22 = smov 90  }
 0x375   : > { %v6620_v14 = vpack.i.bf16 %v1801_v12, %v1560_v57  ;;  %v2025_v52 = vcombine.high %v7675_v6, %v6700_v0  ;;  %v2141_v32 = vcombine.high %v7644_v21, %v6700_v0  ;;  %v2247_v59 = vcombine.high %v7693_v11, %v6700_v0 }
 0x376   : > { %v6615_v38 = vpack.i.bf16 %v2366_v40, %v2140_v39  ;;  %v6610_v22 = vpack.i.bf16 %v2246_v48, %v2024_v2  ;;  %v2433_v19 = vcombine.high %v7663_v54, %v7679_v26  ;;  %v2368_v30 = vcombine.high %v7712_v42, %v6700_v0 }
 0x377   : > { %v6630_v36 = vpack.i.bf16 %v2367_v47, %v2141_v32  ;;  %v2417_v6 = vcombine.high %v7665_v4, %v7681_v45  ;;  %v2448_v21 = vcombine.low %v7718_v33, %v7715_v60  ;;  %v2142_v11 = vcombine.high %v7735_v46, %v6700_v0 }
 0x378   : > { %6576 = vrot.lane.b32.xlu1 %v6575_v56, %s6715_s20  ;;  %6581 = vrot.lane.b32.xlu0 %v6580_v23, %s6716_s21  ;;  %v6625_v56 = vpack.i.bf16 %v2247_v59, %v2025_v52  ;;  %v2026_v23 = vcombine.high %v7672_v43, %v6700_v0  ;;  %v2248_v54 = vcombine.high %v7687_v7, %v6700_v0 }
 0x379   : > { %v2447_v26 = vrot.slane %v2433_v19, %v6986_v35  ;;  %v6640_v4 = vpack.i.bf16 %v2368_v30, %v2142_v11  ;;  %v2431_v45 = vrot.slane %v2417_v6, %v6986_v35  ;;  %v2027_v60 = vcombine.high %v7709_v63, %v6700_v0 }
 0x37a   : > { %v6635_v42 = vpack.i.bf16 %v2248_v54, %v2026_v23  ;;  %v7865_v43 = vrot.slane %v2448_v21, %v7017_v49  ;;  %v2249_v33 = vcombine.high %v7732_v10, %v6700_v0  ;;  %v2481_v37 = vcombine.high %v7761_v44, %v6700_v0 }
 0x37b   : > { %v2464_v7 = vcombine.low %v2431_v45, %v2447_v26  ;;  %v2465_v63 = vcombine.high %v2431_v45, %v2447_v26 }
 0x37c   : > { %6586 = vrot.lane.b32.xlu1 %v6585_v15, %s6716_s21  ;;  %6591 = vrot.lane.b32.xlu0 %v6590_v24, %s6717_s23  ;;  %v6645_v46 = vpack.i.bf16 %v2249_v33, %v2027_v60  ;;  %v2480_v55 = vcombine.high %v7865_v43, %v6700_v0 }
 0x37d   : > { %v2472_v9 = vrot.slane %v2464_v7, %v7017_v49  ;;  %v2479_v10 = vrot.slane %v2465_v63, %v7017_v49 }
 0x37f   : > { %v2482_v50 = vcombine.high %v2472_v9, %v6700_v0  ;;  %v2483_v3 = vcombine.high %v2479_v10, %v6700_v0 }
 0x380   : > { %6596 = vrot.lane.b32.xlu1 %v6595_v27, %s6715_s20  ;;  %6606 = vrot.lane.b32.xlu0 %v6605_v34, %s6718_s24 }
 0x384   : > { %6601 = vrot.lane.b32.xlu1 %v6600_v62, %s6717_s23  ;;  %6616 = vrot.lane.b32.xlu0 %v6615_v38, %s6716_s21 }
 0x388   : > { %6611 = vrot.lane.b32.xlu1 %v6610_v22, %s6715_s20  ;;  %6621 = vrot.lane.b32.xlu0 %v6620_v14, %s6718_s24 }
 0x38c   : > { %6626 = vrot.lane.b32.xlu1 %v6625_v56, %s6716_s21  ;;  %6631 = vrot.lane.b32.xlu0 %v6630_v36, %s6717_s23 }
 0x390   : > { %6636 = vrot.lane.b32.xlu1 %v6635_v42, %s6717_s23  ;;  %6641 = vrot.lane.b32.xlu0 %v6640_v4, %s6718_s24 }
 0x394   : > { %6646 = vrot.lane.b32.xlu0 %v6645_v46, %s6718_s24  ;;  %2485 = vrot.lane.b32.xlu1 %v2480_v55, %s6715_s20  ;;  %s6736_s20 = smov 80  }
 0x398   : > { %2497 = vrot.lane.b32.xlu0 %v2472_v9, %s6713_s16  ;;  %2493 = vrot.lane.b32.xlu1 %v2481_v37, %s6716_s21  ;;  %s6734_s16 = smov 84   ;;  %s6737_s21 = smov 82  }
 0x39c   : > { %2505 = vrot.lane.b32.xlu0 %v2479_v10, %s6714_s17  ;;  %2501 = vrot.lane.b32.xlu1 %v2482_v50, %s6717_s23  ;;  %s6735_s17 = smov 86   ;;  %s6738_s23 = smov 76  }
 0x3a0   : > { %2509 = vrot.lane.b32.xlu1 %v2483_v3, %s6718_s24  ;;  %s6739_s24 = smov 78  }
 0x3bf   : > { %v6512_v15 = vpop.permute.xlu0 %6511 }
 0x3c0   : > { %v6514_v47 = vunpack.i.h.bf16 %v6512_v15  ;;  %v6513_v52 = vunpack.i.l.bf16 %v6512_v15 }
 0x3c3   : > { %v7889_v44 = vpop.permute.xlu0 %6521 }
 0x3c4   : > { %v6524_v36 = vunpack.i.h.bf16 %v7889_v44  ;;  %v6523_v30 = vunpack.i.l.bf16 %v7889_v44 }
 0x3c6   : > { %v7887_v24 = vpop.permute.xlu1 %6516 }
 0x3c7   : > { %v7893_v1 = vpop.permute.xlu0 %6526  ;;  %v6518_v23 = vunpack.i.l.bf16 %v7887_v24 }
 0x3c8   : > { %v6529_v6 = vunpack.i.h.bf16 %v7893_v1  ;;  %v6528_v56 = vunpack.i.l.bf16 %v7893_v1 }
 0x3ca   : > { %v7891_v51 = vpop.permute.xlu1 %6531 }
 0x3cb   : > { %v6534_v26 = vunpack.i.h.bf16 %v7891_v51  ;;  %v6533_v60 = vunpack.i.l.bf16 %v7891_v51 }
 0x3ce   : > { %v7895_v13 = vpop.permute.xlu1 %6541 }
 0x3cf   : > { %v6544_v33 = vunpack.i.h.bf16 %v7895_v13  ;;  %v6543_v10 = vunpack.i.l.bf16 %v7895_v13 }
 0x3d7   : > { %v7897_v34 = vpop.permute.xlu0 %6536  ;;  %v7899_v27 = vpop.permute.xlu1 %6551 }
 0x3d8   : > { %v6539_v50 = vunpack.i.h.bf16 %v7897_v34  ;;  %v6538_v3 = vunpack.i.l.bf16 %v7897_v34 }
 0x3de   : > { %v7901_v18 = vpop.permute.xlu0 %6546  ;;  %v7903_v40 = vpop.permute.xlu1 %6556 }
 0x3e2   : > { %v7905_v61 = vpop.permute.xlu0 %6561  ;;  %v7907_v39 = vpop.permute.xlu1 %6566 }
 0x3e6   : > { %v7909_v62 = vpop.permute.xlu0 %2489  ;;  %v6572_v38 = vpop.permute.xlu1 %6571 }
 0x3e7   : > { %v6573_v2 = vunpack.i.l.bf16 %v6572_v38  ;;  %v6574_v12 = vunpack.i.h.bf16 %v6572_v38 }
 0x3e9   : > { %v1715_v22 = vsel %vm1589_vm3, %v7696_v17, %v6573_v2  ;;  %v1937_v32 = vsel %vm1589_vm3, %v7724_v5, %v6574_v12  ;;  %v6519_v17 = vunpack.i.h.bf16 %v7887_v24 }
 0x3ea   : > { %v6582_v48 = vpop.permute.xlu0 %6581  ;;  %v6577_v57 = vpop.permute.xlu1 %6576  ;;  %v1716_v11 = vsel %vm1591_vm4, %v1715_v22, %v6513_v52  ;;  %v1938_v45 = vsel %vm1591_vm4, %v1937_v32, %v6514_v47  ;;  %v6553_v22 = vunpack.i.l.bf16 %v7899_v27 }
 0x3eb   : > { %v6583_v14 = vunpack.i.l.bf16 %v6582_v48  ;;  %v6584_v59 = vunpack.i.h.bf16 %v6582_v48  ;;  %v6579_v19 = vunpack.i.h.bf16 %v6577_v57  ;;  %v6578_v21 = vunpack.i.l.bf16 %v6577_v57 }
 0x3ed   : > { %v1717_v4 = vsel %vm1593_vm5, %v1716_v11, %v6583_v14  ;;  %v1939_v7 = vsel %vm1593_vm5, %v1938_v45, %v6584_v59  ;;  %v1830_v46 = vsel %vm1589_vm3, %v7740_v31, %v6579_v19  ;;  %v1590_v55 = vsel %vm1589_vm3, %v7756_v58, %v6578_v21 }
 0x3ee   : > { %v6592_v54 = vpop.permute.xlu0 %6591  ;;  %v6587_v5 = vpop.permute.xlu1 %6586  ;;  %v1718_v15 = vsel %vm1595_vm7, %v1717_v4, %v6523_v30  ;;  %v6554_v58 = vunpack.i.h.bf16 %v7899_v27  ;;  %v1940_v2 = vsel %vm1595_vm7, %v1939_v7, %v6524_v36  ;;  %v1592_v13 = vsel %vm1591_vm4, %v1590_v55, %v6518_v23 }
 0x3ef   : > { %v6593_v42 = vunpack.i.l.bf16 %v6592_v54  ;;  %v6594_v63 = vunpack.i.h.bf16 %v6592_v54  ;;  %v6589_v9 = vunpack.i.h.bf16 %v6587_v5  ;;  %v6588_v37 = vunpack.i.l.bf16 %v6587_v5 }
 0x3f0   : > { %v1831_v12 = vsel %vm1591_vm4, %v1830_v46, %v6519_v17  ;;  %v6549_v45 = vunpack.i.h.bf16 %v7901_v18 }
 0x3f1   : > { %v1719_v51 = vsel %vm1597_vm8, %v1718_v15, %v6593_v42  ;;  %v1941_v34 = vsel %vm1597_vm8, %v1940_v2, %v6594_v63  ;;  %v1594_v48 = vsel %vm1593_vm5, %v1592_v13, %v6588_v37  ;;  %v1832_v57 = vsel %vm1593_vm5, %v1831_v12, %v6589_v9 }
 0x3f2   : > { %v6607_v24 = vpop.permute.xlu0 %6606  ;;  %v6597_v44 = vpop.permute.xlu1 %6596  ;;  %v1720_v19 = vsel %vm1599_vm9, %v1719_v51, %v6533_v60  ;;  %v1596_v11 = vsel %vm1595_vm7, %v1594_v48, %v6528_v56  ;;  %v1833_v27 = vsel %vm1595_vm7, %v1832_v57, %v6529_v6  ;;  %v1942_v54 = vsel %vm1599_vm9, %v1941_v34, %v6534_v26 }
 0x3f3   : > { %v6608_v1 = vunpack.i.l.bf16 %v6607_v24  ;;  %v6599_v31 = vunpack.i.h.bf16 %v6597_v44  ;;  %v6598_v38 = vunpack.i.l.bf16 %v6597_v44  ;;  %v6609_v47 = vunpack.i.h.bf16 %v6607_v24 }
 0x3f5   : > { %v2397_v14 = vsel %vm1589_vm3, %v7779_v28, %v6599_v31  ;;  %v2171_v52 = vsel %vm1589_vm3, %v7784_v53, %v6598_v38  ;;  %v1721_v17 = vsel %vm1601_vm10, %v1720_v19, %v6608_v1  ;;  %v1943_v4 = vsel %vm1601_vm10, %v1942_v54, %v6609_v47 }
 0x3f6   : > { %v6617_v32 = vpop.permute.xlu0 %6616  ;;  %v6602_v59 = vpop.permute.xlu1 %6601  ;;  %v2172_v28 = vsel %vm1591_vm4, %v2171_v52, %v6538_v3  ;;  %v2398_v60 = vsel %vm1591_vm4, %v2397_v14, %v6539_v50  ;;  %v2520_v46 = vrot.slane %v1721_v17, 4  ;;  %v2523_v15 = vrot.slane %v1943_v4, 4 }
 0x3f7   : > { %v6618_v36 = vunpack.i.l.bf16 %v6617_v32  ;;  %v6604_v30 = vunpack.i.h.bf16 %v6602_v59  ;;  %v6603_v21 = vunpack.i.l.bf16 %v6602_v59  ;;  %v6619_v23 = vunpack.i.h.bf16 %v6617_v32 }
 0x3f8   : > { %v6548_v1 = vunpack.i.l.bf16 %v7901_v18  ;;  %v6559_v32 = vunpack.i.h.bf16 %v7903_v40  ;;  %v6558_v59 = vunpack.i.l.bf16 %v7903_v40  ;;  %v6564_v19 = vunpack.i.h.bf16 %v7905_v61 }
 0x3f9   : > { %v1598_v53 = vsel %vm1597_vm8, %v1596_v11, %v6603_v21  ;;  %v1834_v5 = vsel %vm1597_vm8, %v1833_v27, %v6604_v30  ;;  %v2173_v42 = vsel %vm1593_vm5, %v2172_v28, %v6618_v36  ;;  %v2399_v9 = vsel %vm1593_vm5, %v2398_v60, %v6619_v23 }
 0x3fa   : > { %v6622_v7 = vpop.permute.xlu0 %6621  ;;  %v6612_v56 = vpop.permute.xlu1 %6611  ;;  %v1600_v37 = vsel %vm1599_vm9, %v1598_v53, %v6543_v10  ;;  %v1835_v3 = vsel %vm1599_vm9, %v1834_v5, %v6544_v33  ;;  %v2174_v38 = vsel %vm1595_vm7, %v2173_v42, %v6553_v22 }
 0x3fb   : > { %v6624_v6 = vunpack.i.h.bf16 %v6622_v7  ;;  %v6623_v55 = vunpack.i.l.bf16 %v6622_v7  ;;  %v6614_v26 = vunpack.i.h.bf16 %v6612_v56  ;;  %v6613_v63 = vunpack.i.l.bf16 %v6612_v56 }
 0x3fd   : > { %v2278_v24 = vsel %vm1589_vm3, %v7821_v20, %v6614_v26  ;;  %v2056_v50 = vsel %vm1589_vm3, %v7805_v16, %v6613_v63  ;;  %v1602_v44 = vsel %vm1601_vm10, %v1600_v37, %v6623_v55  ;;  %v1836_v51 = vsel %vm1601_vm10, %v1835_v3, %v6624_v6 }
 0x3fe   : > { %v6632_v31 = vpop.permute.xlu0 %6631  ;;  %v6627_v2 = vpop.permute.xlu1 %6626  ;;  %v2532_v10 = vsel %vm2531_vm11, %v1602_v44, %v2520_v46  ;;  %v2533_v33 = vsel %vm2531_vm11, %v1836_v51, %v2523_v15  ;;  %v2400_v16 = vsel %vm1595_vm7, %v2399_v9, %v6554_v58  ;;  %v2057_v48 = vsel %vm1591_vm4, %v2056_v50, %v6548_v1 }
 0x3ff   : > { %v6634_v13 = vunpack.i.h.bf16 %v6632_v31  ;;  %v6633_v12 = vunpack.i.l.bf16 %v6632_v31  ;;  %v6629_v20 = vunpack.i.h.bf16 %v6627_v2  ;;  %v6628_v34 = vunpack.i.l.bf16 %v6627_v2 }
 0x400   : > { %v2279_v57 = vsel %vm1591_vm4, %v2278_v24, %v6549_v45  ;;  %v6429_v47 = vpack.c.bf16 %v2533_v33, %v2532_v10  ;;  %v6563_v58 = vunpack.i.l.bf16 %v7905_v61  ;;  %v6569_v45 = vunpack.i.h.bf16 %v7907_v39  ;;  %v2536_v10 = vld [vmem:[%s8948_s3] sm:$0xff] }
 0x401   : > { %v2175_v18 = vsel %vm1597_vm8, %v2174_v38, %v6633_v12  ;;  %v2401_v22 = vsel %vm1597_vm8, %v2400_v16, %v6634_v13  ;;  %v2058_v14 = vsel %vm1593_vm5, %v2057_v48, %v6628_v34  ;;  %v2280_v52 = vsel %vm1593_vm5, %v2279_v57, %v6629_v20 }
 0x402   : > { %6430 = vmatpush3.bf16.msra.mxu0 %v6429_v47  ;;  %v6642_v36 = vpop.permute.xlu0 %6641  ;;  %v6637_v30 = vpop.permute.xlu1 %6636  ;;  %v2176_v27 = vsel %vm1599_vm9, %v2175_v18, %v6563_v58  ;;  %v2402_v54 = vsel %vm1599_vm9, %v2401_v22, %v6564_v19  ;;  %v2059_v28 = vsel %vm1595_vm7, %v2058_v14, %v6558_v59  ;;  %v2281_v40 = vsel %vm1595_vm7, %v2280_v52, %v6559_v32 }
 0x403   : > { %v6644_v21 = vunpack.i.h.bf16 %v6642_v36  ;;  %v6643_v17 = vunpack.i.l.bf16 %v6642_v36  ;;  %v6639_v23 = vunpack.i.h.bf16 %v6637_v30  ;;  %v6638_v11 = vunpack.i.l.bf16 %v6637_v30  ;;  %6431 = vmatprep.subr.bf16.mxu0 %v6719_v41 }
 0x404   : > { %v6568_v41 = vunpack.i.l.bf16 %v7907_v39 }
 0x405   : > { %v2177_v53 = vsel %vm1601_vm10, %v2176_v27, %v6643_v17  ;;  %v2403_v61 = vsel %vm1601_vm10, %v2402_v54, %v6644_v21  ;;  %v2060_v5 = vsel %vm1597_vm8, %v2059_v28, %v6638_v11  ;;  %v2282_v4 = vsel %vm1597_vm8, %v2281_v40, %v6639_v23 }
 0x406   : > { %v6647_v42 = vpop.permute.xlu0 %6646  ;;  %v2486_v60 = vpop.permute.xlu1 %2485  ;;  %v2526_v6 = vrot.slane %v2177_v53, 4  ;;  %v2529_v55 = vrot.slane %v2403_v61, 4  ;;  %v2061_v26 = vsel %vm1599_vm9, %v2060_v5, %v6568_v41  ;;  %v2283_v63 = vsel %vm1599_vm9, %v2282_v4, %v6569_v45 }
 0x407   : > { %v6649_v7 = vunpack.i.h.bf16 %v6647_v42  ;;  %v6648_v56 = vunpack.i.l.bf16 %v6647_v42  ;;  %v2512_v46 = vsel %vm1589_vm3, %v7865_v43, %v2486_v60  ;;  %vm6128_vm3 = vcmask 589312  }
 0x408   : > { %v2513_v39 = vsel %vm1591_vm4, %v2512_v46, %v7909_v62  ;;  %vm6135_vm4 = vcmask 654912  }
 0x409   : > { %v2062_v9 = vsel %vm1601_vm10, %v2061_v26, %v6648_v56  ;;  %v2284_v37 = vsel %vm1601_vm10, %v2283_v63, %v6649_v7 }
 0x40a   : > { %v2498_v3 = vpop.permute.xlu0 %2497  ;;  %v2494_v15 = vpop.permute.xlu1 %2493  ;;  %v2534_v24 = vsel %vm2531_vm11, %v2062_v9, %v2526_v6  ;;  %v2535_v50 = vsel %vm2531_vm11, %v2284_v37, %v2529_v55 }
 0x40b   : > { %v2514_v43 = vsel %vm1593_vm5, %v2513_v39, %v2494_v15  ;;  %v6432_v44 = vpack.c.bf16 %v2535_v50, %v2534_v24  ;;  %vm6142_vm5 = vcmask 720512  }
 0x40c   : > { %v2515_v51 = vsel %vm1595_vm7, %v2514_v43, %v2498_v3  ;;  %vm6149_vm7 = vcmask 786112  }
 0x40d   : > { %6433 = vmatpush3.bf16.msra.mxu0 %v6432_v44 }
 0x40e   : > { %v2502_v1 = vpop.permute.xlu1 %2501  ;;  %6423 = vmatprep.subr.mxu0 %v6700_v0  ;;  %v2506_v31 = vpop.permute.xlu0 %2505  ;;  %v2537_v0 = vld [vmem:[%s8949_s4] sm:$0xff] }
 0x40f   : > { %v2516_v38 = vsel %vm1597_vm8, %v2515_v51, %v2502_v1  ;;  %vm6156_vm8 = vcmask 851712  }
 0x410   : > { %v2517_v2 = vsel %vm1599_vm9, %v2516_v38, %v2506_v31  ;;  %vm6163_vm9 = vcmask 917312  }
 0x412   : > { %v2510_v62 = vpop.permute.xlu1 %2509 }
 0x413   : > { %v2518_v33 = vsel %vm1601_vm10, %v2517_v2, %v2510_v62  ;;  %vm6170_vm10 = vcmask 982912  }
 0x414   : > { %6424 = vmatpush3.msk.msra.mxu0 %vm2531_vm11, %v2518_v33  ;;  %vm6177_vm11 = vcmask 1048512  }
 0x415   : > { %6426 = vmatmul.mubr.msk.f32.vlgmr.msra.gmra.mrb[0].mxu0 %vm2538_vm12, %v2536_v10  ;;  %vm6276_vm12 = vcmp.lt.s32.totalorder %v388_v25, 256 }
 0x4e8   : > { %v2611_v13 = vpop.f32.mrb[0].mxu0 }
 0x4e9   : > { %v2612_v12 = vadd.f32 %v2611_v13, %v2537_v0  ;;  %v6427_v20 = vpop.f32.mrb[1].mxu0 }
 0x4eb   : > { %v8019_v34 = vmax.f32 %v2612_v12, 0.0 }
 0x4ed   : > { %2620 = vrot.lane.b32.xlu1 %v8019_v34, %s6704_s8  ;;  %2617 = vrot.lane.b32.xlu0 %v8019_v34, %s6703_s27  ;;  %s6723_s27 = smov 110   ;;  %s6725_s8 = smov 106  }
 0x4f1   : > { %2626 = vrot.lane.b32.xlu1 %v8019_v34, %s6705_s9  ;;  %2623 = vrot.lane.b32.xlu0 %v8019_v34, %s6706_s10  ;;  %s6726_s9 = smov 100   ;;  %s6727_s10 = smov 102  }
 0x4f5   : > { %2632 = vrot.lane.b32.xlu1 %v8019_v34, %s6707_s11  ;;  %2629 = vrot.lane.b32.xlu0 %v8019_v34, %s6708_s12  ;;  %s6728_s11 = smov 96   ;;  %s6729_s12 = smov 98  }
 0x4f9   : > { %2638 = vrot.lane.b32.xlu1 %v8019_v34, %s6721_s30  ;;  %2635 = vrot.lane.b32.xlu0 %v8019_v34, %s6709_s14  ;;  %s6731_s14 = smov 94   ;;  %s6744_s30 = smov 66  }
 0x4fd   : > { %2644 = vrot.lane.b32.xlu1 %v8019_v34, %s6722_s6  ;;  %2641 = vrot.lane.b32.xlu0 %v8019_v34, %s6723_s27  ;;  %s6365_s6 = sshll.u32 %s8961_s19, 1 }
 0x501   : > { %2650 = vrot.lane.b32.xlu1 %v8019_v34, %s6724_s7  ;;  %2647 = vrot.lane.b32.xlu0 %v8019_v34, %s6725_s8  ;;  %s249_s8 = scalar_lea.vmem %s8950_s5, %s6365_s6 }
 0x505   : > { %2656 = vrot.lane.b32.xlu1 %v8019_v34, %s6726_s9  ;;  %2653 = vrot.lane.b32.xlu0 %v8019_v34, %s6727_s10 }
 0x509   : > { %2662 = vrot.lane.b32.xlu1 %v8019_v34, %s6728_s11  ;;  %2659 = vrot.lane.b32.xlu0 %v8019_v34, %s6729_s12 }
 0x50d   : > { %2668 = vrot.lane.b32.xlu1 %v8019_v34, %s6730_s13  ;;  %2665 = vrot.lane.b32.xlu0 %v8019_v34, %s6731_s14 }
 0x511   : > { %2674 = vrot.lane.b32.xlu1 %v8019_v34, %s6732_s15  ;;  %2671 = vrot.lane.b32.xlu0 %v8019_v34, %s6733_s22 }
 0x515   : > { %2680 = vrot.lane.b32.xlu1 %v8019_v34, %s6734_s16  ;;  %2677 = vrot.lane.b32.xlu0 %v8019_v34, %s6735_s17 }
 0x519   : > { %2686 = vrot.lane.b32.xlu1 %v8019_v34, %s6736_s20  ;;  %2683 = vrot.lane.b32.xlu0 %v8019_v34, %s6737_s21 }
 0x51d   : > { %2692 = vrot.lane.b32.xlu1 %v8019_v34, %s6738_s23  ;;  %2689 = vrot.lane.b32.xlu0 %v8019_v34, %s6739_s24 }
 0x521   : > { %2698 = vrot.lane.b32.xlu1 %v8019_v34, %s6740_s25  ;;  %2695 = vrot.lane.b32.xlu0 %v8019_v34, %s6741_s26 }
 0x525   : > { %2704 = vrot.lane.b32.xlu1 %v8019_v34, %s6742_s28  ;;  %2701 = vrot.lane.b32.xlu0 %v8019_v34, %s6743_s29 }
 0x529   : > { %2707 = vrot.lane.b32.xlu0 %v8019_v34, %s6744_s30 }
 0x55f   : > { %v2621_v16 = vpop.permute.xlu1 %2620  ;;  %v2618_v48 = vpop.permute.xlu0 %2617 }
 0x560   : > { %v2710_v14 = vcombine.low %v8019_v34, %v2621_v16  ;;  %v2711_v59 = vcombine.high %v8019_v34, %v2621_v16 }
 0x562   : > { %v8065_v30 = vrot.slane %v2710_v14, %v6986_v35  ;;  %v2725_v54 = vrot.slane %v2711_v59, %v6986_v35 }
 0x563   : > { %v2627_v57 = vpop.permute.xlu1 %2626  ;;  %v2624_v47 = vpop.permute.xlu0 %2623 }
 0x564   : > { %v2727_v18 = vcombine.high %v2618_v48, %v2624_v47  ;;  %v2726_v22 = vcombine.low %v2618_v48, %v2624_v47 }
 0x566   : > { %v8062_v19 = vrot.slane %v2726_v22, %v6986_v35  ;;  %v2741_v21 = vrot.slane %v2727_v18, %v6986_v35 }
 0x567   : > { %v2633_v52 = vpop.permute.xlu1 %2632  ;;  %v2630_v32 = vpop.permute.xlu0 %2629 }
 0x568   : > { %v2742_v58 = vcombine.low %v2627_v57, %v2633_v52  ;;  %v2743_v36 = vcombine.high %v2627_v57, %v2633_v52  ;;  %v2774_v28 = vcombine.low %v8065_v30, %v8062_v19  ;;  %v2790_v4 = vcombine.low %v2725_v54, %v2741_v21 }
 0x569   : > { %v2791_v26 = vcombine.high %v2725_v54, %v2741_v21 }
 0x56a   : > { %v8072_v40 = vrot.slane %v2742_v58, %v6986_v35  ;;  %v2757_v53 = vrot.slane %v2743_v36, %v6986_v35  ;;  %v8082_v46 = vrot.slane %v2774_v28, %v7017_v49  ;;  %v8091_v37 = vrot.slane %v2790_v4, %v7017_v49 }
 0x56b   : > { %v2639_v17 = vpop.permute.xlu1 %2638  ;;  %v2636_v23 = vpop.permute.xlu0 %2635  ;;  %v8106_v62 = vrot.slane %v2791_v26, %v7017_v49 }
 0x56c   : > { %v2758_v11 = vcombine.low %v2630_v32, %v2636_v23  ;;  %v2759_v27 = vcombine.high %v2630_v32, %v2636_v23 }
 0x56e   : > { %v8076_v61 = vrot.slane %v2758_v11, %v6986_v35  ;;  %v2773_v5 = vrot.slane %v2759_v27, %v6986_v35 }
 0x56f   : > { %v2645_v45 = vpop.permute.xlu1 %2644  ;;  %v2642_v41 = vpop.permute.xlu0 %2641 }
 0x570   : > { %v2806_v42 = vcombine.low %v8072_v40, %v8076_v61  ;;  %v2822_v60 = vcombine.low %v2757_v53, %v2773_v5  ;;  %v2823_v7 = vcombine.high %v2757_v53, %v2773_v5  ;;  %v2847_v56 = vcombine.high %v2639_v17, %v2645_v45 }
 0x571   : > { %v2846_v31 = vcombine.low %v2639_v17, %v2645_v45 }
 0x572   : > { %v8085_v6 = vrot.slane %v2806_v42, %v7017_v49  ;;  %v8088_v55 = vrot.slane %v2822_v60, %v7017_v49  ;;  %v8100_v43 = vrot.slane %v2823_v7, %v7017_v49  ;;  %v2861_v44 = vrot.slane %v2847_v56, %v6986_v35 }
 0x573   : > { %v2651_v63 = vpop.permute.xlu1 %2650  ;;  %v2648_v9 = vpop.permute.xlu0 %2647  ;;  %v8116_v16 = vrot.slane %v2846_v31, %v6986_v35 }
 0x574   : > { %v2863_v3 = vcombine.high %v2642_v41, %v2648_v9  ;;  %v2838_v39 = vcombine.low %v8082_v46, %v8085_v6  ;;  %v2862_v15 = vcombine.low %v2642_v41, %v2648_v9  ;;  %v2842_v24 = vcombine.low %v8091_v37, %v8088_v55 }
 0x575   : > { %v2843_v50 = vcombine.high %v8091_v37, %v8088_v55  ;;  %v2844_v13 = vcombine.low %v8106_v62, %v8100_v43  ;;  %v2845_v12 = vcombine.high %v8106_v62, %v8100_v43 }
 0x576   : > { %v2877_v51 = vrot.slane %v2863_v3, %v6986_v35  ;;  %v3254_v1 = vsel %vm519_vm6, %v2838_v39, -inf  ;;  %v8109_v0 = vrot.slane %v2862_v15, %v6986_v35 }
 0x577   : > { %v2657_v38 = vpop.permute.xlu1 %2656  ;;  %3255 = vmax.xlane.f32.xlu1 %v3254_v1  ;;  %v2654_v2 = vpop.permute.xlu0 %2653 }
 0x578   : > { %v2926_v10 = vcombine.low %v2861_v44, %v2877_v51  ;;  %v2927_v33 = vcombine.high %v2861_v44, %v2877_v51  ;;  %v2878_v20 = vcombine.low %v2651_v63, %v2657_v38  ;;  %v2879_v34 = vcombine.high %v2651_v63, %v2657_v38 }
 0x579   : > { %v2910_v22 = vcombine.low %v8116_v16, %v8109_v0 }
 0x57a   : > { %v8123_v14 = vrot.slane %v2878_v20, %v6986_v35  ;;  %v2893_v52 = vrot.slane %v2879_v34, %v6986_v35  ;;  %v8150_v5 = vrot.slane %v2926_v10, %v7017_v49  ;;  %v8169_v63 = vrot.slane %v2927_v33, %v7017_v49 }
 0x57b   : > { %v8118_v48 = vpop.permute.xlu1 %2662  ;;  %v2660_v57 = vpop.permute.xlu0 %2659  ;;  %v8137_v11 = vrot.slane %v2910_v22, %v7017_v49 }
 0x57c   : > { %v2894_v47 = vcombine.low %v2654_v2, %v2660_v57  ;;  %v2895_v18 = vcombine.high %v2654_v2, %v2660_v57  ;;  %v6745_v2 = vmov 0  }
 0x57d   : > { %6650 = vset.pattern.permute.xlu0 %v6745_v2  ;;  %6651 = vset.pattern.permute.xlu1 %v6745_v2 }
 0x57e   : > { %v8127_v32 = vrot.slane %v2894_v47, %v6986_v35  ;;  %v2909_v59 = vrot.slane %v2895_v18, %v6986_v35 }
 0x57f   : > { %v8130_v58 = vpop.permute.xlu1 %2668  ;;  %v8132_v36 = vpop.permute.xlu0 %2665 }
 0x580   : > { %v2942_v21 = vcombine.low %v8123_v14, %v8127_v32  ;;  %v2958_v17 = vcombine.low %v2893_v52, %v2909_v59  ;;  %v2959_v23 = vcombine.high %v2893_v52, %v2909_v59  ;;  %v2982_v9 = vcombine.low %v8118_v48, %v8130_v58 }
 0x582   : > { %v8140_v27 = vrot.slane %v2942_v21, %v7017_v49  ;;  %v8143_v54 = vrot.slane %v2958_v17, %v7017_v49  ;;  %v8159_v42 = vrot.slane %v2959_v23, %v7017_v49  ;;  %v2990_v31 = vrot.slane %v2982_v9, %v6986_v35 }
 0x583   : > { %v8145_v28 = vpop.permute.xlu1 %2674  ;;  %v8147_v53 = vpop.permute.xlu0 %2671  ;;  %v2807_v17 = vcombine.high %v8072_v40, %v8076_v61 }
 0x584   : > { %v2974_v4 = vcombine.low %v8137_v11, %v8140_v27  ;;  %v2978_v45 = vcombine.low %v8150_v5, %v8143_v54  ;;  %v2979_v41 = vcombine.high %v8150_v5, %v8143_v54  ;;  %v2998_v60 = vcombine.low %v8132_v36, %v8147_v53 }
 0x585   : > { %v2980_v3 = vcombine.low %v8169_v63, %v8159_v42  ;;  %v2981_v39 = vcombine.high %v8169_v63, %v8159_v42  ;;  %v2821_v61 = vrot.slane %v2807_v17, %v7017_v49  ;;  %v8331_v42 = vsub.s32 3, %v6977_v29 }
 0x586   : > { %v3257_v7 = vsel %vm519_vm6, %v2974_v4, -inf  ;;  %v3006_v15 = vrot.slane %v2998_v60, %v6986_v35  ;;  %v2839_v60 = vcombine.high %v8082_v46, %v8085_v6  ;;  %v8334_v63 = vsub.s32 4, %v6977_v29 }
 0x587   : > { %v8164_v56 = vpop.permute.xlu1 %2680  ;;  %3258 = vmax.xlane.f32.xlu0 %v3257_v7  ;;  %v8166_v26 = vpop.permute.xlu0 %2677  ;;  %v2775_v7 = vcombine.high %v8065_v30, %v8062_v19  ;;  %v3329_v62 = vsel %vm519_vm6, %v2980_v3, -inf  ;;  %v3341_v5 = vsel %vm519_vm6, %v2981_v39, -inf  ;;  %v8322_v3 = vsub.s32 0, %v6977_v29 }
 0x588   : > { %v3014_v44 = vcombine.low %v8145_v28, %v8164_v56  ;;  %v3046_v10 = vcombine.low %v2990_v31, %v3006_v15  ;;  %v3266_v46 = vsel %vm519_vm6, %v2839_v60, -inf  ;;  %v8337_v39 = vsub.s32 5, %v6977_v29 }
 0x589   : > { %v2789_v30 = vrot.slane %v2775_v7, %v7017_v49 }
 0x58a   : > { %v3022_v33 = vrot.slane %v3014_v44, %v6986_v35  ;;  %v3054_v18 = vrot.slane %v3046_v10, %v7017_v49 }
 0x58b   : > { %v8180_v51 = vpop.permute.xlu1 %2686  ;;  %v2684_v1 = vpop.permute.xlu0 %2683 }
 0x58c   : > { %v3030_v38 = vcombine.low %v8166_v26, %v2684_v1 }
 0x58e   : > { %v3038_v20 = vrot.slane %v3030_v38, %v6986_v35 }
 0x58f   : > { %v8186_v34 = vpop.permute.xlu1 %2692  ;;  %v8188_v57 = vpop.permute.xlu0 %2689 }
 0x590   : > { %v3078_v47 = vcombine.low %v3022_v33, %v3038_v20  ;;  %v3118_v38 = vcombine.low %v8180_v51, %v8186_v34  ;;  %v3079_v40 = vcombine.high %v3022_v33, %v3038_v20  ;;  %v2840_v20 = vcombine.low %v2789_v30, %v2821_v61 }
 0x592   : > { %v3086_v22 = vrot.slane %v3078_v47, %v7017_v49  ;;  %v3047_v47 = vcombine.high %v2990_v31, %v3006_v15  ;;  %v3093_v17 = vrot.slane %v3079_v40, %v7017_v49  ;;  %v3278_v15 = vsel %vm519_vm6, %v2840_v20, -inf }
 0x593   : > { %v8192_v52 = vpop.permute.xlu1 %2698  ;;  %v8194_v59 = vpop.permute.xlu0 %2695  ;;  %v3031_v31 = vcombine.high %v8166_v26, %v2684_v1  ;;  %v2983_v20 = vcombine.high %v8118_v48, %v8130_v58  ;;  %v2841_v26 = vcombine.high %v2789_v30, %v2821_v61  ;;  %v2975_v1 = vcombine.high %v8137_v11, %v8140_v27 }
 0x594   : > { %v3110_v21 = vcombine.low %v3054_v18, %v3086_v22  ;;  %v3134_v23 = vcombine.low %v8188_v57, %v8194_v59  ;;  %v3111_v6 = vcombine.high %v3054_v18, %v3086_v22  ;;  %v3061_v7 = vrot.slane %v3047_v47, %v7017_v49 }
 0x595   : > { %v2943_v47 = vcombine.high %v8123_v14, %v8127_v32  ;;  %v2997_v48 = vrot.slane %v2983_v20, %v6986_v35  ;;  %v3290_v58 = vsel %vm519_vm6, %v2841_v26, -inf  ;;  %v3269_v11 = vsel %vm519_vm6, %v2975_v1, -inf }
 0x596   : > { %v3260_v4 = vsel %vm519_vm6, %v3110_v21, -inf  ;;  %v3142_v2 = vrot.slane %v3134_v23, %v6986_v35  ;;  %v3126_v21 = vrot.slane %v3118_v38, %v6986_v35  ;;  %v3272_v18 = vsel %vm519_vm6, %v3111_v6, -inf }
 0x597   : > { %v8205_v9 = vpop.permute.xlu1 %2704  ;;  %3261 = vmax.xlane.f32.xlu0 %v3260_v4  ;;  %v8207_v44 = vpop.permute.xlu0 %2701  ;;  %v3112_v38 = vcombine.low %v3061_v7, %v3093_v17  ;;  %v3015_v6 = vcombine.high %v8145_v28, %v8164_v56  ;;  %v2911_v28 = vcombine.high %v8116_v16, %v8109_v0  ;;  %v2957_v27 = vrot.slane %v2943_v47, %v7017_v49 }
 0x598   : > { %v3150_v10 = vcombine.low %v8192_v52, %v8205_v9  ;;  %v3182_v23 = vcombine.low %v3126_v21, %v3142_v2  ;;  %v3113_v61 = vcombine.high %v3061_v7, %v3093_v17  ;;  %v3119_v20 = vcombine.high %v8180_v51, %v8186_v34 }
 0x599   : > { %v3029_v32 = vrot.slane %v3015_v6, %v6986_v35  ;;  %v2925_v0 = vrot.slane %v2911_v28, %v7017_v49 }
 0x59a   : > { %v3158_v4 = vrot.slane %v3150_v10, %v6986_v35  ;;  %v2999_v10 = vcombine.high %v8132_v36, %v8147_v53  ;;  %v3133_v34 = vrot.slane %v3119_v20, %v6986_v35 }
 0x59b   : > { %3267 = vmax.xlane.f32.xlu0 %v3266_v46  ;;  %v8216_v19 = vpop.permute.xlu0 %2707  ;;  %v3190_v46 = vrot.slane %v3182_v23, %v7017_v49  ;;  %v3045_v23 = vrot.slane %v3031_v31, %v6986_v35  ;;  %v3296_v31 = vsel %vm519_vm6, %v3113_v61, -inf  ;;  %v2977_v47 = vcombine.high %v2925_v0, %v2957_v27 }
 0x59c   : > { %v3166_v33 = vcombine.low %v8207_v44, %v8216_v19  ;;  %v3013_v14 = vrot.slane %v2999_v10, %v6986_v35 }
 0x59d   : > { %v3094_v53 = vcombine.low %v3029_v32, %v3045_v23  ;;  %v3293_v51 = vsel %vm519_vm6, %v2977_v47, -inf }
 0x59e   : > { %v3174_v60 = vrot.slane %v3166_v33, %v6986_v35  ;;  %v3062_v16 = vcombine.low %v2997_v48, %v3013_v14 }
 0x59f   : > { %3273 = vmax.xlane.f32.xlu0 %v3272_v18  ;;  %v3284_v18 = vsel %vm519_vm6, %v3112_v38, -inf  ;;  %v3102_v10 = vrot.slane %v3094_v53, %v7017_v49 }
 0x5a0   : > { %v3214_v22 = vcombine.low %v3158_v4, %v3174_v60  ;;  %v3215_v56 = vcombine.high %v3158_v4, %v3174_v60  ;;  %v3070_v17 = vrot.slane %v3062_v16, %v7017_v49 }
 0x5a2   : > { %v3222_v40 = vrot.slane %v3214_v22, %v7017_v49  ;;  %v3183_v22 = vcombine.high %v3126_v21, %v3142_v2  ;;  %v3229_v6 = vrot.slane %v3215_v56, %v7017_v49  ;;  %v3302_v2 = vsel %vm519_vm6, %v2842_v24, -inf }
 0x5a3   : > { %3279 = vmax.xlane.f32.xlu0 %v3278_v15  ;;  %v2976_v15 = vcombine.low %v2925_v0, %v2957_v27  ;;  %v3167_v21 = vcombine.high %v8207_v44, %v8216_v19  ;;  %v3114_v7 = vcombine.low %v3070_v17, %v3102_v10 }
 0x5a4   : > { %v3246_v33 = vcombine.low %v3190_v46, %v3222_v40  ;;  %v3247_v30 = vcombine.high %v3190_v46, %v3222_v40  ;;  %v3197_v4 = vrot.slane %v3183_v22, %v7017_v49  ;;  %v3135_v40 = vcombine.high %v8188_v57, %v8194_v59 }
 0x5a5   : > { %v3281_v60 = vsel %vm519_vm6, %v2976_v15, -inf  ;;  %v3181_v24 = vrot.slane %v3167_v21, %v6986_v35  ;;  %v3308_v44 = vsel %vm519_vm6, %v3114_v7, -inf  ;;  %v3095_v57 = vcombine.high %v3029_v32, %v3045_v23 }
 0x5a6   : > { %v3263_v36 = vsel %vm519_vm6, %v3246_v33, -inf  ;;  %v3275_v38 = vsel %vm519_vm6, %v3247_v30, -inf  ;;  %v3248_v46 = vcombine.low %v3197_v4, %v3229_v6  ;;  %v3151_v33 = vcombine.high %v8192_v52, %v8205_v9 }
 0x5a7   : > { %3285 = vmax.xlane.f32.xlu0 %v3284_v18  ;;  %3264 = vmax.xlane.f32.xlu1 %v3263_v36  ;;  %v3149_v26 = vrot.slane %v3135_v40, %v6986_v35  ;;  %v3314_v52 = vsel %vm519_vm6, %v2843_v50, -inf  ;;  %v3115_v9 = vcombine.high %v3070_v17, %v3102_v10  ;;  %v3249_v18 = vcombine.high %v3197_v4, %v3229_v6 }
 0x5a8   : > { %v3287_v19 = vsel %vm519_vm6, %v3248_v46, -inf  ;;  %v3165_v1 = vrot.slane %v3151_v33, %v6986_v35  ;;  %v3063_v36 = vcombine.high %v2997_v48, %v3013_v14  ;;  %v3109_v32 = vrot.slane %v3095_v57, %v7017_v49 }
 0x5a9   : > { %v3198_v28 = vcombine.low %v3133_v34, %v3149_v26  ;;  %v3299_v23 = vsel %vm519_vm6, %v3249_v18, -inf  ;;  %v3326_v50 = vsel %vm519_vm6, %v2844_v13, -inf  ;;  %v3305_v14 = vsel %vm519_vm6, %v2978_v45, -inf }
 0x5aa   : > { %v3230_v59 = vcombine.low %v3165_v1, %v3181_v24  ;;  %v3077_v37 = vrot.slane %v3063_v36, %v7017_v49  ;;  %v3338_v13 = vsel %vm519_vm6, %v2845_v12, -inf  ;;  %v3231_v56 = vcombine.high %v3165_v1, %v3181_v24 }
 0x5ab   : > { %3291 = vmax.xlane.f32.xlu0 %v3290_v58  ;;  %3270 = vmax.xlane.f32.xlu1 %v3269_v11  ;;  %v3320_v58 = vsel %vm519_vm6, %v3115_v9, -inf  ;;  %v3206_v35 = vrot.slane %v3198_v28, %v7017_v49  ;;  %v3317_v45 = vsel %vm519_vm6, %v2979_v41, -inf  ;;  %v3199_v0 = vcombine.high %v3133_v34, %v3149_v26 }
 0x5ac   : > { %v3238_v55 = vrot.slane %v3230_v59, %v7017_v49  ;;  %v3116_v48 = vcombine.low %v3077_v37, %v3109_v32  ;;  %v3117_v61 = vcombine.high %v3077_v37, %v3109_v32  ;;  %v3245_v15 = vrot.slane %v3231_v56, %v7017_v49 }
 0x5ad   : > { %v3213_v43 = vrot.slane %v3199_v0, %v7017_v49  ;;  %v6746_v49 = vmov 1966171168   ;;  %v8325_v6 = vsub.s32 1, %v6977_v29  ;;  %v8328_v17 = vsub.s32 2, %v6977_v29 }
 0x5ae   : > { %v3250_v11 = vcombine.low %v3206_v35, %v3238_v55  ;;  %v3332_v27 = vsel %vm519_vm6, %v3116_v48, -inf  ;;  %v3251_v30 = vcombine.high %v3206_v35, %v3238_v55  ;;  %v3344_v16 = vsel %vm519_vm6, %v3117_v61, -inf }
 0x5af   : > { %3297 = vmax.xlane.f32.xlu0 %v3296_v31  ;;  %3276 = vmax.xlane.f32.xlu1 %v3275_v38  ;;  %v3252_v12 = vcombine.low %v3213_v43, %v3245_v15  ;;  %v3253_v41 = vcombine.high %v3213_v43, %v3245_v15  ;;  %v4411_v38 = vunpack.c.l.s4 %v6746_v49  ;;  %v8340_v4 = vsub.s32 6, %v6977_v29 }
 0x5b0   : > { %v3311_v53 = vsel %vm519_vm6, %v3250_v11, -inf  ;;  %v3323_v22 = vsel %vm519_vm6, %v3251_v30, -inf }
 0x5b1   : > { %v3335_v54 = vsel %vm519_vm6, %v3252_v12, -inf  ;;  %v3347_v31 = vsel %vm519_vm6, %v3253_v41, -inf  ;;  %v4412_v10 = vunpack.c.0.s8 %v4411_v38  ;;  %vm6079_vm6 = vcmask 130112  }
 0x5b3   : > { %3303 = vmax.xlane.f32.xlu0 %v3302_v2  ;;  %3282 = vmax.xlane.f32.xlu1 %v3281_v60  ;;  %v8343_v2 = vsub.s32 7, %v6977_v29  ;;  %v8346_v60 = vsub.s32 %v4412_v10, %v6977_v29 }
 0x5b7   : > { %3309 = vmax.xlane.f32.xlu0 %v3308_v44  ;;  %3288 = vmax.xlane.f32.xlu1 %v3287_v19 }
 0x5bb   : > { %3315 = vmax.xlane.f32.xlu0 %v3314_v52  ;;  %3294 = vmax.xlane.f32.xlu1 %v3293_v51 }
 0x5bf   : > { %3321 = vmax.xlane.f32.xlu0 %v3320_v58  ;;  %3300 = vmax.xlane.f32.xlu1 %v3299_v23 }
 0x5c3   : > { %3327 = vmax.xlane.f32.xlu0 %v3326_v50  ;;  %3306 = vmax.xlane.f32.xlu1 %v3305_v14 }
 0x5c7   : > { %3333 = vmax.xlane.f32.xlu0 %v3332_v27  ;;  %3312 = vmax.xlane.f32.xlu1 %v3311_v53 }
 0x5cb   : > { %3339 = vmax.xlane.f32.xlu0 %v3338_v13  ;;  %3318 = vmax.xlane.f32.xlu1 %v3317_v45 }
 0x5cf   : > { %3345 = vmax.xlane.f32.xlu0 %v3344_v16  ;;  %3324 = vmax.xlane.f32.xlu1 %v3323_v22 }
 0x5d3   : > { %3330 = vmax.xlane.f32.xlu1 %v3329_v62 }
 0x5d7   : > { %3336 = vmax.xlane.f32.xlu1 %v3335_v54 }
 0x5db   : > { %3342 = vmax.xlane.f32.xlu1 %v3341_v5 }
 0x5df   : > { %3348 = vmax.xlane.f32.xlu1 %v3347_v31 }
 0x604   : > { %v3256_v21 = vpop.xlane.xlu1 %3255 }
 0x605   : > { %v3385_v7 = vrot.slane %v3256_v21, %v8322_v3  ;;  %v3389_v46 = vrot.slane %v3256_v21, %v8325_v6  ;;  %v3393_v40 = vrot.slane %v3256_v21, %v8328_v17  ;;  %v3397_v33 = vrot.slane %v3256_v21, %v8331_v42 }
 0x606   : > { %v3401_v47 = vrot.slane %v3256_v21, %v8334_v63  ;;  %v3405_v20 = vrot.slane %v3256_v21, %v8337_v39  ;;  %v3409_v24 = vrot.slane %v3256_v21, %v8340_v4  ;;  %v3413_v44 = vrot.slane %v3256_v21, %v8343_v2 }
 0x607   : > { %v4406_v19 = vcombine.low %v3385_v7, %v3389_v46  ;;  %v4407_v26 = vcombine.low %v3393_v40, %v3397_v33 }
 0x608   : > { %v4408_v1 = vcombine.low %v3401_v47, %v3405_v20  ;;  %v4409_v57 = vcombine.low %v3409_v24, %v3413_v44 }
 0x609   : > { %v4416_v52 = vrot.slane %v4406_v19, %v8346_v60  ;;  %v4423_v51 = vrot.slane %v4407_v26, %v8346_v60 }
 0x60a   : > { %v4430_v34 = vrot.slane %v4408_v1, %v8346_v60  ;;  %v4437_v59 = vrot.slane %v4409_v57, %v8346_v60 }
 0x60b   : > { %v4438_v9 = vcombine.low %v4416_v52, %v4423_v51 }
 0x60c   : > { %v4439_v18 = vcombine.low %v4430_v34, %v4437_v59 }
 0x60d   : > { %v4446_v36 = vrot.slane %v4438_v9, %v8346_v60 }
 0x60e   : > { %v4453_v28 = vrot.slane %v4439_v18, %v8346_v60 }
 0x610   : > { %v4454_v58 = vcombine.low %v4446_v36, %v4453_v28 }
 0x612   : > { %5975 = vperm.xlu0 %6650, %v4454_v58  }
 0x614   : > { %v3259_v23 = vpop.xlane.xlu0 %3258 }
 0x615   : > { %v3417_v32 = vrot.slane %v3259_v23, %v8322_v3  ;;  %v3421_v55 = vrot.slane %v3259_v23, %v8325_v6  ;;  %v3425_v37 = vrot.slane %v3259_v23, %v8328_v17  ;;  %v3429_v35 = vrot.slane %v3259_v23, %v8331_v42 }
 0x616   : > { %v3433_v50 = vrot.slane %v3259_v23, %v8334_v63  ;;  %v3437_v14 = vrot.slane %v3259_v23, %v8337_v39  ;;  %v3441_v48 = vrot.slane %v3259_v23, %v8340_v4  ;;  %v3445_v11 = vrot.slane %v3259_v23, %v8343_v2 }
 0x617   : > { %v4455_v27 = vcombine.low %v3417_v32, %v3421_v55  ;;  %v4456_v53 = vcombine.low %v3425_v37, %v3429_v35 }
 0x618   : > { %v4457_v13 = vcombine.low %v3433_v50, %v3437_v14  ;;  %v4458_v56 = vcombine.low %v3441_v48, %v3445_v11 }
 0x619   : > { %v4465_v45 = vrot.slane %v4455_v27, %v8346_v60  ;;  %v4472_v61 = vrot.slane %v4456_v53, %v8346_v60 }
 0x61a   : > { %v4479_v30 = vrot.slane %v4457_v13, %v8346_v60  ;;  %v4486_v0 = vrot.slane %v4458_v56, %v8346_v60 }
 0x61b   : > { %v4487_v16 = vcombine.low %v4465_v45, %v4472_v61 }
 0x61c   : > { %v4488_v22 = vcombine.low %v4479_v30, %v4486_v0 }
 0x61d   : > { %v4495_v15 = vrot.slane %v4487_v16, %v8346_v60 }
 0x61e   : > { %v4502_v43 = vrot.slane %v4488_v22, %v8346_v60 }
 0x620   : > { %v4503_v62 = vcombine.low %v4495_v15, %v4502_v43 }
 0x622   : > { %5978 = vperm.xlu1 %6651, %v4503_v62  }
 0x624   : > { %v3262_v12 = vpop.xlane.xlu0 %3261 }
 0x625   : > { %v3449_v54 = vrot.slane %v3262_v12, %v8322_v3  ;;  %v3453_v5 = vrot.slane %v3262_v12, %v8325_v6  ;;  %v3457_v41 = vrot.slane %v3262_v12, %v8328_v17  ;;  %v3461_v31 = vrot.slane %v3262_v12, %v8331_v42 }
 0x626   : > { %v3465_v49 = vrot.slane %v3262_v12, %v8334_v63  ;;  %v3469_v38 = vrot.slane %v3262_v12, %v8337_v39  ;;  %v3473_v10 = vrot.slane %v3262_v12, %v8340_v4  ;;  %v3477_v21 = vrot.slane %v3262_v12, %v8343_v2 }
 0x627   : > { %v4504_v7 = vcombine.low %v3449_v54, %v3453_v5  ;;  %v4505_v46 = vcombine.low %v3457_v41, %v3461_v31 }
 0x628   : > { %v3268_v40 = vpop.xlane.xlu0 %3267  ;;  %v4506_v33 = vcombine.low %v3465_v49, %v3469_v38  ;;  %v4507_v47 = vcombine.low %v3473_v10, %v3477_v21 }
 0x629   : > { %v4514_v20 = vrot.slane %v4504_v7, %v8346_v60  ;;  %v4521_v24 = vrot.slane %v4505_v46, %v8346_v60  ;;  %v3513_v44 = vrot.slane %v3268_v40, %v8322_v3  ;;  %v3517_v19 = vrot.slane %v3268_v40, %v8325_v6 }
 0x62a   : > { %v4528_v26 = vrot.slane %v4506_v33, %v8346_v60  ;;  %v4535_v1 = vrot.slane %v4507_v47, %v8346_v60  ;;  %v3521_v57 = vrot.slane %v3268_v40, %v8328_v17  ;;  %v3525_v52 = vrot.slane %v3268_v40, %v8331_v42 }
 0x62b   : > { %v4536_v51 = vcombine.low %v4514_v20, %v4521_v24  ;;  %v3529_v34 = vrot.slane %v3268_v40, %v8334_v63  ;;  %v3533_v59 = vrot.slane %v3268_v40, %v8337_v39  ;;  %v3537_v9 = vrot.slane %v3268_v40, %v8340_v4 }
 0x62c   : > { %v3274_v18 = vpop.xlane.xlu0 %3273  ;;  %v4537_v36 = vcombine.low %v4528_v26, %v4535_v1  ;;  %v3541_v28 = vrot.slane %v3268_v40, %v8343_v2  ;;  %v4602_v58 = vcombine.low %v3513_v44, %v3517_v19  ;;  %v4603_v23 = vcombine.low %v3521_v57, %v3525_v52 }
 0x62d   : > { %v4544_v32 = vrot.slane %v4536_v51, %v8346_v60  ;;  %v4604_v55 = vcombine.low %v3529_v34, %v3533_v59  ;;  %v3577_v37 = vrot.slane %v3274_v18, %v8322_v3  ;;  %v3581_v35 = vrot.slane %v3274_v18, %v8325_v6 }
 0x62e   : > { %v4551_v50 = vrot.slane %v4537_v36, %v8346_v60  ;;  %v4605_v14 = vcombine.low %v3537_v9, %v3541_v28  ;;  %v4612_v48 = vrot.slane %v4602_v58, %v8346_v60  ;;  %v4619_v11 = vrot.slane %v4603_v23, %v8346_v60 }
 0x62f   : > { %v4626_v27 = vrot.slane %v4604_v55, %v8346_v60  ;;  %v3585_v53 = vrot.slane %v3274_v18, %v8328_v17  ;;  %v3589_v13 = vrot.slane %v3274_v18, %v8331_v42  ;;  %v3593_v56 = vrot.slane %v3274_v18, %v8334_v63 }
 0x630   : > { %v8406_v45 = vpop.xlane.xlu0 %3279  ;;  %v4552_v61 = vcombine.low %v4544_v32, %v4551_v50  ;;  %v4633_v30 = vrot.slane %v4605_v14, %v8346_v60  ;;  %v4634_v0 = vcombine.low %v4612_v48, %v4619_v11  ;;  %v3597_v16 = vrot.slane %v3274_v18, %v8337_v39 }
 0x631   : > { %v3601_v22 = vrot.slane %v3274_v18, %v8340_v4  ;;  %v3605_v15 = vrot.slane %v3274_v18, %v8343_v2  ;;  %v4700_v43 = vcombine.low %v3577_v37, %v3581_v35  ;;  %v4701_v62 = vcombine.low %v3585_v53, %v3589_v13 }
 0x632   : > { %5981 = vperm.xlu1 %6651, %v4552_v61   ;;  %v4635_v12 = vcombine.low %v4626_v27, %v4633_v30  ;;  %v4642_v54 = vrot.slane %v4634_v0, %v8346_v60  ;;  %v4702_v5 = vcombine.low %v3593_v56, %v3597_v16  ;;  %v3641_v41 = vrot.slane %v8406_v45, %v8322_v3 }
 0x633   : > { %v4703_v31 = vcombine.low %v3601_v22, %v3605_v15  ;;  %v4710_v49 = vrot.slane %v4700_v43, %v8346_v60  ;;  %v4717_v38 = vrot.slane %v4701_v62, %v8346_v60  ;;  %v3645_v10 = vrot.slane %v8406_v45, %v8325_v6 }
 0x634   : > { %v3265_v21 = vpop.xlane.xlu1 %3264  ;;  %v4649_v7 = vrot.slane %v4635_v12, %v8346_v60  ;;  %v4724_v46 = vrot.slane %v4702_v5, %v8346_v60  ;;  %v3649_v40 = vrot.slane %v8406_v45, %v8328_v17  ;;  %v3653_v33 = vrot.slane %v8406_v45, %v8331_v42 }
 0x635   : > { %v3481_v47 = vrot.slane %v3265_v21, %v8322_v3  ;;  %v3485_v20 = vrot.slane %v3265_v21, %v8325_v6  ;;  %v3489_v24 = vrot.slane %v3265_v21, %v8328_v17  ;;  %v3493_v44 = vrot.slane %v3265_v21, %v8331_v42 }
 0x636   : > { %v3497_v19 = vrot.slane %v3265_v21, %v8334_v63  ;;  %v3501_v26 = vrot.slane %v3265_v21, %v8337_v39  ;;  %v3505_v1 = vrot.slane %v3265_v21, %v8340_v4  ;;  %v3509_v57 = vrot.slane %v3265_v21, %v8343_v2 }
 0x637   : > { %v4553_v52 = vcombine.low %v3481_v47, %v3485_v20  ;;  %v4554_v51 = vcombine.low %v3489_v24, %v3493_v44  ;;  %v8433_v34 = vcombine.low %v4642_v54, %v4649_v7  ;;  %v4731_v59 = vrot.slane %v4703_v31, %v8346_v60 }
 0x638   : > { %v3271_v9 = vpop.xlane.xlu1 %3270  ;;  %v4555_v18 = vcombine.low %v3497_v19, %v3501_v26  ;;  %v4556_v36 = vcombine.low %v3505_v1, %v3509_v57  ;;  %v4732_v28 = vcombine.low %v4710_v49, %v4717_v38  ;;  %v3657_v58 = vrot.slane %v8406_v45, %v8334_v63 }
 0x639   : > { %v4563_v23 = vrot.slane %v4553_v52, %v8346_v60  ;;  %v4570_v32 = vrot.slane %v4554_v51, %v8346_v60  ;;  %v3545_v55 = vrot.slane %v3271_v9, %v8322_v3  ;;  %v3549_v37 = vrot.slane %v3271_v9, %v8325_v6 }
 0x63a   : > { %v4577_v35 = vrot.slane %v4555_v18, %v8346_v60  ;;  %v4584_v50 = vrot.slane %v4556_v36, %v8346_v60  ;;  %v3553_v14 = vrot.slane %v3271_v9, %v8328_v17  ;;  %v3557_v48 = vrot.slane %v3271_v9, %v8331_v42 }
 0x63b   : > { %v4585_v11 = vcombine.low %v4563_v23, %v4570_v32  ;;  %v3561_v27 = vrot.slane %v3271_v9, %v8334_v63  ;;  %v3565_v53 = vrot.slane %v3271_v9, %v8337_v39  ;;  %v3569_v13 = vrot.slane %v3271_v9, %v8340_v4 }
 0x63c   : > { %v8449_v56 = vpop.xlane.xlu1 %3276  ;;  %v4586_v61 = vcombine.low %v4577_v35, %v4584_v50  ;;  %v3573_v30 = vrot.slane %v3271_v9, %v8343_v2  ;;  %v4651_v0 = vcombine.low %v3545_v55, %v3549_v37  ;;  %v4652_v16 = vcombine.low %v3553_v14, %v3557_v48 }
 0x63d   : > { %v4593_v22 = vrot.slane %v4585_v11, %v8346_v60  ;;  %v4653_v15 = vcombine.low %v3561_v27, %v3565_v53  ;;  %v4733_v43 = vcombine.low %v4724_v46, %v4731_v59  ;;  %v4740_v62 = vrot.slane %v4732_v28, %v8346_v60 }
 0x63e   : > { %v4600_v12 = vrot.slane %v4586_v61, %v8346_v60  ;;  %v4654_v54 = vcombine.low %v3569_v13, %v3573_v30  ;;  %v4661_v5 = vrot.slane %v4651_v0, %v8346_v60  ;;  %v4668_v31 = vrot.slane %v4652_v16, %v8346_v60 }
 0x63f   : > { %v4675_v49 = vrot.slane %v4653_v15, %v8346_v60  ;;  %v4747_v38 = vrot.slane %v4733_v43, %v8346_v60  ;;  %v3609_v21 = vrot.slane %v8449_v56, %v8322_v3  ;;  %v3613_v7 = vrot.slane %v8449_v56, %v8325_v6 }
 0x640   : > { %v3283_v46 = vpop.xlane.xlu1 %3282  ;;  %v4601_v47 = vcombine.low %v4593_v22, %v4600_v12  ;;  %v4682_v20 = vrot.slane %v4654_v54, %v8346_v60  ;;  %v4683_v24 = vcombine.low %v4661_v5, %v4668_v31  ;;  %v3617_v44 = vrot.slane %v8449_v56, %v8328_v17 }
 0x641   : > { %v3673_v19 = vrot.slane %v3283_v46, %v8322_v3  ;;  %v3677_v26 = vrot.slane %v3283_v46, %v8325_v6  ;;  %v3681_v1 = vrot.slane %v3283_v46, %v8328_v17  ;;  %v3685_v57 = vrot.slane %v3283_v46, %v8331_v42 }
 0x642   : > { %5984 = vperm.xlu1 %6651, %v4601_v47   ;;  %v4684_v52 = vcombine.low %v4675_v49, %v4682_v20  ;;  %v4691_v51 = vrot.slane %v4683_v24, %v8346_v60  ;;  %v3689_v59 = vrot.slane %v3283_v46, %v8334_v63  ;;  %v3693_v9 = vrot.slane %v3283_v46, %v8337_v39 }
 0x643   : > { %v3697_v18 = vrot.slane %v3283_v46, %v8340_v4  ;;  %v3701_v36 = vrot.slane %v3283_v46, %v8343_v2  ;;  %v4847_v28 = vcombine.low %v3673_v19, %v3677_v26  ;;  %v4848_v23 = vcombine.low %v3681_v1, %v3685_v57 }
 0x644   : > { %v3289_v32 = vpop.xlane.xlu1 %3288  ;;  %v4698_v55 = vrot.slane %v4684_v52, %v8346_v60  ;;  %v4849_v37 = vcombine.low %v3689_v59, %v3693_v9  ;;  %v4748_v35 = vcombine.low %v4740_v62, %v4747_v38  ;;  %v3621_v50 = vrot.slane %v8449_v56, %v8331_v42 }
 0x645   : > { %v4850_v14 = vcombine.low %v3697_v18, %v3701_v36  ;;  %v4857_v48 = vrot.slane %v4847_v28, %v8346_v60  ;;  %v4864_v11 = vrot.slane %v4848_v23, %v8346_v60  ;;  %v3737_v27 = vrot.slane %v3289_v32, %v8322_v3 }
 0x646   : > { %5987 = vperm.xlu1 %6651, %v8433_v34   ;;  %v4699_v53 = vcombine.low %v4691_v51, %v4698_v55  ;;  %v4871_v13 = vrot.slane %v4849_v37, %v8346_v60  ;;  %v3741_v61 = vrot.slane %v3289_v32, %v8325_v6  ;;  %v3745_v30 = vrot.slane %v3289_v32, %v8328_v17 }
 0x647   : > { %v4878_v0 = vrot.slane %v4850_v14, %v8346_v60  ;;  %v4879_v16 = vcombine.low %v4857_v48, %v4864_v11  ;;  %v3749_v22 = vrot.slane %v3289_v32, %v8331_v42  ;;  %v3753_v15 = vrot.slane %v3289_v32, %v8334_v63 }
 0x648   : > { %v3757_v43 = vrot.slane %v3289_v32, %v8337_v39  ;;  %v3761_v62 = vrot.slane %v3289_v32, %v8340_v4  ;;  %v3765_v34 = vrot.slane %v3289_v32, %v8343_v2  ;;  %v4945_v12 = vcombine.low %v3737_v27, %v3741_v61  ;;  %v3295_v24 = vpop.xlane.xlu1 %3294 }
 0x649   : > { %v4880_v54 = vcombine.low %v4871_v13, %v4878_v0  ;;  %v4887_v5 = vrot.slane %v4879_v16, %v8346_v60  ;;  %v4946_v31 = vcombine.low %v3745_v30, %v3749_v22  ;;  %v3625_v49 = vrot.slane %v8449_v56, %v8334_v63 }
 0x64a   : > { %5990 = vperm.xlu1 %6651, %v4699_v53   ;;  %v4947_v38 = vcombine.low %v3753_v15, %v3757_v43  ;;  %v4948_v46 = vcombine.low %v3761_v62, %v3765_v34  ;;  %v4955_v47 = vrot.slane %v4945_v12, %v8346_v60  ;;  %v3629_v20 = vrot.slane %v8449_v56, %v8337_v39 }
 0x64b   : > { %v4894_v19 = vrot.slane %v4880_v54, %v8346_v60  ;;  %v4962_v26 = vrot.slane %v4946_v31, %v8346_v60  ;;  %v3633_v1 = vrot.slane %v8449_v56, %v8340_v4  ;;  %v3637_v57 = vrot.slane %v8449_v56, %v8343_v2 }
 0x64c   : > { %v4969_v52 = vrot.slane %v4947_v38, %v8346_v60  ;;  %v4976_v51 = vrot.slane %v4948_v46, %v8346_v60  ;;  %v4749_v59 = vcombine.low %v3609_v21, %v3613_v7  ;;  %v4750_v9 = vcombine.low %v3617_v44, %v3621_v50  ;;  %v3301_v12 = vpop.xlane.xlu1 %3300 }
 0x64d   : > { %v4895_v18 = vcombine.low %v4887_v5, %v4894_v19  ;;  %v4977_v36 = vcombine.low %v4955_v47, %v4962_v26  ;;  %v4751_v28 = vcombine.low %v3625_v49, %v3629_v20  ;;  %v4752_v23 = vcombine.low %v3633_v1, %v3637_v57 }
 0x64e   : > { %5993 = vperm.xlu1 %6651, %v4748_v35   ;;  %v4978_v32 = vcombine.low %v4969_v52, %v4976_v51  ;;  %v4759_v55 = vrot.slane %v4749_v59, %v8346_v60  ;;  %v4766_v37 = vrot.slane %v4750_v9, %v8346_v60  ;;  %v3801_v14 = vrot.slane %v3295_v24, %v8322_v3 }
 0x64f   : > { %6002 = vperm.xlu0 %6650, %v4895_v18   ;;  %v4985_v56 = vrot.slane %v4977_v36, %v8346_v60  ;;  %v4773_v48 = vrot.slane %v4751_v28, %v8346_v60  ;;  %v4780_v21 = vrot.slane %v4752_v23, %v8346_v60  ;;  %v3805_v7 = vrot.slane %v3295_v24, %v8325_v6  ;;  %v3286_v36 = vpop.xlane.xlu0 %3285 }
 0x650   : > { %v4992_v44 = vrot.slane %v4978_v32, %v8346_v60  ;;  %v4781_v50 = vcombine.low %v4759_v55, %v4766_v37  ;;  %v3809_v35 = vrot.slane %v3295_v24, %v8328_v17  ;;  %v3813_v11 = vrot.slane %v3295_v24, %v8331_v42 }
 0x651   : > { %v4782_v27 = vcombine.low %v4773_v48, %v4780_v21  ;;  %v3817_v53 = vrot.slane %v3295_v24, %v8334_v63  ;;  %v3821_v13 = vrot.slane %v3295_v24, %v8337_v39  ;;  %v3825_v61 = vrot.slane %v3295_v24, %v8340_v4 }
 0x652   : > { %v4993_v30 = vcombine.low %v4985_v56, %v4992_v44  ;;  %v4789_v0 = vrot.slane %v4781_v50, %v8346_v60  ;;  %v3829_v16 = vrot.slane %v3295_v24, %v8343_v2  ;;  %v5043_v22 = vcombine.low %v3801_v14, %v3805_v7 }
 0x653   : > { %v4796_v15 = vrot.slane %v4782_v27, %v8346_v60  ;;  %v5044_v43 = vcombine.low %v3809_v35, %v3813_v11  ;;  %v5045_v62 = vcombine.low %v3817_v53, %v3821_v13  ;;  %v3661_v34 = vrot.slane %v8406_v45, %v8337_v39  ;;  %v3307_v13 = vpop.xlane.xlu1 %3306 }
 0x654   : > { %6008 = vperm.xlu0 %6650, %v4993_v30   ;;  %v5046_v54 = vcombine.low %v3825_v61, %v3829_v16  ;;  %v5053_v5 = vrot.slane %v5043_v22, %v8346_v60  ;;  %v3665_v31 = vrot.slane %v8406_v45, %v8340_v4  ;;  %v3669_v49 = vrot.slane %v8406_v45, %v8343_v2 }
 0x655   : > { %v4797_v38 = vcombine.low %v4789_v0, %v4796_v15  ;;  %v5060_v46 = vrot.slane %v5044_v43, %v8346_v60  ;;  %v5067_v47 = vrot.slane %v5045_v62, %v8346_v60  ;;  %v4798_v20 = vcombine.low %v3641_v41, %v3645_v10 }
 0x656   : > { %v5074_v24 = vrot.slane %v5046_v54, %v8346_v60  ;;  %v4799_v19 = vcombine.low %v3649_v40, %v3653_v33  ;;  %v4800_v26 = vcombine.low %v3657_v58, %v3661_v34  ;;  %v4801_v1 = vcombine.low %v3665_v31, %v3669_v49 }
 0x657   : > { %5996 = vperm.xlu1 %6651, %v4797_v38   ;;  %v5075_v57 = vcombine.low %v5053_v5, %v5060_v46  ;;  %v4808_v52 = vrot.slane %v4798_v20, %v8346_v60  ;;  %v3865_v41 = vrot.slane %v3301_v12, %v8322_v3  ;;  %v3869_v10 = vrot.slane %v3301_v12, %v8325_v6 }
 0x658   : > { %v5076_v51 = vcombine.low %v5067_v47, %v5074_v24  ;;  %v4815_v59 = vrot.slane %v4799_v19, %v8346_v60  ;;  %v4822_v9 = vrot.slane %v4800_v26, %v8346_v60  ;;  %v4829_v40 = vrot.slane %v4801_v1, %v8346_v60 }
 0x659   : > { %v5083_v33 = vrot.slane %v5075_v57, %v8346_v60  ;;  %v3873_v45 = vrot.slane %v3301_v12, %v8328_v17  ;;  %v3877_v58 = vrot.slane %v3301_v12, %v8331_v42  ;;  %v3881_v18 = vrot.slane %v3301_v12, %v8334_v63 }
 0x65a   : > { %v5090_v28 = vrot.slane %v5076_v51, %v8346_v60  ;;  %v4830_v23 = vcombine.low %v4808_v52, %v4815_v59  ;;  %v4831_v32 = vcombine.low %v4822_v9, %v4829_v40  ;;  %v3885_v55 = vrot.slane %v3301_v12, %v8337_v39 }
 0x65b   : > { %v3889_v37 = vrot.slane %v3301_v12, %v8340_v4  ;;  %v3893_v14 = vrot.slane %v3301_v12, %v8343_v2  ;;  %v5141_v56 = vcombine.low %v3865_v41, %v3869_v10  ;;  %v5142_v48 = vcombine.low %v3873_v45, %v3877_v58  ;;  %v3292_v41 = vpop.xlane.xlu0 %3291 }
 0x65c   : > { %v5091_v21 = vcombine.low %v5083_v33, %v5090_v28  ;;  %v4838_v7 = vrot.slane %v4830_v23, %v8346_v60  ;;  %v4845_v44 = vrot.slane %v4831_v32, %v8346_v60  ;;  %v5143_v50 = vcombine.low %v3881_v18, %v3885_v55 }
 0x65d   : > { %v5144_v35 = vcombine.low %v3889_v37, %v3893_v14  ;;  %v5151_v11 = vrot.slane %v5141_v56, %v8346_v60  ;;  %v5158_v27 = vrot.slane %v5142_v48, %v8346_v60  ;;  %v3705_v53 = vrot.slane %v3286_v36, %v8322_v3 }
 0x65e   : > { %6014 = vperm.xlu0 %6650, %v5091_v21   ;;  %v4846_v61 = vcombine.low %v4838_v7, %v4845_v44  ;;  %v5165_v30 = vrot.slane %v5143_v50, %v8346_v60  ;;  %v3709_v0 = vrot.slane %v3286_v36, %v8325_v6  ;;  %v3713_v16 = vrot.slane %v3286_v36, %v8328_v17  ;;  %v3313_v44 = vpop.xlane.xlu1 %3312 }
 0x65f   : > { %v5172_v22 = vrot.slane %v5144_v35, %v8346_v60  ;;  %v5173_v15 = vcombine.low %v5151_v11, %v5158_v27  ;;  %v3717_v43 = vrot.slane %v3286_v36, %v8331_v42  ;;  %v3721_v62 = vrot.slane %v3286_v36, %v8334_v63 }
 0x660   : > { %5999 = vperm.xlu1 %6651, %v4846_v61   ;;  %v3725_v34 = vrot.slane %v3286_v36, %v8337_v39  ;;  %v3729_v12 = vrot.slane %v3286_v36, %v8340_v4  ;;  %v3733_v54 = vrot.slane %v3286_v36, %v8343_v2  ;;  %v4896_v5 = vcombine.low %v3705_v53, %v3709_v0 }
 0x661   : > { %v5174_v31 = vcombine.low %v5165_v30, %v5172_v22  ;;  %v5181_v49 = vrot.slane %v5173_v15, %v8346_v60  ;;  %v4897_v38 = vcombine.low %v3713_v16, %v3717_v43  ;;  %v3929_v46 = vrot.slane %v3307_v13, %v8322_v3 }
 0x662   : > { %v4898_v47 = vcombine.low %v3721_v62, %v3725_v34  ;;  %v4899_v20 = vcombine.low %v3729_v12, %v3733_v54  ;;  %v4906_v24 = vrot.slane %v4896_v5, %v8346_v60  ;;  %v3933_v19 = vrot.slane %v3307_v13, %v8325_v6 }
 0x663   : > { %v5188_v26 = vrot.slane %v5174_v31, %v8346_v60  ;;  %v4913_v1 = vrot.slane %v4897_v38, %v8346_v60  ;;  %v3937_v57 = vrot.slane %v3307_v13, %v8328_v17  ;;  %v3941_v52 = vrot.slane %v3307_v13, %v8331_v42  ;;  %v3298_v38 = vpop.xlane.xlu0 %3297 }
 0x664   : > { %v4920_v10 = vrot.slane %v4898_v47, %v8346_v60  ;;  %v4927_v51 = vrot.slane %v4899_v20, %v8346_v60  ;;  %v3945_v59 = vrot.slane %v3307_v13, %v8334_v63  ;;  %v3949_v9 = vrot.slane %v3307_v13, %v8337_v39 }
 0x665   : > { %v5189_v40 = vcombine.low %v5181_v49, %v5188_v26  ;;  %v4928_v33 = vcombine.low %v4906_v24, %v4913_v1  ;;  %v3953_v45 = vrot.slane %v3307_v13, %v8340_v4  ;;  %v3957_v58 = vrot.slane %v3307_v13, %v8343_v2 }
 0x666   : > { %v4929_v18 = vcombine.low %v4920_v10, %v4927_v51  ;;  %v5239_v36 = vcombine.low %v3929_v46, %v3933_v19  ;;  %v5240_v28 = vcombine.low %v3937_v57, %v3941_v52  ;;  %v5241_v23 = vcombine.low %v3945_v59, %v3949_v9 }
 0x667   : > { %6020 = vperm.xlu0 %6650, %v5189_v40   ;;  %v4936_v32 = vrot.slane %v4928_v33, %v8346_v60  ;;  %v5242_v55 = vcombine.low %v3953_v45, %v3957_v58  ;;  %v3769_v37 = vrot.slane %v3292_v41, %v8322_v3  ;;  %v3773_v14 = vrot.slane %v3292_v41, %v8325_v6 }
 0x668   : > { %v4943_v56 = vrot.slane %v4929_v18, %v8346_v60  ;;  %v5249_v48 = vrot.slane %v5239_v36, %v8346_v60  ;;  %v5256_v21 = vrot.slane %v5240_v28, %v8346_v60  ;;  %v5263_v7 = vrot.slane %v5241_v23, %v8346_v60 }
 0x669   : > { %v5270_v50 = vrot.slane %v5242_v55, %v8346_v60  ;;  %v3777_v35 = vrot.slane %v3292_v41, %v8328_v17  ;;  %v3781_v11 = vrot.slane %v3292_v41, %v8331_v42  ;;  %v3785_v27 = vrot.slane %v3292_v41, %v8334_v63 }
 0x66a   : > { %v4944_v53 = vcombine.low %v4936_v32, %v4943_v56  ;;  %v5271_v13 = vcombine.low %v5249_v48, %v5256_v21  ;;  %v3789_v61 = vrot.slane %v3292_v41, %v8337_v39  ;;  %v3793_v30 = vrot.slane %v3292_v41, %v8340_v4 }
 0x66b   : > { %v5272_v0 = vcombine.low %v5263_v7, %v5270_v50  ;;  %v3797_v16 = vrot.slane %v3292_v41, %v8343_v2  ;;  %v4994_v22 = vcombine.low %v3769_v37, %v3773_v14  ;;  %v4995_v15 = vcombine.low %v3777_v35, %v3781_v11  ;;  %v3319_v37 = vpop.xlane.xlu1 %3318 }
 0x66c   : > { %6005 = vperm.xlu1 %6651, %v4944_v53   ;;  %v5279_v43 = vrot.slane %v5271_v13, %v8346_v60  ;;  %v4996_v62 = vcombine.low %v3785_v27, %v3789_v61  ;;  %v3993_v34 = vrot.slane %v3313_v44, %v8322_v3  ;;  %v3997_v12 = vrot.slane %v3313_v44, %v8325_v6 }
 0x66d   : > { %v5286_v54 = vrot.slane %v5272_v0, %v8346_v60  ;;  %v4997_v5 = vcombine.low %v3793_v30, %v3797_v16  ;;  %v5004_v31 = vrot.slane %v4994_v22, %v8346_v60  ;;  %v5011_v49 = vrot.slane %v4995_v15, %v8346_v60 }
 0x66e   : > { %v5018_v46 = vrot.slane %v4996_v62, %v8346_v60  ;;  %v4001_v47 = vrot.slane %v3313_v44, %v8328_v17  ;;  %v4005_v20 = vrot.slane %v3313_v44, %v8331_v42  ;;  %v4009_v24 = vrot.slane %v3313_v44, %v8334_v63 }
 0x66f   : > { %v5287_v19 = vcombine.low %v5279_v43, %v5286_v54  ;;  %v5025_v26 = vrot.slane %v4997_v5, %v8346_v60  ;;  %v5026_v1 = vcombine.low %v5004_v31, %v5011_v49  ;;  %v4013_v57 = vrot.slane %v3313_v44, %v8337_v39 }
 0x670   : > { %v4017_v52 = vrot.slane %v3313_v44, %v8340_v4  ;;  %v4021_v41 = vrot.slane %v3313_v44, %v8343_v2  ;;  %v5337_v10 = vcombine.low %v3993_v34, %v3997_v12  ;;  %v5338_v51 = vcombine.low %v4001_v47, %v4005_v20  ;;  %v3304_v34 = vpop.xlane.xlu0 %3303 }
 0x671   : > { %6026 = vperm.xlu0 %6650, %v5287_v19   ;;  %v5027_v59 = vcombine.low %v5018_v46, %v5025_v26  ;;  %v5034_v9 = vrot.slane %v5026_v1, %v8346_v60  ;;  %v5339_v40 = vcombine.low %v4009_v24, %v4013_v57  ;;  %v3833_v33 = vrot.slane %v3298_v38, %v8322_v3 }
 0x672   : > { %v5340_v45 = vcombine.low %v4017_v52, %v4021_v41  ;;  %v5347_v58 = vrot.slane %v5337_v10, %v8346_v60  ;;  %v5354_v18 = vrot.slane %v5338_v51, %v8346_v60  ;;  %v3837_v36 = vrot.slane %v3298_v38, %v8325_v6 }
 0x673   : > { %v5041_v28 = vrot.slane %v5027_v59, %v8346_v60  ;;  %v5361_v23 = vrot.slane %v5339_v40, %v8346_v60  ;;  %v3841_v32 = vrot.slane %v3298_v38, %v8328_v17  ;;  %v3845_v55 = vrot.slane %v3298_v38, %v8331_v42  ;;  %v3325_v40 = vpop.xlane.xlu1 %3324 }
 0x674   : > { %v5368_v14 = vrot.slane %v5340_v45, %v8346_v60  ;;  %v5369_v56 = vcombine.low %v5347_v58, %v5354_v18  ;;  %v3849_v48 = vrot.slane %v3298_v38, %v8334_v63  ;;  %v3853_v21 = vrot.slane %v3298_v38, %v8337_v39 }
 0x675   : > { %v5042_v7 = vcombine.low %v5034_v9, %v5041_v28  ;;  %v3857_v44 = vrot.slane %v3298_v38, %v8340_v4  ;;  %v3861_v50 = vrot.slane %v3298_v38, %v8343_v2  ;;  %v5092_v35 = vcombine.low %v3833_v33, %v3837_v36 }
 0x676   : > { %v5370_v11 = vcombine.low %v5361_v23, %v5368_v14  ;;  %v5377_v27 = vrot.slane %v5369_v56, %v8346_v60  ;;  %v5093_v53 = vcombine.low %v3841_v32, %v3845_v55  ;;  %v5094_v13 = vcombine.low %v3849_v48, %v3853_v21 }
 0x677   : > { %6011 = vperm.xlu1 %6651, %v5042_v7   ;;  %v5095_v61 = vcombine.low %v3857_v44, %v3861_v50  ;;  %v5102_v30 = vrot.slane %v5092_v35, %v8346_v60  ;;  %v4057_v0 = vrot.slane %v3319_v37, %v8322_v3  ;;  %v4061_v16 = vrot.slane %v3319_v37, %v8325_v6 }
 0x678   : > { %v5384_v22 = vrot.slane %v5370_v11, %v8346_v60  ;;  %v5109_v15 = vrot.slane %v5093_v53, %v8346_v60  ;;  %v5116_v43 = vrot.slane %v5094_v13, %v8346_v60  ;;  %v4065_v62 = vrot.slane %v3319_v37, %v8328_v17  ;;  %v3310_v53 = vpop.xlane.xlu0 %3309 }
 0x679   : > { %v5123_v12 = vrot.slane %v5095_v61, %v8346_v60  ;;  %v4069_v54 = vrot.slane %v3319_v37, %v8331_v42  ;;  %v4073_v5 = vrot.slane %v3319_v37, %v8334_v63  ;;  %v4077_v31 = vrot.slane %v3319_v37, %v8337_v39 }
 0x67a   : > { %v5385_v49 = vcombine.low %v5377_v27, %v5384_v22  ;;  %v5124_v38 = vcombine.low %v5102_v30, %v5109_v15  ;;  %v4081_v46 = vrot.slane %v3319_v37, %v8340_v4  ;;  %v4085_v47 = vrot.slane %v3319_v37, %v8343_v2 }
 0x67b   : > { %v5125_v20 = vcombine.low %v5116_v43, %v5123_v12  ;;  %v5435_v24 = vcombine.low %v4057_v0, %v4061_v16  ;;  %v5436_v19 = vcombine.low %v4065_v62, %v4069_v54  ;;  %v5437_v26 = vcombine.low %v4073_v5, %v4077_v31 }
 0x67c   : > { %6032 = vperm.xlu0 %6650, %v5385_v49   ;;  %v5132_v1 = vrot.slane %v5124_v38, %v8346_v60  ;;  %v5438_v57 = vcombine.low %v4081_v46, %v4085_v47  ;;  %v3897_v52 = vrot.slane %v3304_v34, %v8322_v3  ;;  %v3901_v41 = vrot.slane %v3304_v34, %v8325_v6 }
 0x67d   : > { %v5139_v10 = vrot.slane %v5125_v20, %v8346_v60  ;;  %v5445_v51 = vrot.slane %v5435_v24, %v8346_v60  ;;  %v5452_v59 = vrot.slane %v5436_v19, %v8346_v60  ;;  %v5459_v9 = vrot.slane %v5437_v26, %v8346_v60 }
 0x67e   : > { %v5466_v33 = vrot.slane %v5438_v57, %v8346_v60  ;;  %v3905_v45 = vrot.slane %v3304_v34, %v8328_v17  ;;  %v3909_v58 = vrot.slane %v3304_v34, %v8331_v42  ;;  %v3913_v18 = vrot.slane %v3304_v34, %v8334_v63 }
 0x67f   : > { %v5140_v36 = vcombine.low %v5132_v1, %v5139_v10  ;;  %v5467_v28 = vcombine.low %v5445_v51, %v5452_v59  ;;  %v3917_v23 = vrot.slane %v3304_v34, %v8337_v39  ;;  %v3921_v32 = vrot.slane %v3304_v34, %v8340_v4 }
 0x680   : > { %v5468_v55 = vcombine.low %v5459_v9, %v5466_v33  ;;  %v3925_v37 = vrot.slane %v3304_v34, %v8343_v2  ;;  %v5190_v14 = vcombine.low %v3897_v52, %v3901_v41  ;;  %v5191_v56 = vcombine.low %v3905_v45, %v3909_v58  ;;  %v3331_v52 = vpop.xlane.xlu1 %3330 }
 0x681   : > { %6017 = vperm.xlu1 %6651, %v5140_v36   ;;  %v5475_v48 = vrot.slane %v5467_v28, %v8346_v60  ;;  %v5192_v21 = vcombine.low %v3913_v18, %v3917_v23  ;;  %v4121_v7 = vrot.slane %v3325_v40, %v8322_v3  ;;  %v4125_v44 = vrot.slane %v3325_v40, %v8325_v6 }
 0x682   : > { %v5482_v50 = vrot.slane %v5468_v55, %v8346_v60  ;;  %v5193_v35 = vcombine.low %v3921_v32, %v3925_v37  ;;  %v5200_v11 = vrot.slane %v5190_v14, %v8346_v60  ;;  %v5207_v27 = vrot.slane %v5191_v56, %v8346_v60 }
 0x683   : > { %v5214_v13 = vrot.slane %v5192_v21, %v8346_v60  ;;  %v4129_v61 = vrot.slane %v3325_v40, %v8328_v17  ;;  %v4133_v30 = vrot.slane %v3325_v40, %v8331_v42  ;;  %v4137_v0 = vrot.slane %v3325_v40, %v8334_v63 }
 0x684   : > { %v5483_v16 = vcombine.low %v5475_v48, %v5482_v50  ;;  %v5221_v22 = vrot.slane %v5193_v35, %v8346_v60  ;;  %v5222_v15 = vcombine.low %v5200_v11, %v5207_v27  ;;  %v4141_v43 = vrot.slane %v3325_v40, %v8337_v39 }
 0x685   : > { %v4145_v62 = vrot.slane %v3325_v40, %v8340_v4  ;;  %v4149_v34 = vrot.slane %v3325_v40, %v8343_v2  ;;  %v5533_v12 = vcombine.low %v4121_v7, %v4125_v44  ;;  %v5534_v54 = vcombine.low %v4129_v61, %v4133_v30  ;;  %v3316_v7 = vpop.xlane.xlu0 %3315 }
 0x686   : > { %6038 = vperm.xlu0 %6650, %v5483_v16   ;;  %v5223_v5 = vcombine.low %v5214_v13, %v5221_v22  ;;  %v5230_v31 = vrot.slane %v5222_v15, %v8346_v60  ;;  %v5535_v49 = vcombine.low %v4137_v0, %v4141_v43  ;;  %v3961_v38 = vrot.slane %v3310_v53, %v8322_v3 }
 0x687   : > { %v5536_v46 = vcombine.low %v4145_v62, %v4149_v34  ;;  %v5543_v47 = vrot.slane %v5533_v12, %v8346_v60  ;;  %v5550_v20 = vrot.slane %v5534_v54, %v8346_v60  ;;  %v3965_v24 = vrot.slane %v3310_v53, %v8325_v6 }
 0x688   : > { %v5237_v19 = vrot.slane %v5223_v5, %v8346_v60  ;;  %v5557_v26 = vrot.slane %v5535_v49, %v8346_v60  ;;  %v3969_v1 = vrot.slane %v3310_v53, %v8328_v17  ;;  %v3973_v57 = vrot.slane %v3310_v53, %v8331_v42  ;;  %v3337_v49 = vpop.xlane.xlu1 %3336 }
 0x689   : > { %v5564_v41 = vrot.slane %v5536_v46, %v8346_v60  ;;  %v5565_v10 = vcombine.low %v5543_v47, %v5550_v20  ;;  %v3977_v51 = vrot.slane %v3310_v53, %v8334_v63  ;;  %v3981_v59 = vrot.slane %v3310_v53, %v8337_v39 }
 0x68a   : > { %v5238_v9 = vcombine.low %v5230_v31, %v5237_v19  ;;  %v3985_v40 = vrot.slane %v3310_v53, %v8340_v4  ;;  %v3989_v33 = vrot.slane %v3310_v53, %v8343_v2  ;;  %v5288_v45 = vcombine.low %v3961_v38, %v3965_v24 }
 0x68b   : > { %v5566_v58 = vcombine.low %v5557_v26, %v5564_v41  ;;  %v5573_v18 = vrot.slane %v5565_v10, %v8346_v60  ;;  %v5289_v36 = vcombine.low %v3969_v1, %v3973_v57  ;;  %v5290_v28 = vcombine.low %v3977_v51, %v3981_v59 }
 0x68c   : > { %6023 = vperm.xlu1 %6651, %v5238_v9   ;;  %v5291_v23 = vcombine.low %v3985_v40, %v3989_v33  ;;  %v5298_v32 = vrot.slane %v5288_v45, %v8346_v60  ;;  %v4185_v55 = vrot.slane %v3331_v52, %v8322_v3  ;;  %v4189_v37 = vrot.slane %v3331_v52, %v8325_v6 }
 0x68d   : > { %v5580_v14 = vrot.slane %v5566_v58, %v8346_v60  ;;  %v5305_v56 = vrot.slane %v5289_v36, %v8346_v60  ;;  %v5312_v48 = vrot.slane %v5290_v28, %v8346_v60  ;;  %v4193_v21 = vrot.slane %v3331_v52, %v8328_v17  ;;  %v3322_v36 = vpop.xlane.xlu0 %3321 }
 0x68e   : > { %v5319_v44 = vrot.slane %v5291_v23, %v8346_v60  ;;  %v4197_v50 = vrot.slane %v3331_v52, %v8331_v42  ;;  %v4201_v35 = vrot.slane %v3331_v52, %v8334_v63  ;;  %v4205_v11 = vrot.slane %v3331_v52, %v8337_v39 }
 0x68f   : > { %v5581_v27 = vcombine.low %v5573_v18, %v5580_v14  ;;  %v5320_v53 = vcombine.low %v5298_v32, %v5305_v56  ;;  %v4209_v13 = vrot.slane %v3331_v52, %v8340_v4  ;;  %v4213_v61 = vrot.slane %v3331_v52, %v8343_v2 }
 0x690   : > { %v5321_v30 = vcombine.low %v5312_v48, %v5319_v44  ;;  %v5631_v0 = vcombine.low %v4185_v55, %v4189_v37  ;;  %v5632_v16 = vcombine.low %v4193_v21, %v4197_v50  ;;  %v5633_v22 = vcombine.low %v4201_v35, %v4205_v11 }
 0x691   : > { %6044 = vperm.xlu0 %6650, %v5581_v27   ;;  %v5328_v15 = vrot.slane %v5320_v53, %v8346_v60  ;;  %v5634_v43 = vcombine.low %v4209_v13, %v4213_v61  ;;  %v4025_v62 = vrot.slane %v3316_v7, %v8322_v3  ;;  %v4029_v34 = vrot.slane %v3316_v7, %v8325_v6 }
 0x692   : > { %v5335_v12 = vrot.slane %v5321_v30, %v8346_v60  ;;  %v5641_v54 = vrot.slane %v5631_v0, %v8346_v60  ;;  %v5648_v5 = vrot.slane %v5632_v16, %v8346_v60  ;;  %v5655_v31 = vrot.slane %v5633_v22, %v8346_v60 }
 0x693   : > { %v5662_v38 = vrot.slane %v5634_v43, %v8346_v60  ;;  %v4033_v46 = vrot.slane %v3316_v7, %v8328_v17  ;;  %v4037_v47 = vrot.slane %v3316_v7, %v8331_v42  ;;  %v4041_v20 = vrot.slane %v3316_v7, %v8334_v63 }
 0x694   : > { %v5336_v24 = vcombine.low %v5328_v15, %v5335_v12  ;;  %v5663_v19 = vcombine.low %v5641_v54, %v5648_v5  ;;  %v4045_v26 = vrot.slane %v3316_v7, %v8337_v39  ;;  %v4049_v1 = vrot.slane %v3316_v7, %v8340_v4 }
 0x695   : > { %v5664_v57 = vcombine.low %v5655_v31, %v5662_v38  ;;  %v4053_v52 = vrot.slane %v3316_v7, %v8343_v2  ;;  %v5386_v41 = vcombine.low %v4025_v62, %v4029_v34  ;;  %v5387_v10 = vcombine.low %v4033_v46, %v4037_v47  ;;  %v3343_v62 = vpop.xlane.xlu1 %3342 }
 0x696   : > { %6029 = vperm.xlu1 %6651, %v5336_v24   ;;  %v5671_v51 = vrot.slane %v5663_v19, %v8346_v60  ;;  %v5388_v59 = vcombine.low %v4041_v20, %v4045_v26  ;;  %v4249_v9 = vrot.slane %v3337_v49, %v8322_v3  ;;  %v4253_v40 = vrot.slane %v3337_v49, %v8325_v6 }
 0x697   : > { %v5678_v33 = vrot.slane %v5664_v57, %v8346_v60  ;;  %v5389_v45 = vcombine.low %v4049_v1, %v4053_v52  ;;  %v5396_v58 = vrot.slane %v5386_v41, %v8346_v60  ;;  %v5403_v18 = vrot.slane %v5387_v10, %v8346_v60 }
 0x698   : > { %v5410_v28 = vrot.slane %v5388_v59, %v8346_v60  ;;  %v4257_v23 = vrot.slane %v3337_v49, %v8328_v17  ;;  %v4261_v32 = vrot.slane %v3337_v49, %v8331_v42  ;;  %v4265_v55 = vrot.slane %v3337_v49, %v8334_v63 }
 0x699   : > { %v5679_v37 = vcombine.low %v5671_v51, %v5678_v33  ;;  %v5417_v14 = vrot.slane %v5389_v45, %v8346_v60  ;;  %v5418_v56 = vcombine.low %v5396_v58, %v5403_v18  ;;  %v4269_v48 = vrot.slane %v3337_v49, %v8337_v39 }
 0x69a   : > { %v4273_v21 = vrot.slane %v3337_v49, %v8340_v4  ;;  %v4277_v7 = vrot.slane %v3337_v49, %v8343_v2  ;;  %v5729_v44 = vcombine.low %v4249_v9, %v4253_v40  ;;  %v5730_v50 = vcombine.low %v4257_v23, %v4261_v32  ;;  %v3328_v9 = vpop.xlane.xlu0 %3327 }
 0x69b   : > { %6050 = vperm.xlu0 %6650, %v5679_v37   ;;  %v5419_v35 = vcombine.low %v5410_v28, %v5417_v14  ;;  %v5426_v11 = vrot.slane %v5418_v56, %v8346_v60  ;;  %v5731_v27 = vcombine.low %v4265_v55, %v4269_v48  ;;  %v4089_v53 = vrot.slane %v3322_v36, %v8322_v3 }
 0x69c   : > { %v5732_v13 = vcombine.low %v4273_v21, %v4277_v7  ;;  %v5739_v61 = vrot.slane %v5729_v44, %v8346_v60  ;;  %v5746_v30 = vrot.slane %v5730_v50, %v8346_v60  ;;  %v4093_v0 = vrot.slane %v3322_v36, %v8325_v6 }
 0x69d   : > { %v5433_v16 = vrot.slane %v5419_v35, %v8346_v60  ;;  %v5753_v22 = vrot.slane %v5731_v27, %v8346_v60  ;;  %v4097_v15 = vrot.slane %v3322_v36, %v8328_v17  ;;  %v4101_v43 = vrot.slane %v3322_v36, %v8331_v42  ;;  %v3349_v27 = vpop.xlane.xlu1 %3348 }
 0x69e   : > { %v5760_v34 = vrot.slane %v5732_v13, %v8346_v60  ;;  %v5761_v12 = vcombine.low %v5739_v61, %v5746_v30  ;;  %v4105_v54 = vrot.slane %v3322_v36, %v8334_v63  ;;  %v4109_v5 = vrot.slane %v3322_v36, %v8337_v39 }
 0x69f   : > { %v5434_v31 = vcombine.low %v5426_v11, %v5433_v16  ;;  %v4113_v49 = vrot.slane %v3322_v36, %v8340_v4  ;;  %v4117_v38 = vrot.slane %v3322_v36, %v8343_v2  ;;  %v5484_v46 = vcombine.low %v4089_v53, %v4093_v0 }
 0x6a0   : > { %v5762_v47 = vcombine.low %v5753_v22, %v5760_v34  ;;  %v5769_v20 = vrot.slane %v5761_v12, %v8346_v60  ;;  %v5485_v24 = vcombine.low %v4097_v15, %v4101_v43  ;;  %v5486_v19 = vcombine.low %v4105_v54, %v4109_v5 }
 0x6a1   : > { %6035 = vperm.xlu1 %6651, %v5434_v31   ;;  %v5487_v26 = vcombine.low %v4113_v49, %v4117_v38  ;;  %v5494_v1 = vrot.slane %v5484_v46, %v8346_v60  ;;  %v4313_v57 = vrot.slane %v3343_v62, %v8322_v3  ;;  %v4317_v52 = vrot.slane %v3343_v62, %v8325_v6  ;;  %v3334_v38 = vpop.xlane.xlu0 %3333 }
 0x6a2   : > { %v5776_v41 = vrot.slane %v5762_v47, %v8346_v60  ;;  %v5501_v10 = vrot.slane %v5485_v24, %v8346_v60  ;;  %v5508_v51 = vrot.slane %v5486_v19, %v8346_v60  ;;  %v4321_v59 = vrot.slane %v3343_v62, %v8328_v17 }
 0x6a3   : > { %v5515_v40 = vrot.slane %v5487_v26, %v8346_v60  ;;  %v4325_v33 = vrot.slane %v3343_v62, %v8331_v42  ;;  %v4329_v45 = vrot.slane %v3343_v62, %v8334_v63  ;;  %v4333_v58 = vrot.slane %v3343_v62, %v8337_v39 }
 0x6a4   : > { %v5777_v18 = vcombine.low %v5769_v20, %v5776_v41  ;;  %v5516_v36 = vcombine.low %v5494_v1, %v5501_v10  ;;  %v4337_v28 = vrot.slane %v3343_v62, %v8340_v4  ;;  %v4341_v23 = vrot.slane %v3343_v62, %v8343_v2 }
 0x6a5   : > { %v5517_v32 = vcombine.low %v5508_v51, %v5515_v40  ;;  %v5827_v55 = vcombine.low %v4313_v57, %v4317_v52  ;;  %v5828_v37 = vcombine.low %v4321_v59, %v4325_v33  ;;  %v5829_v14 = vcombine.low %v4329_v45, %v4333_v58 }
 0x6a6   : > { %6056 = vperm.xlu0 %6650, %v5777_v18   ;;  %v5524_v56 = vrot.slane %v5516_v36, %v8346_v60  ;;  %v5830_v48 = vcombine.low %v4337_v28, %v4341_v23  ;;  %v4153_v21 = vrot.slane %v3328_v9, %v8322_v3  ;;  %v4157_v7 = vrot.slane %v3328_v9, %v8325_v6 }
 0x6a7   : > { %v5531_v44 = vrot.slane %v5517_v32, %v8346_v60  ;;  %v5837_v50 = vrot.slane %v5827_v55, %v8346_v60  ;;  %v5844_v35 = vrot.slane %v5828_v37, %v8346_v60  ;;  %v5851_v11 = vrot.slane %v5829_v14, %v8346_v60  ;;  %v3340_v37 = vpop.xlane.xlu0 %3339 }
 0x6a8   : > { %v5858_v53 = vrot.slane %v5830_v48, %v8346_v60  ;;  %v4161_v13 = vrot.slane %v3328_v9, %v8328_v17  ;;  %v4165_v61 = vrot.slane %v3328_v9, %v8331_v42  ;;  %v4169_v30 = vrot.slane %v3328_v9, %v8334_v63 }
 0x6a9   : > { %v5532_v0 = vcombine.low %v5524_v56, %v5531_v44  ;;  %v5859_v16 = vcombine.low %v5837_v50, %v5844_v35  ;;  %v4173_v22 = vrot.slane %v3328_v9, %v8337_v39  ;;  %v4177_v15 = vrot.slane %v3328_v9, %v8340_v4 }
 0x6aa   : > { %v5860_v43 = vcombine.low %v5851_v11, %v5858_v53  ;;  %v4181_v62 = vrot.slane %v3328_v9, %v8343_v2  ;;  %v5582_v34 = vcombine.low %v4153_v21, %v4157_v7  ;;  %v5583_v12 = vcombine.low %v4161_v13, %v4165_v61 }
 0x6ab   : > { %6041 = vperm.xlu1 %6651, %v5532_v0   ;;  %v5867_v54 = vrot.slane %v5859_v16, %v8346_v60  ;;  %v5584_v5 = vcombine.low %v4169_v30, %v4173_v22  ;;  %v4377_v31 = vrot.slane %v3349_v27, %v8322_v3  ;;  %v4381_v49 = vrot.slane %v3349_v27, %v8325_v6 }
 0x6ac   : > { %v5874_v46 = vrot.slane %v5860_v43, %v8346_v60  ;;  %v5585_v47 = vcombine.low %v4177_v15, %v4181_v62  ;;  %v5592_v20 = vrot.slane %v5582_v34, %v8346_v60  ;;  %v5599_v24 = vrot.slane %v5583_v12, %v8346_v60 }
 0x6ad   : > { %v5606_v19 = vrot.slane %v5584_v5, %v8346_v60  ;;  %v4385_v26 = vrot.slane %v3349_v27, %v8328_v17  ;;  %v4389_v1 = vrot.slane %v3349_v27, %v8331_v42  ;;  %v4393_v57 = vrot.slane %v3349_v27, %v8334_v63 }
 0x6ae   : > { %v5875_v52 = vcombine.low %v5867_v54, %v5874_v46  ;;  %v5613_v41 = vrot.slane %v5585_v47, %v8346_v60  ;;  %v5614_v10 = vcombine.low %v5592_v20, %v5599_v24  ;;  %v4397_v51 = vrot.slane %v3349_v27, %v8337_v39 }
 0x6af   : > { %v4401_v59 = vrot.slane %v3349_v27, %v8340_v4  ;;  %v4405_v9 = vrot.slane %v3349_v27, %v8343_v2  ;;  %v5925_v40 = vcombine.low %v4377_v31, %v4381_v49  ;;  %v5926_v33 = vcombine.low %v4385_v26, %v4389_v1  ;;  %v3346_v31 = vpop.xlane.xlu0 %3345 }
 0x6b0   : > { %6062 = vperm.xlu0 %6650, %v5875_v52   ;;  %v5615_v45 = vcombine.low %v5606_v19, %v5613_v41  ;;  %v5622_v58 = vrot.slane %v5614_v10, %v8346_v60  ;;  %v5927_v18 = vcombine.low %v4393_v57, %v4397_v51  ;;  %v4217_v36 = vrot.slane %v3334_v38, %v8322_v3 }
 0x6b1   : > { %v5928_v28 = vcombine.low %v4401_v59, %v4405_v9  ;;  %v5935_v23 = vrot.slane %v5925_v40, %v8346_v60  ;;  %v5942_v32 = vrot.slane %v5926_v33, %v8346_v60  ;;  %v4221_v55 = vrot.slane %v3334_v38, %v8325_v6 }
 0x6b2   : > { %v5629_v14 = vrot.slane %v5615_v45, %v8346_v60  ;;  %v5949_v56 = vrot.slane %v5927_v18, %v8346_v60  ;;  %v4225_v48 = vrot.slane %v3334_v38, %v8328_v17  ;;  %v4229_v21 = vrot.slane %v3334_v38, %v8331_v42 }
 0x6b3   : > { %v5956_v7 = vrot.slane %v5928_v28, %v8346_v60  ;;  %v5957_v44 = vcombine.low %v5935_v23, %v5942_v32  ;;  %v4233_v50 = vrot.slane %v3334_v38, %v8334_v63  ;;  %v4237_v35 = vrot.slane %v3334_v38, %v8337_v39 }
 0x6b4   : > { %v5630_v11 = vcombine.low %v5622_v58, %v5629_v14  ;;  %v4241_v27 = vrot.slane %v3334_v38, %v8340_v4  ;;  %v4245_v53 = vrot.slane %v3334_v38, %v8343_v2  ;;  %v5680_v13 = vcombine.low %v4217_v36, %v4221_v55 }
 0x6b5   : > { %v5958_v61 = vcombine.low %v5949_v56, %v5956_v7  ;;  %v5965_v30 = vrot.slane %v5957_v44, %v8346_v60  ;;  %v5681_v0 = vcombine.low %v4225_v48, %v4229_v21  ;;  %v5682_v16 = vcombine.low %v4233_v50, %v4237_v35 }
 0x6b6   : > { %6047 = vperm.xlu1 %6651, %v5630_v11   ;;  %v5683_v22 = vcombine.low %v4241_v27, %v4245_v53  ;;  %v5690_v15 = vrot.slane %v5680_v13, %v8346_v60  ;;  %v4281_v43 = vrot.slane %v3340_v37, %v8322_v3  ;;  %v4285_v62 = vrot.slane %v3340_v37, %v8325_v6  ;;  %v5979_v13 = vpop.permute.xlu1 %5978 }
 0x6b7   : > { %v5972_v34 = vrot.slane %v5958_v61, %v8346_v60  ;;  %v5697_v12 = vrot.slane %v5681_v0, %v8346_v60  ;;  %v5704_v54 = vrot.slane %v5682_v16, %v8346_v60  ;;  %v4289_v5 = vrot.slane %v3340_v37, %v8328_v17 }
 0x6b8   : > { %v5711_v49 = vrot.slane %v5683_v22, %v8346_v60  ;;  %v4293_v38 = vrot.slane %v3340_v37, %v8331_v42  ;;  %v4297_v46 = vrot.slane %v3340_v37, %v8334_v63  ;;  %v4301_v47 = vrot.slane %v3340_v37, %v8337_v39 }
 0x6b9   : > { %v5973_v20 = vcombine.low %v5965_v30, %v5972_v34  ;;  %v5712_v24 = vcombine.low %v5690_v15, %v5697_v12  ;;  %v4305_v19 = vrot.slane %v3340_v37, %v8340_v4  ;;  %v4309_v26 = vrot.slane %v3340_v37, %v8343_v2  ;;  %v5976_v15 = vpop.permute.xlu0 %5975 }
 0x6ba   : > { %v5713_v1 = vcombine.low %v5704_v54, %v5711_v49  ;;  %v5778_v57 = vcombine.low %v4281_v43, %v4285_v62  ;;  %v5779_v52 = vcombine.low %v4289_v5, %v4293_v38  ;;  %v5780_v41 = vcombine.low %v4297_v46, %v4301_v47  ;;  %v8834_v61 = vpop.permute.xlu1 %5981 }
 0x6bb   : > { %6068 = vperm.xlu0 %6650, %v5973_v20   ;;  %v5720_v10 = vrot.slane %v5712_v24, %v8346_v60  ;;  %v5781_v51 = vcombine.low %v4305_v19, %v4309_v26  ;;  %v4345_v59 = vrot.slane %v3346_v31, %v8322_v3  ;;  %v4349_v9 = vrot.slane %v3346_v31, %v8325_v6 }
 0x6bc   : > { %v5727_v40 = vrot.slane %v5713_v1, %v8346_v60  ;;  %v5788_v33 = vrot.slane %v5778_v57, %v8346_v60  ;;  %v5795_v45 = vrot.slane %v5779_v52, %v8346_v60  ;;  %v5802_v58 = vrot.slane %v5780_v41, %v8346_v60 }
 0x6bd   : > { %v5809_v18 = vrot.slane %v5781_v51, %v8346_v60  ;;  %v4353_v36 = vrot.slane %v3346_v31, %v8328_v17  ;;  %v4357_v28 = vrot.slane %v3346_v31, %v8331_v42  ;;  %v4361_v23 = vrot.slane %v3346_v31, %v8334_v63 }
 0x6be   : > { %v5728_v32 = vcombine.low %v5720_v10, %v5727_v40  ;;  %v5810_v3 = vcombine.low %v5788_v33, %v5795_v45  ;;  %v4365_v6 = vrot.slane %v3346_v31, %v8337_v39  ;;  %v4369_v55 = vrot.slane %v3346_v31, %v8340_v4 }
 0x6bf   : > { %v5811_v37 = vcombine.low %v5802_v58, %v5809_v18  ;;  %v4373_v14 = vrot.slane %v3346_v31, %v8343_v2  ;;  %v5876_v56 = vcombine.low %v4345_v59, %v4349_v9  ;;  %v5877_v48 = vcombine.low %v4353_v36, %v4357_v28 }
 0x6c0   : > { %6053 = vperm.xlu1 %6651, %v5728_v32   ;;  %v5818_v21 = vrot.slane %v5810_v3, %v8346_v60  ;;  %v5878_v7 = vcombine.low %v4361_v23, %v4365_v6  ;;  %v6074_v19 = vadd.s32 4294967288, %v7354_v8  ;;  %v6081_v26 = vadd.s32 4294967280, %v7354_v8 }
 0x6c1   : > { %v5825_v17 = vrot.slane %v5811_v37, %v8346_v60  ;;  %v5879_v42 = vcombine.low %v4369_v55, %v4373_v14  ;;  %v5886_v63 = vrot.slane %v5876_v56, %v8346_v60  ;;  %v5893_v44 = vrot.slane %v5877_v48, %v8346_v60  ;;  %v8836_v30 = vpop.permute.xlu1 %5984 }
 0x6c2   : > { %v5900_v39 = vrot.slane %v5878_v7, %v8346_v60  ;;  %v6077_v57 = vsub.s32 %v6074_v19, %v6977_v29  ;;  %v6088_v52 = vadd.s32 4294967272, %v7354_v8  ;;  %v6072_v10 = vsub.s32 %v7354_v8, %v6977_v29 }
 0x6c3   : > { %v5826_v50 = vcombine.low %v5818_v21, %v5825_v17  ;;  %v5907_v4 = vrot.slane %v5879_v42, %v8346_v60  ;;  %v5908_v35 = vcombine.low %v5886_v63, %v5893_v44  ;;  %v6095_v51 = vadd.s32 4294967264, %v7354_v8 }
 0x6c4   : > { %v6084_v59 = vsub.s32 %v6081_v26, %v6977_v29  ;;  %v6078_v9 = vrot.slane %v5979_v13, %v6077_v57  ;;  %v6102_v40 = vadd.s32 4294967256, %v7354_v8  ;;  %v6091_v45 = vsub.s32 %v6088_v52, %v6977_v29 }
 0x6c5   : > { %6059 = vperm.xlu1 %6651, %v5826_v50   ;;  %v5909_v2 = vcombine.low %v5900_v39, %v5907_v4  ;;  %v5916_v11 = vrot.slane %v5908_v35, %v8346_v60  ;;  %v8838_v0 = vpop.permute.xlu1 %5987  ;;  %v6109_v58 = vadd.s32 4294967248, %v7354_v8  ;;  %v6073_v28 = vrot.slane %v5976_v15, %v6072_v10 }
 0x6c6   : > { %v6098_v23 = vsub.s32 %v6095_v51, %v6977_v29  ;;  %v6116_v32 = vadd.s32 4294967240, %v7354_v8  ;;  %v6123_v6 = vadd.s32 4294967232, %v7354_v8  ;;  %v6085_v14 = vrot.slane %v8834_v61, %v6084_v59 }
 0x6c7   : > { %v5923_v27 = vrot.slane %v5909_v2, %v8346_v60  ;;  %v6080_v37 = vsel %vm6079_vm6, %v6078_v9, %v6073_v28  ;;  %v6105_v56 = vsub.s32 %v6102_v40, %v6977_v29  ;;  %v6092_v21 = vrot.slane %v8836_v30, %v6091_v45 }
 0x6c8   : > { %v6112_v7 = vsub.s32 %v6109_v58, %v6977_v29  ;;  %v6099_v63 = vrot.slane %v8838_v0, %v6098_v23  ;;  %v6119_v44 = vsub.s32 %v6116_v32, %v6977_v29  ;;  %v6126_v50 = vsub.s32 %v6123_v6, %v6977_v29 }
 0x6c9   : > { %v5924_v53 = vcombine.low %v5916_v11, %v5923_v27  ;;  %v8840_v16 = vpop.permute.xlu1 %5990  ;;  %v6137_v4 = vadd.s32 4294967216, %v7354_v8  ;;  %v6087_v2 = vsel %vm6086_vm13, %v6085_v14, %v6080_v37  ;;  %v6130_v27 = vadd.s32 4294967224, %v7354_v8 }
 0x6ca   : > { %v6106_v11 = vrot.slane %v8840_v16, %v6105_v56  ;;  %v6094_v13 = vsel %vm6093_vm14, %v6092_v21, %v6087_v2  ;;  %v6151_v26 = vadd.s32 4294967200, %v7354_v8  ;;  %v6158_v28 = vadd.s32 4294967192, %v7354_v8 }
 0x6cb   : > { %6065 = vperm.xlu1 %6651, %v5924_v53   ;;  %v6140_v19 = vsub.s32 %v6137_v4, %v6977_v29  ;;  %v6172_v6 = vadd.s32 4294967176, %v7354_v8 }
 0x6cd   : > { %v8842_v22 = vpop.permute.xlu1 %5993 }
 0x6ce   : > { %v8846_v62 = vpop.permute.xlu0 %6002  ;;  %v6113_v61 = vrot.slane %v8842_v22, %v6112_v7 }
 0x6d3   : > { %v8850_v12 = vpop.permute.xlu0 %6008 }
 0x6d6   : > { %v8844_v43 = vpop.permute.xlu1 %5996 }
 0x6dd   : > { %v8854_v5 = vpop.permute.xlu0 %6014 }
 0x6df   : > { %v8848_v34 = vpop.permute.xlu1 %5999 }
 0x6e0   : > { %v6127_v16 = vrot.slane %v8848_v34, %v6126_v50 }
 0x6e6   : > { %v8858_v49 = vpop.permute.xlu0 %6020 }
 0x6eb   : > { %v8852_v54 = vpop.permute.xlu1 %6005 }
 0x6ec   : > { %v6141_v40 = vrot.slane %v8852_v54, %v6140_v19 }
 0x6f0   : > { %v6027_v46 = vpop.permute.xlu0 %6026 }
 0x6f1   : > { %v6186_v3 = vrot.slane %v6027_v46, %v6077_v57  ;;  %v6101_v46 = vsel %vm6100_vm15, %v6099_v63, %v6094_v13  ;;  %v6133_v57 = vsub.s32 %v6130_v27, %v6977_v29 }
 0x6f2   : > { %v6108_v22 = vsel %vm6107_vm0, %v6106_v11, %v6101_v46 }
 0x6f6   : > { %v8856_v31 = vpop.permute.xlu1 %6011 }
 0x6fb   : > { %v6033_v20 = vpop.permute.xlu0 %6032 }
 0x6fc   : > { %v6196_v39 = vrot.slane %v6033_v20, %v6091_v45  ;;  %v6144_v20 = vadd.s32 4294967208, %v7354_v8  ;;  %v6165_v45 = vadd.s32 4294967184, %v7354_v8 }
 0x6fe   : > { %v6147_v34 = vsub.s32 %v6144_v20, %v6977_v29 }
 0x700   : > { %v8860_v38 = vpop.permute.xlu1 %6017 }
 0x705   : > { %v6039_v1 = vpop.permute.xlu0 %6038 }
 0x70b   : > { %v6024_v47 = vpop.permute.xlu1 %6023 }
 0x70c   : > { %v6182_v33 = vrot.slane %v6024_v47, %v6072_v10  ;;  %v6120_v47 = vrot.slane %v8844_v43, %v6119_v44 }
 0x70e   : > { %v6187_v48 = vsel %vm6079_vm6, %v6186_v3, %v6182_v33  ;;  %v6154_v33 = vsub.s32 %v6151_v26, %v6977_v29 }
 0x710   : > { %v8873_v36 = vpop.permute.xlu0 %6044  ;;  %v6155_v37 = vrot.slane %v8856_v31, %v6154_v33 }
 0x715   : > { %v6030_v24 = vpop.permute.xlu1 %6029 }
 0x716   : > { %v6191_v18 = vrot.slane %v6030_v24, %v6084_v59  ;;  %v6206_v24 = vrot.slane %v6039_v1, %v6105_v56  ;;  %v6216_v59 = vrot.slane %v8873_v36, %v6119_v44  ;;  %v6148_v56 = vrot.slane %v8850_v12, %v6147_v34 }
 0x717   : > { %v6175_v12 = vsub.s32 %v6172_v6, %v6977_v29 }
 0x718   : > { %v6192_v17 = vsel %vm6086_vm13, %v6191_v18, %v6187_v48  ;;  %v6134_v18 = vrot.slane %v8846_v62, %v6133_v57  ;;  %v6168_v62 = vsub.s32 %v6165_v45, %v6977_v29  ;;  %v6161_v48 = vsub.s32 %v6158_v28, %v6977_v29 }
 0x719   : > { %v6197_v53 = vsel %vm6093_vm14, %v6196_v39, %v6192_v17 }
 0x71a   : > { %v6051_v35 = vpop.permute.xlu0 %6050  ;;  %v6169_v31 = vrot.slane %v8860_v38, %v6168_v62  ;;  %v6162_v39 = vrot.slane %v8854_v5, %v6161_v48 }
 0x71b   : > { %v6226_v54 = vrot.slane %v6051_v35, %v6133_v57 }
 0x720   : > { %v6036_v41 = vpop.permute.xlu1 %6035 }
 0x721   : > { %v6201_v42 = vrot.slane %v6036_v41, %v6098_v23  ;;  %v6115_v41 = vsel %vm6114_vm1, %v6113_v61, %v6108_v22  ;;  %v6176_v61 = vrot.slane %v8858_v49, %v6175_v12 }
 0x722   : > { %v6122_v51 = vsel %vm6121_vm2, %v6120_v47, %v6115_v41 }
 0x723   : > { %v6202_v30 = vsel %vm6100_vm15, %v6201_v42, %v6197_v53  ;;  %v6129_v9 = vsel %vm6128_vm3, %v6127_v16, %v6122_v51 }
 0x724   : > { %v6207_v52 = vsel %vm6107_vm0, %v6206_v24, %v6202_v30  ;;  %v6136_v36 = vsel %vm6135_vm4, %v6134_v18, %v6129_v9 }
 0x725   : > { %v6057_v10 = vpop.permute.xlu0 %6056 }
 0x726   : > { %v6236_v63 = vrot.slane %v6057_v10, %v6147_v34 }
 0x72a   : > { %v6042_v55 = vpop.permute.xlu1 %6041 }
 0x72b   : > { %v6211_v0 = vrot.slane %v6042_v55, %v6112_v7  ;;  %v6143_v55 = vsel %vm6142_vm5, %v6141_v40, %v6136_v36 }
 0x72c   : > { %v6150_v42 = vsel %vm6149_vm7, %v6148_v56, %v6143_v55 }
 0x72d   : > { %v6212_v43 = vsel %vm6114_vm1, %v6211_v0, %v6207_v52  ;;  %v6157_v44 = vsel %vm6156_vm8, %v6155_v37, %v6150_v42 }
 0x72e   : > { %v6217_v23 = vsel %vm6121_vm2, %v6216_v59, %v6212_v43  ;;  %v6164_v2 = vsel %vm6163_vm9, %v6162_v39, %v6157_v44 }
 0x72f   : > { %v6063_v14 = vpop.permute.xlu0 %6062  ;;  %v6171_v53 = vsel %vm6170_vm10, %v6169_v31, %v6164_v2 }
 0x730   : > { %v6246_v11 = vrot.slane %v6063_v14, %v6161_v48  ;;  %v6178_v29 = vsel %vm6177_vm11, %v6176_v61, %v6171_v53 }
 0x735   : > { %v6048_v15 = vpop.permute.xlu1 %6047 }
 0x736   : > { %v6221_v1 = vrot.slane %v6048_v15, %v6126_v50 }
 0x738   : > { %v6222_v32 = vsel %vm6128_vm3, %v6221_v1, %v6217_v23 }
 0x739   : > { %v6227_v21 = vsel %vm6135_vm4, %v6226_v54, %v6222_v32 }
 0x73a   : > { %v6069_v4 = vpop.permute.xlu0 %6068 }
 0x73b   : > { %v6256_v38 = vrot.slane %v6069_v4, %v6175_v12 }
 0x73f   : > { %v6054_v58 = vpop.permute.xlu1 %6053 }
 0x740   : > { %v6231_v3 = vrot.slane %v6054_v58, %v6140_v19 }
 0x742   : > { %v6232_v17 = vsel %vm6142_vm5, %v6231_v3, %v6227_v21 }
 0x743   : > { %v6237_v50 = vsel %vm6149_vm7, %v6236_v63, %v6232_v17 }
 0x744   : > { %v6060_v7 = vpop.permute.xlu1 %6059 }
 0x745   : > { %v6241_v8 = vrot.slane %v6060_v7, %v6154_v33 }
 0x747   : > { %v6242_v35 = vsel %vm6156_vm8, %v6241_v8, %v6237_v50 }
 0x748   : > { %v6247_v5 = vsel %vm6163_vm9, %v6246_v11, %v6242_v35 }
 0x74a   : > { %v6066_v27 = vpop.permute.xlu1 %6065 }
 0x74b   : > { %v6251_v13 = vrot.slane %v6066_v27, %v6168_v62 }
 0x74d   : > { %v6252_v30 = vsel %vm6170_vm10, %v6251_v13, %v6247_v5 }
 0x74e   : > { %v6257_v0 = vsel %vm6177_vm11, %v6256_v38, %v6252_v30 }
 0x74f   : > { %v6258_v15 = vcombine.low %v6178_v29, %v6257_v0 }
 0x751   : > { %v6265_v46 = vrot.slane %v6258_v15, %v8346_v60 }
 0x753   : > { %v6272_v47 = vrot.slane %v6265_v46, %v8346_v60 }
 0x755   : > { %6278 = vst.msk [vmem:[%s249_s8] sm:$0x3] %vm6276_vm12, %v6272_v47 }
 0x756 PF: > { %s17_s18 = sadd.s32 1, %s6696_s18  }
 0x757   : > { %p14_p5 = scmp.ge.s32.totalorder %s17_s18, 4  }
 0x759   :  { %16 = sbr.rel (!%p14_p5) target bundleno = 2 (0x2), region = 82 }
 0x760   :  { %6298 = vsyncpa [#allocation5], 1 }
 0x761   :  { %6300 = vsyncpa [#allocation5 + $0x1], 1 }
 0x762   :  { %6301 = vsyncpa [#allocation7], 1 }

</bundles_post_ra>
